<compile_context>
chip_gen: v5e
topology: v5e:2x2
jax: 0.10.0
libtpu: 0.0.40
codegen_flags: <defaults>
</compile_context>

<pallas_src>
import jax
import jax.numpy as jnp
from jax.experimental import pallas as pl
from jax.experimental.pallas import tpu as pltpu

_LANE = 128
_SUBLANE = 8
_MAX_BATCH_TILE = 512          # per-tile VMEM is tiny (~5 MiB activations) on all gens
_PARALLEL_MIN_ROWS = 2048      # shard across TCs only when MXU time >> weight DMA


def _round_up(n, m):
    return ((n + m - 1) // m) * m


def _cdiv(a, b):
    return -(-a // b)


def _mlp_kernel(x_ref, w1_ref, b1_ref, w2_ref, b2_ref, w3_ref, b3_ref, o_ref):
    # Fused Linear->ReLU->Linear->ReLU->Linear: bf16 operands on the MXU,
    # f32 accumulation / bias-add / ReLU.  The x cast happens in VMEM so an
    # already-aligned f32 input needs no wrapper-side prep at all.
    x = x_ref[...].astype(w1_ref.dtype)
    h1 = jnp.dot(x, w1_ref[...], preferred_element_type=jnp.float32) + b1_ref[...]
    h1 = jnp.maximum(h1, 0.0).astype(w2_ref.dtype)
    h2 = jnp.dot(h1, w2_ref[...], preferred_element_type=jnp.float32) + b2_ref[...]
    h2 = jnp.maximum(h2, 0.0).astype(w3_ref.dtype)
    y = jnp.dot(h2, w3_ref[...], preferred_element_type=jnp.float32) + b3_ref[...]
    o_ref[...] = y.astype(o_ref.dtype)


def init_channel_compress_params(key, in_ch=2048, out_ch=256):
    """f32 params matching the PyTorch module: weights kaiming_normal_
    (mode='fan_out', a=0) stored in (in, out) layout, biases zero."""
    num_bottleneck = 1000
    dims = [(in_ch, num_bottleneck), (num_bottleneck, 500), (500, out_ch)]
    params = []
    for fan_in, fan_out in dims:
        key, sub = jax.random.split(key)
        std = (2.0 / fan_out) ** 0.5
        w = std * jax.random.normal(sub, (fan_in, fan_out), dtype=jnp.float32)
        b = jnp.zeros((1, fan_out), dtype=jnp.float32)
        params += [w, b]
    return tuple(params)


def prepare_channel_compress_params(params, *, weight_dtype=jnp.bfloat16):
    """Zero-pad every matmul dim to a multiple of 128 and cast weights to bf16.
    Biases stay f32.  Output-preserving by construction (see header)."""
    w1, b1, w2, b2, w3, b3 = params

    def pad2d(a, rows, cols):
        return jnp.pad(a, ((0, rows - a.shape[0]), (0, cols - a.shape[1])))

    in_p = _round_up(w1.shape[0], _LANE)
    n1_p = _round_up(w1.shape[1], _LANE)   # 1000 -> 1024
    n2_p = _round_up(w2.shape[1], _LANE)   # 500  -> 512
    out_p = _round_up(w3.shape[1], _LANE)

    w1p = pad2d(w1, in_p, n1_p).astype(weight_dtype)
    b1p = pad2d(b1, 1, n1_p).astype(jnp.float32)
    w2p = pad2d(w2, n1_p, n2_p).astype(weight_dtype)
    b2p = pad2d(b2, 1, n2_p).astype(jnp.float32)
    w3p = pad2d(w3, n2_p, out_p).astype(weight_dtype)
    b3p = pad2d(b3, 1, out_p).astype(jnp.float32)
    return (w1p, b1p, w2p, b2p, w3p, b3p)


def _pick_batch_tile(batch):
    """Batch-tiling policy (see header).

    * batch <= 512: one tile equal to the (possibly unaligned) full batch --
      no batch padding, no extra grid steps, full MXU M-dimension.
    * batch  > 512: 128-multiple tiles <= 512 sized to minimize padded rows.
    """
    if batch <= _MAX_BATCH_TILE:
        return batch
    bp128 = _round_up(batch, _LANE)
    n_steps = _cdiv(bp128, _MAX_BATCH_TILE)
    return _round_up(_cdiv(bp128, n_steps), _LANE)


def channel_compress_forward(x, prepared_params, out_ch, *, batch_tile=None):
    """Fused ChannelCompress MLP.  x: (B, in_ch) f32/bf16; returns (B, out_ch) f32."""
    w1, b1, w2, b2, w3, b3 = prepared_params
    B, in_ch = x.shape
    in_p, n1 = w1.shape
    n2 = w2.shape[1]
    out_p = w3.shape[1]

    if batch_tile is None:
        batch_tile = _pick_batch_tile(B)
    Bp = _round_up(B, batch_tile)
    num_steps = Bp // batch_tile

    # --- wrapper-side activation prep (minimized) ---
    if (Bp, in_p) != (B, in_ch):
        # Single fused pad + bf16 cast: one read of x, one half-width write.
        # Explicit zero padding of the feature dim is required for correctness
        # (garbage lanes * zero weight rows could otherwise produce NaN).
        xp = jnp.pad(x, ((0, Bp - B), (0, in_p - in_ch))).astype(w1.dtype)
    else:
        xp = x          # untouched f32; kernel casts to bf16 in VMEM

    # Megacore sharding only pays off once per-core MXU time dominates the
    # duplicated resident-weight DMA (each v7x TC has its own private VMEM).
    parallel = num_steps > 1 and Bp >= _PARALLEL_MIN_ROWS
    semantics = ("parallel",) if parallel else ("arbitrary",)

    flops = 2 * Bp * (in_p * n1 + n1 * n2 + n2 * out_p)
    bytes_accessed = int(
        xp.size * xp.dtype.itemsize
        + sum(int(p.size) * p.dtype.itemsize for p in prepared_params)
        + Bp * out_p * 4)
    cost = pl.CostEstimate(flops=flops, transcendentals=0,
                           bytes_accessed=bytes_accessed)

    def build(single_buffer_weights):
        if single_buffer_weights:
            # Weights/biases are fetched once (constant block index); a single
            # buffer halves their VMEM footprint at zero perf cost.
            resident = lambda rows, cols: pl.BlockSpec(
                (rows, cols), lambda i: (0, 0), pipeline_mode=pl.Buffered(1))
        else:
            resident = lambda rows, cols: pl.BlockSpec(
                (rows, cols), lambda i: (0, 0))
        in_specs = [
            pl.BlockSpec((batch_tile, in_p), lambda i: (i, 0)),
            resident(in_p, n1), resident(1, n1),
            resident(n1, n2), resident(1, n2),
            resident(n2, out_p), resident(1, out_p),
        ]
        out_spec = pl.BlockSpec((batch_tile, out_p), lambda i: (i, 0))
        return pl.pallas_call(
            _mlp_kernel,
            out_shape=jax.ShapeDtypeStruct((Bp, out_p), jnp.float32),
            grid_spec=pltpu.PrefetchScalarGridSpec(
                num_scalar_prefetch=0,
                grid=(num_steps,),
                in_specs=in_specs,
                out_specs=out_spec,
            ),
            compiler_params=pltpu.CompilerParams(
                dimension_semantics=semantics,
                vmem_limit_bytes=48 * 1024 * 1024,   # safe on v5e/v6e/v7x
            ),
            cost_estimate=cost,
        )

    args = (xp, w1, b1, w2, b2, w3, b3)
    if num_steps > 1:
        try:
            y = build(True)(*args)
        except Exception:
            # BlockSpec.pipeline_mode unsupported on this jax version: fall back
            # to default double buffering (only costs a few MiB of VMEM headroom).
            y = build(False)(*args)
    else:
        y = build(False)(*args)

    if (Bp, out_p) != (B, out_ch):
        y = y[:B, :out_ch]
    return y


def channel_compress_ref(x, params):
    """Pure-JAX f32 reference matching the PyTorch forward."""
    w1, b1, w2, b2, w3, b3 = params
    h1 = jnp.maximum(x @ w1 + b1, 0.0)
    h2 = jnp.maximum(h1 @ w2 + b2, 0.0)
    return h2 @ w3 + b3


if __name__ == "__main__":
    key = jax.random.PRNGKey(0)
    k_x, k_x2, k_p = jax.random.split(key, 3)

    # Small shapes consistent with the module's forward (x is (batch, in_ch));
    # deliberately non-multiples of 8/128 to exercise the padding paths.
    B, in_ch, out_ch = 12, 200, 120
    params = init_channel_compress_params(k_p, in_ch, out_ch)
    prepared = prepare_channel_compress_params(params)

    def check(xin, **kwargs):
        y = jax.block_until_ready(
            channel_compress_forward(xin, prepared, out_ch, **kwargs))
        y_ref = channel_compress_ref(xin, params)
        assert y.shape == (xin.shape[0], out_ch)
        # bf16 weights/activations -> relaxed tolerance vs the f32 reference.
        max_err = float(jnp.max(jnp.abs(y - y_ref)))
        scale = float(jnp.max(jnp.abs(y_ref))) + 1e-6
        assert max_err / scale < 3e-2, (max_err, scale)

    # Single-tile path (B <= 512): one grid step, no batch padding.
    x = jax.random.normal(k_x, (B, in_ch), dtype=jnp.float32)
    check(x)

    # Multi-step path (explicit small tile): exercises the grid pipeline,
    # "arbitrary" semantics and single-buffered resident weights (+ fallback).
    x2 = jax.random.normal(k_x2, (16, in_ch), dtype=jnp.float32)
    check(x2, batch_tile=8)

    print("KERNEL_OK")
</pallas_src>

<mosaic_0001>
module attributes {stable_mosaic.version = 11 : i64} {
  func.func @_mlp_kernel(%arg0: i32, %arg1: memref<12x256xbf16, #tpu.memory_space<vmem>>, %arg2: memref<256x1024xbf16, #tpu.memory_space<vmem>>, %arg3: memref<1x1024xf32, #tpu.memory_space<vmem>>, %arg4: memref<1024x512xbf16, #tpu.memory_space<vmem>>, %arg5: memref<1x512xf32, #tpu.memory_space<vmem>>, %arg6: memref<512x128xbf16, #tpu.memory_space<vmem>>, %arg7: memref<1x128xf32, #tpu.memory_space<vmem>>, %arg8: memref<12x128xf32, #tpu.memory_space<vmem>>) attributes {dimension_semantics = [#tpu.dimension_semantics<arbitrary>], iteration_bounds = array<i64: 1>, scalar_prefetch = 0 : i64, scratch_operands = 0 : i64, tpu.core_type = #tpu.core_type<tc>, window_params = [{transform_indices = @transform_0, window_bounds = array<i64: 12, 256>}, {pipeline_mode = #tpu.pipeline_mode<synchronous>, transform_indices = @transform_1, window_bounds = array<i64: 256, 1024>}, {pipeline_mode = #tpu.pipeline_mode<synchronous>, transform_indices = @transform_2, window_bounds = array<i64: 1, 1024>}, {pipeline_mode = #tpu.pipeline_mode<synchronous>, transform_indices = @transform_3, window_bounds = array<i64: 1024, 512>}, {pipeline_mode = #tpu.pipeline_mode<synchronous>, transform_indices = @transform_4, window_bounds = array<i64: 1, 512>}, {pipeline_mode = #tpu.pipeline_mode<synchronous>, transform_indices = @transform_5, window_bounds = array<i64: 512, 128>}, {pipeline_mode = #tpu.pipeline_mode<synchronous>, transform_indices = @transform_6, window_bounds = array<i64: 1, 128>}, {transform_indices = @transform_7, window_bounds = array<i64: 12, 128>}]} {
    %c0 = arith.constant 0 : index
    %c0_0 = arith.constant 0 : index
    %0 = vector.load %arg1[%c0, %c0_0] : memref<12x256xbf16, #tpu.memory_space<vmem>>, vector<12x256xbf16>
    %c0_1 = arith.constant 0 : index
    %c0_2 = arith.constant 0 : index
    %1 = vector.load %arg2[%c0_1, %c0_2] : memref<256x1024xbf16, #tpu.memory_space<vmem>>, vector<256x1024xbf16>
    %cst = arith.constant dense<0.000000e+00> : vector<12x1024xf32>
    %2 = tpu.matmul %0, %1, %cst {dimension_numbers = #tpu.dot_dimension_numbers<[1], [0], [0], [1], [0, 0, 1, 1], [], []>} : vector<12x256xbf16>, vector<256x1024xbf16>, vector<12x1024xf32> -> vector<12x1024xf32>
    %c0_3 = arith.constant 0 : index
    %c0_4 = arith.constant 0 : index
    %3 = vector.load %arg3[%c0_3, %c0_4] : memref<1x1024xf32, #tpu.memory_space<vmem>>, vector<1x1024xf32>
    %4 = vector.broadcast %3 : vector<1x1024xf32> to vector<12x1024xf32>
    %5 = arith.addf %2, %4 : vector<12x1024xf32>
    %cst_5 = arith.constant 0.000000e+00 : f32
    %6 = vector.broadcast %cst_5 : f32 to vector<12x1024xf32>
    %7 = arith.maximumf %5, %6 : vector<12x1024xf32>
    %8 = arith.truncf %7 : vector<12x1024xf32> to vector<12x1024xbf16>
    %c0_6 = arith.constant 0 : index
    %c0_7 = arith.constant 0 : index
    %9 = vector.load %arg4[%c0_6, %c0_7] : memref<1024x512xbf16, #tpu.memory_space<vmem>>, vector<1024x512xbf16>
    %cst_8 = arith.constant dense<0.000000e+00> : vector<12x512xf32>
    %10 = tpu.matmul %8, %9, %cst_8 {dimension_numbers = #tpu.dot_dimension_numbers<[1], [0], [0], [1], [0, 0, 1, 1], [], []>} : vector<12x1024xbf16>, vector<1024x512xbf16>, vector<12x512xf32> -> vector<12x512xf32>
    %c0_9 = arith.constant 0 : index
    %c0_10 = arith.constant 0 : index
    %11 = vector.load %arg5[%c0_9, %c0_10] : memref<1x512xf32, #tpu.memory_space<vmem>>, vector<1x512xf32>
    %12 = vector.broadcast %11 : vector<1x512xf32> to vector<12x512xf32>
    %13 = arith.addf %10, %12 : vector<12x512xf32>
    %cst_11 = arith.constant 0.000000e+00 : f32
    %14 = vector.broadcast %cst_11 : f32 to vector<12x512xf32>
    %15 = arith.maximumf %13, %14 : vector<12x512xf32>
    %16 = arith.truncf %15 : vector<12x512xf32> to vector<12x512xbf16>
    %c0_12 = arith.constant 0 : index
    %c0_13 = arith.constant 0 : index
    %17 = vector.load %arg6[%c0_12, %c0_13] : memref<512x128xbf16, #tpu.memory_space<vmem>>, vector<512x128xbf16>
    %cst_14 = arith.constant dense<0.000000e+00> : vector<12x128xf32>
    %18 = tpu.matmul %16, %17, %cst_14 {dimension_numbers = #tpu.dot_dimension_numbers<[1], [0], [0], [1], [0, 0, 1, 1], [], []>} : vector<12x512xbf16>, vector<512x128xbf16>, vector<12x128xf32> -> vector<12x128xf32>
    %c0_15 = arith.constant 0 : index
    %c0_16 = arith.constant 0 : index
    %19 = vector.load %arg7[%c0_15, %c0_16] : memref<1x128xf32, #tpu.memory_space<vmem>>, vector<1x128xf32>
    %20 = vector.broadcast %19 : vector<1x128xf32> to vector<12x128xf32>
    %21 = arith.addf %18, %20 : vector<12x128xf32>
    %c0_17 = arith.constant 0 : index
    %c0_18 = arith.constant 0 : index
    %22 = vector.load %arg8[%c0_17, %c0_18] : memref<12x128xf32, #tpu.memory_space<vmem>>, vector<12x128xf32>
    tpu.vector_store %arg8[%c0_17, %c0_18], %21 {strides = array<i32>} : memref<12x128xf32, #tpu.memory_space<vmem>>, vector<12x128xf32>,
    return
  }
  func.func @transform_0(%arg0: i32) -> (i32, i32) {
    %c0_i32 = arith.constant 0 : i32
    %c0_i32_0 = arith.constant 0 : i32
    return %arg0, %c0_i32 : i32, i32
  }
  func.func @transform_1(%arg0: i32) -> (i32, i32) {
    %c0_i32 = arith.constant 0 : i32
    %c0_i32_0 = arith.constant 0 : i32
    %c0_i32_1 = arith.constant 0 : i32
    return %c0_i32, %c0_i32_0 : i32, i32
  }
  func.func @transform_2(%arg0: i32) -> (i32, i32) {
    %c0_i32 = arith.constant 0 : i32
    %c0_i32_0 = arith.constant 0 : i32
    %c0_i32_1 = arith.constant 0 : i32
    return %c0_i32, %c0_i32_0 : i32, i32
  }
  func.func @transform_3(%arg0: i32) -> (i32, i32) {
    %c0_i32 = arith.constant 0 : i32
    %c0_i32_0 = arith.constant 0 : i32
    %c0_i32_1 = arith.constant 0 : i32
    return %c0_i32, %c0_i32_0 : i32, i32
  }
  func.func @transform_4(%arg0: i32) -> (i32, i32) {
    %c0_i32 = arith.constant 0 : i32
    %c0_i32_0 = arith.constant 0 : i32
    %c0_i32_1 = arith.constant 0 : i32
    return %c0_i32, %c0_i32_0 : i32, i32
  }
  func.func @transform_5(%arg0: i32) -> (i32, i32) {
    %c0_i32 = arith.constant 0 : i32
    %c0_i32_0 = arith.constant 0 : i32
    %c0_i32_1 = arith.constant 0 : i32
    return %c0_i32, %c0_i32_0 : i32, i32
  }
  func.func @transform_6(%arg0: i32) -> (i32, i32) {
    %c0_i32 = arith.constant 0 : i32
    %c0_i32_0 = arith.constant 0 : i32
    %c0_i32_1 = arith.constant 0 : i32
    return %c0_i32, %c0_i32_0 : i32, i32
  }
  func.func @transform_7(%arg0: i32) -> (i32, i32) {
    %c0_i32 = arith.constant 0 : i32
    %c0_i32_0 = arith.constant 0 : i32
    return %arg0, %c0_i32 : i32, i32
  }
}

</mosaic_0001>

<bundles_post_ra>
// kernel: tpu_custom_call.1
= control target key start
LH: loop header
LB: loop body
LE: loop exit
PB: predicated region body
PF: predicated region fallthrough
CT: control target
= control target key end

     0   :  { %12 = vsyncpa [#allocation3], 0  ;;  %s5986_s0 = inlined_call_operand.hbm [shape: bf16[12,256], index: 0, kind: input, shape index: {}]   ;;  %s5987_s1 = inlined_call_operand.hbm [shape: bf16[256,1024], index: 1, kind: input, shape index: {}]   ;;  %s5988_s2 = inlined_call_operand.hbm [shape: f32[1,1024], index: 2, kind: input, shape index: {}]   ;;  %s5989_s3 = inlined_call_operand.hbm [shape: bf16[1024,512], index: 3, kind: input, shape index: {}]   ;;  %s5990_s4 = inlined_call_operand.hbm [shape: f32[1,512], index: 4, kind: input, shape index: {}]   ;;  %s5991_s5 = inlined_call_operand.hbm [shape: bf16[512,128], index: 5, kind: input, shape index: {}]   ;;  %s5992_s6 = inlined_call_operand.vmem [shape: f32[1,128], index: 6, kind: input, shape index: {}]   ;;  %s5993_s7 = inlined_call_operand.hbm [shape: f32[12,128], index: 7, kind: output, shape index: {}]  }
   0x1   :  { %13 = vsyncpa [#allocation6], 0 }
   0x2   :  { %14 = vsyncpa [#allocation9], 0 }
   0x3   :  { %15 = vsyncpa [#allocation12], 0  ;;  %s34_s26 = sshll.u32 %s5987_s1, 4  ;;  %s35_s26 = int_to_ptr.hbm [resolvable:$true] %s34_s26 }
   0x4   :  { %16 = vsyncpa [#allocation4], 0  ;;  %s5793_s27 = smov [#allocation5]   ;;  %s58_s8 = sshll.u32 %s5989_s3, 4  ;;  %s59_s8 = int_to_ptr.hbm [resolvable:$true] %s58_s8 }
   0x5   :  { %s36_s28 = sshll.u32 %s5793_s27, 4  ;;  %s5794_s9 = smov 512   ;;  %s37_s28 = int_to_ptr.vmem [resolvable:$true] %s36_s28 }
   0x6   :  { %s5795_s10 = smov 32   ;;  %s5796_s11 = smov [#allocation8]  }
   0x7   :  { %42 = dma.hbm_to_vmem [thread:$0]  %s35_s26, 16384, %s37_s28, [#allocation6], %s5794_s9, %s5794_s9, %s5795_s10  }
   0x8   :  { %s60_s12 = sshll.u32 %s5796_s11, 4  ;;  %s5797_s13 = smov 256   ;;  %s61_s12 = int_to_ptr.vmem [resolvable:$true] %s60_s12 }
   0x9   :  { %s5798_s14 = smov 16   ;;  %s21_s16 = sshll.u32 %s5986_s0, 4  ;;  %s22_s16 = int_to_ptr.hbm [resolvable:$true] %s21_s16 }
   0xa   :  { %66 = dma.hbm_to_vmem [thread:$0]  %s59_s8, 32768, %s61_s12, [#allocation9], %s5797_s13, %s5797_s13, %s5798_s14  }
   0xb   :  { %s5799_s17 = smov [#allocation2]   ;;  %s48_s20 = sshll.u32 %s5988_s2, 4  ;;  %s49_s20 = int_to_ptr.hbm [resolvable:$true] %s48_s20 }
   0xc   :  { %s23_s18 = sshll.u32 %s5799_s17, 4  ;;  %s5800_s21 = smov 128   ;;  %s24_s18 = int_to_ptr.vmem [resolvable:$true] %s23_s18 }
   0xd   :  { %s5801_s22 = smov 8   ;;  %s5802_s23 = smov [#allocation7]  }
   0xe   :  { %29 = dma.hbm_to_vmem [thread:$0]  %s22_s16, 256, %s24_s18, [#allocation3], %s5800_s21, %s5800_s21, %s5801_s22  }
   0xf   :  { %s50_s24 = sshll.u32 %s5802_s23, 4  ;;  %s72_s0 = sshll.u32 %s5990_s4, 4  ;;  %s51_s24 = int_to_ptr.vmem [resolvable:$true] %s50_s24  ;;  %s73_s0 = int_to_ptr.hbm [resolvable:$true] %s72_s0 }
  0x10   :  { %53 = dma.hbm_to_vmem [thread:$0]  %s49_s20, 128, %s51_s24, [#allocation6]  }
  0x11   :  { %s82_s2 = sshll.u32 %s5991_s5, 4  ;;  %s5803_s29 = smov [#allocation10]   ;;  %s83_s2 = int_to_ptr.hbm [resolvable:$true] %s82_s2 }
  0x12   :  { %s74_s30 = sshll.u32 %s5803_s29, 4  ;;  %s5804_s8 = smov [#allocation11]   ;;  %s75_s30 = int_to_ptr.vmem [resolvable:$true] %s74_s30 }
  0x13   :  { %77 = dma.hbm_to_vmem [thread:$0]  %s73_s0, 64, %s75_s30, [#allocation9]  }
  0x14   :  { %s84_s9 = sshll.u32 %s5804_s8, 4  ;;  %s5805_s10 = smov 64   ;;  %s85_s9 = int_to_ptr.vmem [resolvable:$true] %s84_s9 }
  0x15   :  { %s5806_s11 = smov 4  }
  0x16   :  { %90 = dma.hbm_to_vmem [thread:$0]  %s83_s2, 4096, %s85_s9, [#allocation12], %s5805_s10, %s5805_s10, %s5806_s11  }
  0x17   :  { %5783 = dma.done.wait [#allocation3], 256  }
  0x18   :  { %5784 = vsyncadd [#allocation3], 4294967040 }
  0x19   :  { %5785 = dma.done.wait [#allocation6], 16512  }
  0x1a   :  { %5786 = vsyncadd [#allocation6], 4294950784 }
  0x1b   :  { %5787 = dma.done.wait [#allocation9], 32832  }
  0x1c   :  { %5788 = vsyncadd [#allocation9], 4294934464 }
  0x1d   :  { %5789 = dma.done.wait [#allocation12], 4096  }
  0x1e   :  { %5790 = vsyncadd [#allocation12], 4294963200  ;;  %v3743_v0 = vld [vmem:[#allocation5 + $0x1c0] sm:$0xf]  ;;  %v5239_v5 = vld [vmem:[#allocation5 + $0x1c4] sm:$0xf] }
  0x1f   :  { %v5243_v1 = vld [vmem:[#allocation5 + $0x1dc] sm:$0xf0]  ;;  %v3745_v6 = vld [vmem:[#allocation5 + $0x1e0] sm:$0xf0]  ;;  %s5807_s12 = smov [#allocation13]   ;;  %s3493_s15 = sshll.u32 %s5993_s7, 4  ;;  %s3494_s15 = int_to_ptr.hbm [resolvable:$true] %s3493_s15 }
  0x20   :  { %v3999_v2 = vld [vmem:[#allocation5 + $0x3c0] sm:$0xf]  ;;  %v3744_v3 = vor.u32 %v5243_v1, %v3743_v0  ;;  %v3748_v8 = vor.u32 %v5239_v5, %v3745_v6  ;;  %v5303_v9 = vld [vmem:[#allocation5 + $0x3c4] sm:$0xf]  ;;  %s3491_s13 = sshll.u32 %s5807_s12, 4  ;;  %s3492_s13 = int_to_ptr.vmem [resolvable:$true] %s3491_s13 }
  0x21   :  { %v5307_v4 = vld [vmem:[#allocation5 + $0x3dc] sm:$0xf0]  ;;  %v4001_v10 = vld [vmem:[#allocation5 + $0x3e0] sm:$0xf0] }
  0x22   :  { %v4000_v7 = vor.u32 %v5307_v4, %v3999_v2  ;;  %v3711_v11 = vld [vmem:[#allocation5 + $0x180] sm:$0xf]  ;;  %915 = vmatpush.bf16.msra.mxu0 %v3744_v3  ;;  %v4004_v12 = vor.u32 %v5303_v9, %v4001_v10  ;;  %943 = vmatpush.bf16.msra.mxu2 %v3748_v8  ;;  %v5231_v18 = vld [vmem:[#allocation5 + $0x184] sm:$0xf] }
  0x23   :  { %v5235_v13 = vld [vmem:[#allocation5 + $0x19c] sm:$0xf0]  ;;  %v3713_v19 = vld [vmem:[#allocation5 + $0x1a0] sm:$0xf0] }
  0x24   :  { %v3967_v14 = vld [vmem:[#allocation5 + $0x380] sm:$0xf]  ;;  %929 = vmatpush.bf16.msra.mxu1 %v4000_v7  ;;  %v3712_v16 = vor.u32 %v5235_v13, %v3711_v11  ;;  %v5295_v20 = vld [vmem:[#allocation5 + $0x384] sm:$0xf]  ;;  %957 = vmatpush.bf16.msra.mxu3 %v4004_v12  ;;  %v3716_v21 = vor.u32 %v5231_v18, %v3713_v19 }
  0x25   :  { %v5299_v15 = vld [vmem:[#allocation5 + $0x39c] sm:$0xf0]  ;;  %v3969_v22 = vld [vmem:[#allocation5 + $0x3a0] sm:$0xf0] }
  0x26   :  { %v3968_v17 = vor.u32 %v5299_v15, %v3967_v14  ;;  %v3679_v23 = vld [vmem:[#allocation5 + $0x140] sm:$0xf]  ;;  %v3972_v25 = vor.u32 %v5295_v20, %v3969_v22  ;;  %v5223_v28 = vld [vmem:[#allocation5 + $0x144] sm:$0xf]  ;;  %916 = vmatpush.bf16.msra.mxu0 %v3712_v16  ;;  %944 = vmatpush.bf16.msra.mxu2 %v3716_v21 }
  0x27   :  { %v5227_v24 = vld [vmem:[#allocation5 + $0x15c] sm:$0xf0]  ;;  %v3681_v30 = vld [vmem:[#allocation5 + $0x160] sm:$0xf0] }
  0x28   :  { %v3935_v26 = vld [vmem:[#allocation5 + $0x340] sm:$0xf]  ;;  %v3680_v29 = vor.u32 %v5227_v24, %v3679_v23  ;;  %v5287_v31 = vld [vmem:[#allocation5 + $0x344] sm:$0xf]  ;;  %930 = vmatpush.bf16.msra.mxu1 %v3968_v17  ;;  %v3684_v34 = vor.u32 %v5223_v28, %v3681_v30  ;;  %958 = vmatpush.bf16.msra.mxu3 %v3972_v25  ;;  %v3751_v28 = vld [vmem:[#allocation5 + $0x1c8] sm:$0xf] }
  0x29   :  { %v5291_v27 = vld [vmem:[#allocation5 + $0x35c] sm:$0xf0]  ;;  %v3937_v32 = vld [vmem:[#allocation5 + $0x360] sm:$0xf0]  ;;  %v4007_v30 = vld [vmem:[#allocation5 + $0x3c8] sm:$0xf] }
  0x2a   :  { %v3936_v33 = vor.u32 %v5291_v27, %v3935_v26  ;;  %v3647_v35 = vld [vmem:[#allocation5 + $0x100] sm:$0xf]  ;;  %v3940_v38 = vor.u32 %v5287_v31, %v3937_v32  ;;  %v5215_v40 = vld [vmem:[#allocation5 + $0x104] sm:$0xf]  ;;  %917 = vmatpush.bf16.msra.mxu0 %v3680_v29  ;;  %945 = vmatpush.bf16.msra.mxu2 %v3684_v34  ;;  %v5244_v29 = vld [vmem:[#allocation5 + $0x1e4] sm:$0xf0] }
  0x2b   :  { %v5219_v36 = vld [vmem:[#allocation5 + $0x11c] sm:$0xf0]  ;;  %v3649_v41 = vld [vmem:[#allocation5 + $0x120] sm:$0xf0]  ;;  %v5308_v32 = vld [vmem:[#allocation5 + $0x3e4] sm:$0xf0] }
  0x2c   :  { %v3903_v37 = vld [vmem:[#allocation5 + $0x300] sm:$0xf]  ;;  %v5279_v42 = vld [vmem:[#allocation5 + $0x304] sm:$0xf]  ;;  %v3648_v44 = vor.u32 %v5219_v36, %v3647_v35  ;;  %931 = vmatpush.bf16.msra.mxu1 %v3936_v33  ;;  %v3652_v46 = vor.u32 %v5215_v40, %v3649_v41  ;;  %959 = vmatpush.bf16.msra.mxu3 %v3940_v38  ;;  %v5240_v33 = vld [vmem:[#allocation5 + $0x1cc] sm:$0xf]  ;;  %v3752_v40 = vor.u32 %v5244_v29, %v3751_v28 }
  0x2d   :  { %v5283_v39 = vld [vmem:[#allocation5 + $0x31c] sm:$0xf0]  ;;  %v3905_v43 = vld [vmem:[#allocation5 + $0x320] sm:$0xf0]  ;;  %v3753_v34 = vld [vmem:[#allocation5 + $0x1e8] sm:$0xf0] }
  0x2e   :  { %v3904_v45 = vor.u32 %v5283_v39, %v3903_v37  ;;  %v3615_v47 = vld [vmem:[#allocation5 + $0xc0] sm:$0xf]  ;;  %v3908_v50 = vor.u32 %v5279_v42, %v3905_v43  ;;  %v5207_v52 = vld [vmem:[#allocation5 + $0xc4] sm:$0xf]  ;;  %918 = vmatpush.bf16.msra.mxu0 %v3648_v44  ;;  %946 = vmatpush.bf16.msra.mxu2 %v3652_v46  ;;  %v5304_v37 = vld [vmem:[#allocation5 + $0x3cc] sm:$0xf]  ;;  %v4008_v43 = vor.u32 %v5308_v32, %v4007_v30 }
  0x2f   :  { %v5211_v48 = vld [vmem:[#allocation5 + $0xdc] sm:$0xf0]  ;;  %v3617_v53 = vld [vmem:[#allocation5 + $0xe0] sm:$0xf0]  ;;  %v4009_v38 = vld [vmem:[#allocation5 + $0x3e8] sm:$0xf0]  ;;  %v3756_v44 = vor.u32 %v5240_v33, %v3753_v34 }
  0x30   :  { %v3871_v49 = vld [vmem:[#allocation5 + $0x2c0] sm:$0xf]  ;;  %v5271_v54 = vld [vmem:[#allocation5 + $0x2c4] sm:$0xf]  ;;  %v3616_v56 = vor.u32 %v5211_v48, %v3615_v47  ;;  %932 = vmatpush.bf16.msra.mxu1 %v3904_v45  ;;  %v3620_v58 = vor.u32 %v5207_v52, %v3617_v53  ;;  %960 = vmatpush.bf16.msra.mxu3 %v3908_v50  ;;  %v3719_v41 = vld [vmem:[#allocation5 + $0x188] sm:$0xf]  ;;  %v4012_v48 = vor.u32 %v5304_v37, %v4009_v38 }
  0x31   :  { %v5275_v51 = vld [vmem:[#allocation5 + $0x2dc] sm:$0xf0]  ;;  %v3873_v55 = vld [vmem:[#allocation5 + $0x2e0] sm:$0xf0]  ;;  %v5236_v42 = vld [vmem:[#allocation5 + $0x1a4] sm:$0xf0] }
  0x32   :  { %v3872_v57 = vor.u32 %v5275_v51, %v3871_v49  ;;  %v3583_v59 = vld [vmem:[#allocation5 + $0x80] sm:$0xf]  ;;  %v3876_v62 = vor.u32 %v5271_v54, %v3873_v55  ;;  %v5199_v0 = vld [vmem:[#allocation5 + $0x84] sm:$0xf]  ;;  %919 = vmatpush.bf16.msra.mxu0 %v3616_v56  ;;  %947 = vmatpush.bf16.msra.mxu2 %v3620_v58  ;;  %v3975_v45 = vld [vmem:[#allocation5 + $0x388] sm:$0xf]  ;;  %v3720_v55 = vor.u32 %v5236_v42, %v3719_v41 }
  0x33   :  { %v5203_v60 = vld [vmem:[#allocation5 + $0x9c] sm:$0xf0]  ;;  %v3585_v1 = vld [vmem:[#allocation5 + $0xa0] sm:$0xf0]  ;;  %v5300_v46 = vld [vmem:[#allocation5 + $0x3a4] sm:$0xf0] }
  0x34   :  { %v3839_v61 = vld [vmem:[#allocation5 + $0x280] sm:$0xf]  ;;  %v5263_v2 = vld [vmem:[#allocation5 + $0x284] sm:$0xf]  ;;  %v3584_v4 = vor.u32 %v5203_v60, %v3583_v59  ;;  %933 = vmatpush.bf16.msra.mxu1 %v3872_v57  ;;  %v3588_v6 = vor.u32 %v5199_v0, %v3585_v1  ;;  %961 = vmatpush.bf16.msra.mxu3 %v3876_v62  ;;  %v5232_v47 = vld [vmem:[#allocation5 + $0x18c] sm:$0xf]  ;;  %v3976_v58 = vor.u32 %v5300_v46, %v3975_v45 }
  0x35   :  { %v5267_v63 = vld [vmem:[#allocation5 + $0x29c] sm:$0xf0]  ;;  %v3841_v3 = vld [vmem:[#allocation5 + $0x2a0] sm:$0xf0]  ;;  %v3721_v49 = vld [vmem:[#allocation5 + $0x1a8] sm:$0xf0] }
  0x36   :  { %v3840_v5 = vor.u32 %v5267_v63, %v3839_v61  ;;  %v3551_v7 = vld [vmem:[#allocation5 + $0x40] sm:$0xf]  ;;  %v3844_v10 = vor.u32 %v5263_v2, %v3841_v3  ;;  %v5191_v12 = vld [vmem:[#allocation5 + $0x44] sm:$0xf]  ;;  %920 = vmatpush.bf16.msra.mxu0 %v3584_v4  ;;  %948 = vmatpush.bf16.msra.mxu2 %v3588_v6  ;;  %v5296_v50 = vld [vmem:[#allocation5 + $0x38c] sm:$0xf]  ;;  %v3724_v59 = vor.u32 %v5232_v47, %v3721_v49 }
  0x37   :  { %v5195_v8 = vld [vmem:[#allocation5 + $0x5c] sm:$0xf0]  ;;  %v3553_v13 = vld [vmem:[#allocation5 + $0x60] sm:$0xf0]  ;;  %v3977_v51 = vld [vmem:[#allocation5 + $0x3a8] sm:$0xf0] }
  0x38   :  { %v3807_v9 = vld [vmem:[#allocation5 + $0x240] sm:$0xf]  ;;  %v5255_v14 = vld [vmem:[#allocation5 + $0x244] sm:$0xf]  ;;  %v3552_v16 = vor.u32 %v5195_v8, %v3551_v7  ;;  %934 = vmatpush.bf16.msra.mxu1 %v3840_v5  ;;  %v3556_v20 = vor.u32 %v5191_v12, %v3553_v13  ;;  %962 = vmatpush.bf16.msra.mxu3 %v3844_v10  ;;  %v3511_v52 = vld [vmem:[#allocation2] sm:$0xf]  ;;  %v3980_v0 = vor.u32 %v5296_v50, %v3977_v51 }
  0x39   :  { %v5259_v11 = vld [vmem:[#allocation5 + $0x25c] sm:$0xf0]  ;;  %v3809_v15 = vld [vmem:[#allocation5 + $0x260] sm:$0xf0]  ;;  %v5182_v53 = vld [vmem:[#allocation2 + $0x4] sm:$0x30] }
  0x3a   :  { %v3519_v17 = vld [vmem:[#allocation5] sm:$0xf]  ;;  %v3808_v19 = vor.u32 %v5259_v11, %v3807_v9  ;;  %v5183_v23 = vld [vmem:[#allocation5 + $0x4] sm:$0xf]  ;;  %v3812_v24 = vor.u32 %v5255_v14, %v3809_v15  ;;  %921 = vmatpush.bf16.msra.mxu0 %v3552_v16  ;;  %949 = vmatpush.bf16.msra.mxu2 %v3556_v20  ;;  %v5181_v54 = vld [vmem:[#allocation2 + $0x4] sm:$0xf]  ;;  %v5869_v56 = vor.u32 %v5182_v53, %v3511_v52 }
  0x3b   :  { %v5187_v18 = vld [vmem:[#allocation5 + $0x1c] sm:$0xf0]  ;;  %v3521_v25 = vld [vmem:[#allocation5 + $0x20] sm:$0xf0]  ;;  %v3513_v57 = vld [vmem:[#allocation2 + $0x8] sm:$0x30] }
  0x3c   :  { %v3775_v21 = vld [vmem:[#allocation5 + $0x200] sm:$0xf]  ;;  %v5247_v26 = vld [vmem:[#allocation5 + $0x204] sm:$0xf]  ;;  %v3520_v31 = vor.u32 %v5187_v18, %v3519_v17  ;;  %935 = vmatpush.bf16.msra.mxu1 %v3808_v19  ;;  %v3524_v36 = vor.u32 %v5183_v23, %v3521_v25  ;;  %963 = vmatpush.bf16.msra.mxu3 %v3812_v24  ;;  %v3687_v60 = vld [vmem:[#allocation5 + $0x148] sm:$0xf]  ;;  %v5871_v63 = vor.u32 %v5181_v54, %v3513_v57 }
  0x3d   :  { %v5251_v22 = vld [vmem:[#allocation5 + $0x21c] sm:$0xf0]  ;;  %v3777_v27 = vld [vmem:[#allocation5 + $0x220] sm:$0xf0]  ;;  %v5228_v61 = vld [vmem:[#allocation5 + $0x164] sm:$0xf0] }
  0x3e   :  { %v3776_v35 = vor.u32 %v5251_v22, %v3775_v21  ;;  %v3780_v39 = vor.u32 %v5247_v26, %v3777_v27  ;;  %922 = vmatpush.bf16.msra.mxu0 %v3520_v31  ;;  %950 = vmatpush.bf16.msra.mxu2 %v3524_v36  ;;  %v3943_v62 = vld [vmem:[#allocation5 + $0x348] sm:$0xf]  ;;  %v5224_v2 = vld [vmem:[#allocation5 + $0x14c] sm:$0xf]  ;;  %v3688_v6 = vor.u32 %v5228_v61, %v3687_v60 }
  0x3f   :  { %v5292_v1 = vld [vmem:[#allocation5 + $0x364] sm:$0xf0]  ;;  %v3689_v3 = vld [vmem:[#allocation5 + $0x168] sm:$0xf0] }
  0x40   :  { %936 = vmatpush.bf16.msra.mxu1 %v3776_v35  ;;  %964 = vmatpush.bf16.msra.mxu3 %v3780_v39  ;;  %v5288_v4 = vld [vmem:[#allocation5 + $0x34c] sm:$0xf]  ;;  %v3944_v7 = vor.u32 %v5292_v1, %v3943_v62  ;;  %v3692_v8 = vor.u32 %v5224_v2, %v3689_v3  ;;  %v3655_v9 = vld [vmem:[#allocation5 + $0x108] sm:$0xf] }
  0x41   :  { %951 = vmatmul.bf16.vlgmr.msra.gmra.mxu2 %v5869_v56  ;;  %v3945_v5 = vld [vmem:[#allocation5 + $0x368] sm:$0xf0]  ;;  %923 = vmatmul.bf16.vlgmr.msra.gmra.mxu0 %v5869_v56  ;;  %v5220_v10 = vld [vmem:[#allocation5 + $0x124] sm:$0xf0] }
  0x42   :  { %971 = vmatpush.bf16.msrb.mxu0 %v3752_v40  ;;  %999 = vmatpush.bf16.msrb.mxu2 %v3756_v44  ;;  %v3911_v11 = vld [vmem:[#allocation5 + $0x308] sm:$0xf]  ;;  %v3948_v12 = vor.u32 %v5288_v4, %v3945_v5  ;;  %v5216_v14 = vld [vmem:[#allocation5 + $0x10c] sm:$0xf]  ;;  %v3656_v18 = vor.u32 %v5220_v10, %v3655_v9  ;;  %v3759_v4 = vld [vmem:[#allocation5 + $0x1d0] sm:$0xf] }
  0x43   :  { %965 = vmatmul.bf16.vlgmr.msra.gmra.mxu3 %v5871_v63  ;;  %937 = vmatmul.bf16.vlgmr.msra.gmra.mxu1 %v5871_v63  ;;  %v5284_v13 = vld [vmem:[#allocation5 + $0x324] sm:$0xf0]  ;;  %v3657_v15 = vld [vmem:[#allocation5 + $0x128] sm:$0xf0]  ;;  %v5245_v5 = vld [vmem:[#allocation5 + $0x1ec] sm:$0xf0] }
  0x44   :  { %985 = vmatpush.bf16.msrb.mxu1 %v4008_v43  ;;  %1013 = vmatpush.bf16.msrb.mxu3 %v4012_v48  ;;  %v5280_v16 = vld [vmem:[#allocation5 + $0x30c] sm:$0xf]  ;;  %v3912_v19 = vor.u32 %v5284_v13, %v3911_v11  ;;  %v3660_v20 = vor.u32 %v5216_v14, %v3657_v15  ;;  %v3623_v21 = vld [vmem:[#allocation5 + $0xc8] sm:$0xf]  ;;  %v5241_v9 = vld [vmem:[#allocation5 + $0x1d4] sm:$0xf] }
  0x45   :  { %v3913_v17 = vld [vmem:[#allocation5 + $0x328] sm:$0xf0]  ;;  %v5212_v22 = vld [vmem:[#allocation5 + $0xe4] sm:$0xf0]  ;;  %v3761_v10 = vld [vmem:[#allocation5 + $0x1f0] sm:$0xf0] }
  0x46   :  { %972 = vmatpush.bf16.msrb.mxu0 %v3720_v55  ;;  %1000 = vmatpush.bf16.msrb.mxu2 %v3724_v59  ;;  %v3879_v23 = vld [vmem:[#allocation5 + $0x2c8] sm:$0xf]  ;;  %v3916_v24 = vor.u32 %v5280_v16, %v3913_v17  ;;  %v5208_v26 = vld [vmem:[#allocation5 + $0xcc] sm:$0xf]  ;;  %v3624_v30 = vor.u32 %v5212_v22, %v3623_v21  ;;  %v5305_v13 = vld [vmem:[#allocation5 + $0x3d4] sm:$0xf]  ;;  %v3760_v16 = vor.u32 %v5245_v5, %v3759_v4 }
  0x47   :  { %v5276_v25 = vld [vmem:[#allocation5 + $0x2e4] sm:$0xf0]  ;;  %v3625_v27 = vld [vmem:[#allocation5 + $0xe8] sm:$0xf0]  ;;  %v4017_v14 = vld [vmem:[#allocation5 + $0x3f0] sm:$0xf0] }
  0x48   :  { %986 = vmatpush.bf16.msrb.mxu1 %v3976_v58  ;;  %1014 = vmatpush.bf16.msrb.mxu3 %v3980_v0  ;;  %v5272_v28 = vld [vmem:[#allocation5 + $0x2cc] sm:$0xf]  ;;  %v3880_v31 = vor.u32 %v5276_v25, %v3879_v23  ;;  %v3628_v32 = vor.u32 %v5208_v26, %v3625_v27  ;;  %v3591_v33 = vld [vmem:[#allocation5 + $0x88] sm:$0xf]  ;;  %v3983_v21 = vld [vmem:[#allocation5 + $0x390] sm:$0xf]  ;;  %v4020_v22 = vor.u32 %v5305_v13, %v4017_v14 }
  0x49   :  { %v3881_v29 = vld [vmem:[#allocation5 + $0x2e8] sm:$0xf0]  ;;  %v5204_v34 = vld [vmem:[#allocation5 + $0xa4] sm:$0xf0]  ;;  %v5301_v23 = vld [vmem:[#allocation5 + $0x3ac] sm:$0xf0] }
  0x4a   :  { %973 = vmatpush.bf16.msrb.mxu0 %v3688_v6  ;;  %1001 = vmatpush.bf16.msrb.mxu2 %v3692_v8  ;;  %v3847_v35 = vld [vmem:[#allocation5 + $0x288] sm:$0xf]  ;;  %v3884_v36 = vor.u32 %v5272_v28, %v3881_v29  ;;  %v5200_v38 = vld [vmem:[#allocation5 + $0x8c] sm:$0xf]  ;;  %v3592_v42 = vor.u32 %v5204_v34, %v3591_v33  ;;  %v4015_v6 = vld [vmem:[#allocation5 + $0x3d0] sm:$0xf]  ;;  %v3984_v29 = vor.u32 %v5301_v23, %v3983_v21 }
  0x4b   :  { %v5268_v37 = vld [vmem:[#allocation5 + $0x2a4] sm:$0xf0]  ;;  %v3593_v39 = vld [vmem:[#allocation5 + $0xa8] sm:$0xf0]  ;;  %v5309_v8 = vld [vmem:[#allocation5 + $0x3ec] sm:$0xf0] }
  0x4c   :  { %987 = vmatpush.bf16.msrb.mxu1 %v3944_v7  ;;  %1015 = vmatpush.bf16.msrb.mxu3 %v3948_v12  ;;  %v5264_v40 = vld [vmem:[#allocation5 + $0x28c] sm:$0xf]  ;;  %v3848_v43 = vor.u32 %v5268_v37, %v3847_v35  ;;  %v3596_v44 = vor.u32 %v5200_v38, %v3593_v39  ;;  %v3559_v45 = vld [vmem:[#allocation5 + $0x48] sm:$0xf]  ;;  %v4016_v17 = vor.u32 %v5309_v8, %v4015_v6  ;;  %v3729_v25 = vld [vmem:[#allocation5 + $0x1b0] sm:$0xf0] }
  0x4d   :  { %v3849_v41 = vld [vmem:[#allocation5 + $0x2a8] sm:$0xf0]  ;;  %v5196_v46 = vld [vmem:[#allocation5 + $0x64] sm:$0xf0]  ;;  %v5297_v26 = vld [vmem:[#allocation5 + $0x394] sm:$0xf] }
  0x4e   :  { %974 = vmatpush.bf16.msrb.mxu0 %v3656_v18  ;;  %1002 = vmatpush.bf16.msrb.mxu2 %v3660_v20  ;;  %v3815_v47 = vld [vmem:[#allocation5 + $0x248] sm:$0xf]  ;;  %v3852_v48 = vor.u32 %v5264_v40, %v3849_v41  ;;  %v5192_v50 = vld [vmem:[#allocation5 + $0x4c] sm:$0xf]  ;;  %v3560_v54 = vor.u32 %v5196_v46, %v3559_v45  ;;  %v3764_v18 = vor.u32 %v5241_v9, %v3761_v10  ;;  %v5237_v20 = vld [vmem:[#allocation5 + $0x1ac] sm:$0xf0] }
  0x4f   :  { %v5260_v49 = vld [vmem:[#allocation5 + $0x264] sm:$0xf0]  ;;  %v3561_v51 = vld [vmem:[#allocation5 + $0x68] sm:$0xf0]  ;;  %v3985_v27 = vld [vmem:[#allocation5 + $0x3b0] sm:$0xf0] }
  0x50   :  { %988 = vmatpush.bf16.msrb.mxu1 %v3912_v19  ;;  %1016 = vmatpush.bf16.msrb.mxu3 %v3916_v24  ;;  %v5256_v52 = vld [vmem:[#allocation5 + $0x24c] sm:$0xf]  ;;  %v3527_v55 = vld [vmem:[#allocation5 + $0x8] sm:$0xf]  ;;  %v3816_v58 = vor.u32 %v5260_v49, %v3815_v47  ;;  %v3564_v59 = vor.u32 %v5192_v50, %v3561_v51  ;;  %v3727_v19 = vld [vmem:[#allocation5 + $0x190] sm:$0xf]  ;;  %v3988_v34 = vor.u32 %v5297_v26, %v3985_v27 }
  0x51   :  { %v3817_v53 = vld [vmem:[#allocation5 + $0x268] sm:$0xf0]  ;;  %v5188_v57 = vld [vmem:[#allocation5 + $0x24] sm:$0xf0]  ;;  %v5233_v24 = vld [vmem:[#allocation5 + $0x194] sm:$0xf]  ;;  %v3728_v28 = vor.u32 %v5237_v20, %v3727_v19 }
  0x52   :  { %975 = vmatpush.bf16.msrb.mxu0 %v3624_v30  ;;  %1003 = vmatpush.bf16.msrb.mxu2 %v3628_v32  ;;  %v3783_v60 = vld [vmem:[#allocation5 + $0x208] sm:$0xf]  ;;  %v5184_v62 = vld [vmem:[#allocation5 + $0xc] sm:$0xf]  ;;  %v3820_v0 = vor.u32 %v5256_v52, %v3817_v53  ;;  %v3528_v7 = vor.u32 %v5188_v57, %v3527_v55  ;;  %v3732_v30 = vor.u32 %v5233_v24, %v3729_v25  ;;  %v5229_v32 = vld [vmem:[#allocation5 + $0x16c] sm:$0xf0] }
  0x53   :  { %v5252_v61 = vld [vmem:[#allocation5 + $0x224] sm:$0xf0]  ;;  %v3529_v1 = vld [vmem:[#allocation5 + $0x28] sm:$0xf0]  ;;  %v3951_v33 = vld [vmem:[#allocation5 + $0x350] sm:$0xf] }
  0x54   :  { %989 = vmatpush.bf16.msrb.mxu1 %v3880_v31  ;;  %1017 = vmatpush.bf16.msrb.mxu3 %v3884_v36  ;;  %v5248_v2 = vld [vmem:[#allocation5 + $0x20c] sm:$0xf]  ;;  %v3784_v11 = vor.u32 %v5252_v61, %v3783_v60  ;;  %v3532_v12 = vor.u32 %v5184_v62, %v3529_v1  ;;  %v3695_v31 = vld [vmem:[#allocation5 + $0x150] sm:$0xf]  ;;  %v5225_v36 = vld [vmem:[#allocation5 + $0x154] sm:$0xf] }
  0x55   :  { %v3785_v3 = vld [vmem:[#allocation5 + $0x228] sm:$0xf0]  ;;  %v5293_v35 = vld [vmem:[#allocation5 + $0x36c] sm:$0xf0]  ;;  %v3697_v37 = vld [vmem:[#allocation5 + $0x170] sm:$0xf0]  ;;  %v3696_v40 = vor.u32 %v5229_v32, %v3695_v31 }
  0x56   :  { %976 = vmatpush.bf16.msrb.mxu0 %v3592_v42  ;;  %1004 = vmatpush.bf16.msrb.mxu2 %v3596_v44  ;;  %v3788_v15 = vor.u32 %v5248_v2, %v3785_v3  ;;  %v5289_v38 = vld [vmem:[#allocation5 + $0x354] sm:$0xf]  ;;  %v3952_v41 = vor.u32 %v5293_v35, %v3951_v33  ;;  %v3700_v42 = vor.u32 %v5225_v36, %v3697_v37  ;;  %v5221_v44 = vld [vmem:[#allocation5 + $0x12c] sm:$0xf0] }
  0x57   :  { %v3953_v39 = vld [vmem:[#allocation5 + $0x370] sm:$0xf0]  ;;  %v3919_v45 = vld [vmem:[#allocation5 + $0x310] sm:$0xf] }
  0x58   :  { %990 = vmatpush.bf16.msrb.mxu1 %v3848_v43  ;;  %1018 = vmatpush.bf16.msrb.mxu3 %v3852_v48  ;;  %v3663_v43 = vld [vmem:[#allocation5 + $0x110] sm:$0xf]  ;;  %v3956_v46 = vor.u32 %v5289_v38, %v3953_v39  ;;  %v5217_v48 = vld [vmem:[#allocation5 + $0x114] sm:$0xf]  ;;  %v3767_v38 = vld [vmem:[#allocation5 + $0x1d8] sm:$0xf] }
  0x59   :  { %v5285_v47 = vld [vmem:[#allocation5 + $0x32c] sm:$0xf0]  ;;  %v3665_v49 = vld [vmem:[#allocation5 + $0x130] sm:$0xf0]  ;;  %v3664_v52 = vor.u32 %v5221_v44, %v3663_v43  ;;  %v5246_v39 = vld [vmem:[#allocation5 + $0x1f4] sm:$0xf0] }
  0x5a   :  { %977 = vmatpush.bf16.msrb.mxu0 %v3560_v54  ;;  %1005 = vmatpush.bf16.msrb.mxu2 %v3564_v59  ;;  %v5281_v50 = vld [vmem:[#allocation5 + $0x314] sm:$0xf]  ;;  %v3920_v53 = vor.u32 %v5285_v47, %v3919_v45  ;;  %v3668_v54 = vor.u32 %v5217_v48, %v3665_v49  ;;  %v3631_v55 = vld [vmem:[#allocation5 + $0xd0] sm:$0xf]  ;;  %v5242_v43 = vld [vmem:[#allocation5 + $0x1dc] sm:$0xf] }
  0x5b   :  { %v3921_v51 = vld [vmem:[#allocation5 + $0x330] sm:$0xf0]  ;;  %v5213_v57 = vld [vmem:[#allocation5 + $0xec] sm:$0xf0]  ;;  %v3769_v44 = vld [vmem:[#allocation5 + $0x1f8] sm:$0xf0] }
  0x5c   :  { %991 = vmatpush.bf16.msrb.mxu1 %v3816_v58  ;;  %1019 = vmatpush.bf16.msrb.mxu3 %v3820_v0  ;;  %v3887_v58 = vld [vmem:[#allocation5 + $0x2d0] sm:$0xf]  ;;  %v3924_v59 = vor.u32 %v5281_v50, %v3921_v51  ;;  %v5209_v61 = vld [vmem:[#allocation5 + $0xd4] sm:$0xf]  ;;  %v3632_v2 = vor.u32 %v5213_v57, %v3631_v55  ;;  %v5306_v47 = vld [vmem:[#allocation5 + $0x3dc] sm:$0xf]  ;;  %v3768_v50 = vor.u32 %v5246_v39, %v3767_v38 }
  0x5d   :  { %v5277_v60 = vld [vmem:[#allocation5 + $0x2ec] sm:$0xf0]  ;;  %v3633_v62 = vld [vmem:[#allocation5 + $0xf0] sm:$0xf0]  ;;  %v4025_v48 = vld [vmem:[#allocation5 + $0x3f8] sm:$0xf0] }
  0x5e   :  { %978 = vmatpush.bf16.msrb.mxu0 %v3528_v7  ;;  %1006 = vmatpush.bf16.msrb.mxu2 %v3532_v12  ;;  %v5273_v0 = vld [vmem:[#allocation5 + $0x2d4] sm:$0xf]  ;;  %v3888_v3 = vor.u32 %v5277_v60, %v3887_v58  ;;  %v3636_v4 = vor.u32 %v5209_v61, %v3633_v62  ;;  %v3599_v5 = vld [vmem:[#allocation5 + $0x90] sm:$0xf]  ;;  %v3991_v55 = vld [vmem:[#allocation5 + $0x398] sm:$0xf]  ;;  %v4028_v57 = vor.u32 %v5306_v47, %v4025_v48 }
  0x5f   :  { %v3889_v1 = vld [vmem:[#allocation5 + $0x2f0] sm:$0xf0]  ;;  %v5205_v6 = vld [vmem:[#allocation5 + $0xac] sm:$0xf0]  ;;  %v5302_v58 = vld [vmem:[#allocation5 + $0x3b4] sm:$0xf0] }
  0x60   :  { %992 = vmatpush.bf16.msrb.mxu1 %v3784_v11  ;;  %1020 = vmatpush.bf16.msrb.mxu3 %v3788_v15  ;;  %v3855_v7 = vld [vmem:[#allocation5 + $0x290] sm:$0xf]  ;;  %v3892_v8 = vor.u32 %v5273_v0, %v3889_v1  ;;  %v5201_v10 = vld [vmem:[#allocation5 + $0x94] sm:$0xf]  ;;  %v3600_v14 = vor.u32 %v5205_v6, %v3599_v5  ;;  %v3737_v60 = vld [vmem:[#allocation5 + $0x1b8] sm:$0xf0]  ;;  %v3992_v1 = vor.u32 %v5302_v58, %v3991_v55 }
  0x61   :  { %979 = vmatmul.bf16.vlgmr.msrb.gmra.mxu0 %v5869_v56  ;;  %1007 = vmatmul.bf16.vlgmr.msrb.gmra.mxu2 %v5869_v56  ;;  %v5269_v9 = vld [vmem:[#allocation5 + $0x2ac] sm:$0xf0]  ;;  %v3601_v11 = vld [vmem:[#allocation5 + $0xb0] sm:$0xf0]  ;;  %v5298_v61 = vld [vmem:[#allocation5 + $0x39c] sm:$0xf] }
  0x62   :  { %1027 = vmatpush.bf16.msra.mxu0 %v3760_v16  ;;  %1055 = vmatpush.bf16.msra.mxu2 %v3764_v18  ;;  %v5265_v12 = vld [vmem:[#allocation5 + $0x294] sm:$0xf]  ;;  %v3856_v15 = vor.u32 %v5269_v9, %v3855_v7  ;;  %v3604_v16 = vor.u32 %v5201_v10, %v3601_v11  ;;  %v5197_v18 = vld [vmem:[#allocation5 + $0x6c] sm:$0xf0]  ;;  %v3993_v62 = vld [vmem:[#allocation5 + $0x3b8] sm:$0xf0] }
  0x63   :  { %993 = vmatmul.bf16.vlgmr.msrb.gmra.mxu1 %v5871_v63  ;;  %1021 = vmatmul.bf16.vlgmr.msrb.gmra.mxu3 %v5871_v63  ;;  %v3857_v13 = vld [vmem:[#allocation5 + $0x2b0] sm:$0xf0]  ;;  %v3823_v19 = vld [vmem:[#allocation5 + $0x250] sm:$0xf]  ;;  %v3959_v5 = vld [vmem:[#allocation5 + $0x358] sm:$0xf]  ;;  %v3996_v6 = vor.u32 %v5298_v61, %v3993_v62 }
  0x64   :  { %1041 = vmatpush.bf16.msra.mxu1 %v4016_v17  ;;  %1069 = vmatpush.bf16.msra.mxu3 %v4020_v22  ;;  %v3567_v17 = vld [vmem:[#allocation5 + $0x50] sm:$0xf]  ;;  %v3860_v20 = vor.u32 %v5265_v12, %v3857_v13  ;;  %v5193_v22 = vld [vmem:[#allocation5 + $0x54] sm:$0xf]  ;;  %v5294_v7 = vld [vmem:[#allocation5 + $0x374] sm:$0xf0] }
  0x65   :  { %v5261_v21 = vld [vmem:[#allocation5 + $0x26c] sm:$0xf0]  ;;  %v3569_v23 = vld [vmem:[#allocation5 + $0x70] sm:$0xf0]  ;;  %v3568_v26 = vor.u32 %v5197_v18, %v3567_v17  ;;  %v3705_v9 = vld [vmem:[#allocation5 + $0x178] sm:$0xf0]  ;;  %v3960_v13 = vor.u32 %v5294_v7, %v3959_v5 }
  0x66   :  { %1028 = vmatpush.bf16.msra.mxu0 %v3728_v28  ;;  %1056 = vmatpush.bf16.msra.mxu2 %v3732_v30  ;;  %v5257_v24 = vld [vmem:[#allocation5 + $0x254] sm:$0xf]  ;;  %v3535_v27 = vld [vmem:[#allocation5 + $0x10] sm:$0xf]  ;;  %v3572_v30 = vor.u32 %v5193_v22, %v3569_v23  ;;  %v5290_v10 = vld [vmem:[#allocation5 + $0x35c] sm:$0xf] }
  0x67   :  { %v3825_v25 = vld [vmem:[#allocation5 + $0x270] sm:$0xf0]  ;;  %v5189_v28 = vld [vmem:[#allocation5 + $0x2c] sm:$0xf0]  ;;  %v3961_v11 = vld [vmem:[#allocation5 + $0x378] sm:$0xf0] }
  0x68   :  { %1042 = vmatpush.bf16.msra.mxu1 %v3984_v29  ;;  %1070 = vmatpush.bf16.msra.mxu3 %v3988_v34  ;;  %v3824_v29 = vor.u32 %v5261_v21, %v3823_v19  ;;  %v3791_v31 = vld [vmem:[#allocation5 + $0x210] sm:$0xf]  ;;  %v5185_v33 = vld [vmem:[#allocation5 + $0x14] sm:$0xf]  ;;  %v3828_v34 = vor.u32 %v5257_v24, %v3825_v25  ;;  %v3927_v17 = vld [vmem:[#allocation5 + $0x318] sm:$0xf]  ;;  %v3964_v18 = vor.u32 %v5290_v10, %v3961_v11 }
  0x69   :  { %v5253_v32 = vld [vmem:[#allocation5 + $0x22c] sm:$0xf0]  ;;  %v3537_v35 = vld [vmem:[#allocation5 + $0x30] sm:$0xf0]  ;;  %v5286_v19 = vld [vmem:[#allocation5 + $0x334] sm:$0xf0] }
  0x6a   :  { %1029 = vmatpush.bf16.msra.mxu0 %v3696_v40  ;;  %1057 = vmatpush.bf16.msra.mxu2 %v3700_v42  ;;  %v5249_v36 = vld [vmem:[#allocation5 + $0x214] sm:$0xf]  ;;  %v4023_v40 = vld [vmem:[#allocation5 + $0x3d8] sm:$0xf]  ;;  %v3792_v45 = vor.u32 %v5253_v32, %v3791_v31  ;;  %v3673_v21 = vld [vmem:[#allocation5 + $0x138] sm:$0xf0]  ;;  %v3928_v25 = vor.u32 %v5286_v19, %v3927_v17 }
  0x6b   :  { %v3793_v37 = vld [vmem:[#allocation5 + $0x230] sm:$0xf0]  ;;  %v5310_v42 = vld [vmem:[#allocation5 + $0x3f4] sm:$0xf0]  ;;  %v5282_v22 = vld [vmem:[#allocation5 + $0x31c] sm:$0xf] }
  0x6c   :  { %1043 = vmatpush.bf16.msra.mxu1 %v3952_v41  ;;  %1071 = vmatpush.bf16.msra.mxu3 %v3956_v46  ;;  %v3536_v41 = vor.u32 %v5189_v28, %v3535_v27  ;;  %v3540_v46 = vor.u32 %v5185_v33, %v3537_v35  ;;  %v3796_v49 = vor.u32 %v5249_v36, %v3793_v37  ;;  %v3929_v23 = vld [vmem:[#allocation5 + $0x338] sm:$0xf0]  ;;  %v3639_v27 = vld [vmem:[#allocation5 + $0xd8] sm:$0xf]  ;;  %v4143_v10 = vld [vmem:[#allocation8 + $0xe0] sm:$0xf] }
  0x6d   :  { %v4024_v51 = vor.u32 %v5310_v42, %v4023_v40  ;;  %v5214_v28 = vld [vmem:[#allocation5 + $0xf4] sm:$0xf0]  ;;  %v5210_v32 = vld [vmem:[#allocation5 + $0xdc] sm:$0xf]  ;;  %v4127_v19 = vld [vmem:[#allocation8 + $0xc0] sm:$0xf] }
  0x6e   :  { %1030 = vmatpush.bf16.msra.mxu0 %v3664_v52  ;;  %1058 = vmatpush.bf16.msra.mxu2 %v3668_v54  ;;  %v3772_v52 = vor.u32 %v5242_v43, %v3769_v44  ;;  %v5238_v54 = vld [vmem:[#allocation5 + $0x1b4] sm:$0xf0]  ;;  %v3641_v33 = vld [vmem:[#allocation5 + $0xf8] sm:$0xf0]  ;;  %v3640_v36 = vor.u32 %v5214_v28, %v3639_v27  ;;  %v4239_v28 = vld [vmem:[#allocation8 + $0x1a0] sm:$0xf] }
  0x6f   :  { %v5278_v31 = vld [vmem:[#allocation5 + $0x2f4] sm:$0xf0]  ;;  %v3897_v35 = vld [vmem:[#allocation5 + $0x2f8] sm:$0xf0]  ;;  %v3644_v38 = vor.u32 %v5210_v32, %v3641_v33 }
  0x70   :  { %1044 = vmatpush.bf16.msra.mxu1 %v3920_v53  ;;  %1072 = vmatpush.bf16.msra.mxu3 %v3924_v59  ;;  %v3735_v53 = vld [vmem:[#allocation5 + $0x198] sm:$0xf]  ;;  %v5234_v59 = vld [vmem:[#allocation5 + $0x19c] sm:$0xf] }
  0x71   :  { %v3736_v0 = vor.u32 %v5238_v54, %v3735_v53  ;;  %v3607_v39 = vld [vmem:[#allocation5 + $0x98] sm:$0xf]  ;;  %v5202_v44 = vld [vmem:[#allocation5 + $0x9c] sm:$0xf] }
  0x72   :  { %1031 = vmatpush.bf16.msra.mxu0 %v3632_v2  ;;  %1059 = vmatpush.bf16.msra.mxu2 %v3636_v4  ;;  %v3740_v2 = vor.u32 %v5234_v59, %v3737_v60  ;;  %v5230_v4 = vld [vmem:[#allocation5 + $0x174] sm:$0xf0]  ;;  %v3865_v47 = vld [vmem:[#allocation5 + $0x2b8] sm:$0xf0] }
  0x73   :  { %v5206_v40 = vld [vmem:[#allocation5 + $0xb4] sm:$0xf0]  ;;  %v3577_v58 = vld [vmem:[#allocation5 + $0x78] sm:$0xf0] }
  0x74   :  { %1045 = vmatpush.bf16.msra.mxu1 %v3888_v3  ;;  %1073 = vmatpush.bf16.msra.mxu3 %v3892_v8  ;;  %v3703_v3 = vld [vmem:[#allocation5 + $0x158] sm:$0xf]  ;;  %v5226_v8 = vld [vmem:[#allocation5 + $0x15c] sm:$0xf]  ;;  %v3608_v48 = vor.u32 %v5206_v40, %v3607_v39  ;;  %v4207_v40 = vld [vmem:[#allocation8 + $0x160] sm:$0xf] }
  0x75   :  { %v3704_v12 = vor.u32 %v5230_v4, %v3703_v3  ;;  %v5270_v43 = vld [vmem:[#allocation5 + $0x2b4] sm:$0xf0]  ;;  %v5258_v59 = vld [vmem:[#allocation5 + $0x25c] sm:$0xf] }
  0x76   :  { %1032 = vmatpush.bf16.msra.mxu0 %v3600_v14  ;;  %1060 = vmatpush.bf16.msra.mxu2 %v3604_v16  ;;  %v3708_v14 = vor.u32 %v5226_v8, %v3705_v9  ;;  %v5222_v16 = vld [vmem:[#allocation5 + $0x134] sm:$0xf0]  ;;  %v3833_v60 = vld [vmem:[#allocation5 + $0x278] sm:$0xf0] }
  0x77   :  { %v3831_v53 = vld [vmem:[#allocation5 + $0x258] sm:$0xf]  ;;  %v3836_v5 = vor.u32 %v5258_v59, %v3833_v60  ;;  %v3545_v7 = vld [vmem:[#allocation5 + $0x38] sm:$0xf0]  ;;  %v4175_v59 = vld [vmem:[#allocation8 + $0x120] sm:$0xf] }
  0x78   :  { %1046 = vmatpush.bf16.msra.mxu1 %v3856_v15  ;;  %1074 = vmatpush.bf16.msra.mxu3 %v3860_v20  ;;  %v3671_v15 = vld [vmem:[#allocation5 + $0x118] sm:$0xf]  ;;  %v5218_v20 = vld [vmem:[#allocation5 + $0x11c] sm:$0xf] }
  0x79   :  { %v3672_v24 = vor.u32 %v5222_v16, %v3671_v15  ;;  %v5262_v55 = vld [vmem:[#allocation5 + $0x274] sm:$0xf0]  ;;  %v5250_v8 = vld [vmem:[#allocation5 + $0x21c] sm:$0xf] }
  0x7a   :  { %1033 = vmatpush.bf16.msra.mxu0 %v3568_v26  ;;  %1061 = vmatpush.bf16.msra.mxu2 %v3572_v30  ;;  %v3676_v26 = vor.u32 %v5218_v20, %v3673_v21  ;;  %v3932_v30 = vor.u32 %v5282_v22, %v3929_v23  ;;  %v3543_v62 = vld [vmem:[#allocation5 + $0x18] sm:$0xf]  ;;  %v3801_v9 = vld [vmem:[#allocation5 + $0x238] sm:$0xf0]  ;;  %v4255_v22 = vld [vmem:[#allocation8 + $0x1c0] sm:$0xf] }
  0x7b   :  { %v3799_v3 = vld [vmem:[#allocation5 + $0x218] sm:$0xf]  ;;  %v3804_v17 = vor.u32 %v5250_v8, %v3801_v9 }
  0x7c   :  { %1047 = vmatpush.bf16.msra.mxu1 %v3824_v29  ;;  %1075 = vmatpush.bf16.msra.mxu3 %v3828_v34  ;;  %v3895_v29 = vld [vmem:[#allocation5 + $0x2d8] sm:$0xf]  ;;  %v5274_v34 = vld [vmem:[#allocation5 + $0x2dc] sm:$0xf] }
  0x7d   :  { %v3896_v37 = vor.u32 %v5278_v31, %v3895_v29  ;;  %v3900_v42 = vor.u32 %v5274_v34, %v3897_v35  ;;  %v5254_v4 = vld [vmem:[#allocation5 + $0x234] sm:$0xf0]  ;;  %v4095_v31 = vld [vmem:[#allocation8 + $0x80] sm:$0xf] }
  0x7e   :  { %1034 = vmatpush.bf16.msra.mxu0 %v3536_v41  ;;  %1062 = vmatpush.bf16.msra.mxu2 %v3540_v46  ;;  %v3863_v41 = vld [vmem:[#allocation5 + $0x298] sm:$0xf]  ;;  %v5266_v46 = vld [vmem:[#allocation5 + $0x29c] sm:$0xf]  ;;  %v3800_v15 = vor.u32 %v5254_v4, %v3799_v3  ;;  %v4223_v34 = vld [vmem:[#allocation8 + $0x180] sm:$0xf] }
  0x7f   :  { %v3868_v54 = vor.u32 %v5266_v46, %v3865_v47  ;;  %v5341_v11 = vld [vmem:[#allocation8 + $0xec] sm:$0xf0]  ;;  %v4191_v47 = vld [vmem:[#allocation8 + $0x140] sm:$0xf] }
  0x80   :  { %1048 = vmatpush.bf16.msra.mxu1 %v3792_v45  ;;  %1076 = vmatpush.bf16.msra.mxu3 %v3796_v49  ;;  %v3609_v45 = vld [vmem:[#allocation5 + $0xb8] sm:$0xf0]  ;;  %v3864_v49 = vor.u32 %v5270_v43, %v3863_v41  ;;  %v5337_v20 = vld [vmem:[#allocation8 + $0xcc] sm:$0xf0]  ;;  %v4399_v41 = vld [vmem:[#allocation8 + $0x2e0] sm:$0xf] }
  0x81   :  { %1035 = vmatmul.bf16.vlgmr.msra.gmra.mxu0 %v5869_v56  ;;  %1063 = vmatmul.bf16.vlgmr.msra.gmra.mxu2 %v5869_v56  ;;  %v5369_v23 = vld [vmem:[#allocation8 + $0x1cc] sm:$0xf0] }
  0x82   :  { %1083 = vmatpush.bf16.msrb.mxu0 %v3768_v50  ;;  %1111 = vmatpush.bf16.msrb.mxu2 %v3772_v52  ;;  %v3612_v50 = vor.u32 %v5202_v44, %v3609_v45  ;;  %v5198_v52 = vld [vmem:[#allocation5 + $0x74] sm:$0xf0]  ;;  %v4256_v27 = vor.u32 %v5369_v23, %v4255_v22  ;;  %v4063_v44 = vld [vmem:[#allocation8 + $0x40] sm:$0xf] }
  0x83   :  { %1049 = vmatmul.bf16.vlgmr.msra.gmra.mxu1 %v5871_v63  ;;  %1077 = vmatmul.bf16.vlgmr.msra.gmra.mxu3 %v5871_v63  ;;  %v5365_v29 = vld [vmem:[#allocation8 + $0x1ac] sm:$0xf0] }
  0x84   :  { %1097 = vmatpush.bf16.msrb.mxu1 %v4024_v51  ;;  %1125 = vmatpush.bf16.msrb.mxu3 %v4028_v57  ;;  %v3575_v51 = vld [vmem:[#allocation5 + $0x58] sm:$0xf]  ;;  %v5194_v57 = vld [vmem:[#allocation5 + $0x5c] sm:$0xf]  ;;  %v4240_v33 = vor.u32 %v5365_v29, %v4239_v28 }
  0x85   :  { %v3576_v61 = vor.u32 %v5198_v52, %v3575_v51  ;;  %v5329_v32 = vld [vmem:[#allocation8 + $0x8c] sm:$0xf0]  ;;  %v4527_v52 = vld [vmem:[#allocation8 + $0x3e0] sm:$0xf] }
  0x86   :  { %1084 = vmatpush.bf16.msrb.mxu0 %v3736_v0  ;;  %1112 = vmatpush.bf16.msrb.mxu2 %v3740_v2  ;;  %v3832_v0 = vor.u32 %v5262_v55, %v3831_v53  ;;  %v5190_v2 = vld [vmem:[#allocation5 + $0x34] sm:$0xf0]  ;;  %v4047_v53 = vld [vmem:[#allocation8 + $0x20] sm:$0xf] }
  0x87   :  { %v5361_v35 = vld [vmem:[#allocation8 + $0x18c] sm:$0xf0] }
  0x88   :  { %1098 = vmatpush.bf16.msrb.mxu1 %v3992_v1  ;;  %1126 = vmatpush.bf16.msrb.mxu3 %v3996_v6  ;;  %v3580_v1 = vor.u32 %v5194_v57, %v3577_v58  ;;  %v5186_v6 = vld [vmem:[#allocation5 + $0x1c] sm:$0xf]  ;;  %v4224_v39 = vor.u32 %v5361_v35, %v4223_v34  ;;  %v5321_v45 = vld [vmem:[#allocation8 + $0x4c] sm:$0xf0]  ;;  %v4607_v34 = vld [vmem:[#allocation8 + $0x480] sm:$0xf] }
  0x89   :  { %v3548_v16 = vor.u32 %v5186_v6, %v3545_v7  ;;  %v5401_v51 = vld [vmem:[#allocation8 + $0x2cc] sm:$0xf0]  ;;  %v4367_v6 = vld [vmem:[#allocation8 + $0x2a0] sm:$0xf] }
  0x8a   :  { %1085 = vmatpush.bf16.msrb.mxu0 %v3704_v12  ;;  %1113 = vmatpush.bf16.msrb.mxu2 %v3708_v14  ;;  %v3544_v12 = vor.u32 %v5190_v2, %v3543_v62  ;;  %v5373_v14 = vld [vmem:[#allocation8 + $0x1ec] sm:$0xf0]  ;;  %v4031_v62 = vld [vmem:[#allocation8] sm:$0xf] }
  0x8b   :  { %v5437_v58 = vld [vmem:[#allocation8 + $0x3ec] sm:$0xf0]  ;;  %v4655_v2 = vld [vmem:[#allocation8 + $0x4e0] sm:$0xf] }
  0x8c   :  { %1099 = vmatpush.bf16.msrb.mxu1 %v3960_v13  ;;  %1127 = vmatpush.bf16.msrb.mxu3 %v3964_v18  ;;  %v4271_v13 = vld [vmem:[#allocation8 + $0x1e0] sm:$0xf]  ;;  %v4144_v18 = vor.u32 %v5341_v11, %v4143_v10  ;;  %v5349_v60 = vld [vmem:[#allocation8 + $0x12c] sm:$0xf0] }
  0x8d   :  { %v4272_v21 = vor.u32 %v5373_v14, %v4271_v13  ;;  %v5469_v3 = vld [vmem:[#allocation8 + $0x4ec] sm:$0xf0]  ;;  %v4176_v4 = vor.u32 %v5349_v60, %v4175_v59  ;;  %v4511_v10 = vld [vmem:[#allocation8 + $0x3c0] sm:$0xf] }
  0x8e   :  { %1086 = vmatpush.bf16.msrb.mxu0 %v3672_v24  ;;  %1114 = vmatpush.bf16.msrb.mxu2 %v3676_v26  ;;  %v4128_v24 = vor.u32 %v5337_v20, %v4127_v19  ;;  %v5333_v26 = vld [vmem:[#allocation8 + $0xac] sm:$0xf0] }
  0x8f   :  { %v5397_v7 = vld [vmem:[#allocation8 + $0x2ac] sm:$0xf0] }
  0x90   :  { %1100 = vmatpush.bf16.msrb.mxu1 %v3928_v25  ;;  %1128 = vmatpush.bf16.msrb.mxu3 %v3932_v30  ;;  %v4111_v25 = vld [vmem:[#allocation8 + $0xa0] sm:$0xf]  ;;  %v5345_v8 = vld [vmem:[#allocation8 + $0x10c] sm:$0xf0]  ;;  %v4368_v9 = vor.u32 %v5397_v7, %v4367_v6 }
  0x91   :  { %v4112_v30 = vor.u32 %v5333_v26, %v4111_v25  ;;  %v5433_v11 = vld [vmem:[#allocation8 + $0x3cc] sm:$0xf0]  ;;  %v4303_v6 = vld [vmem:[#allocation8 + $0x220] sm:$0xf] }
  0x92   :  { %1087 = vmatpush.bf16.msrb.mxu0 %v3640_v36  ;;  %1115 = vmatpush.bf16.msrb.mxu2 %v3644_v38  ;;  %v4096_v36 = vor.u32 %v5329_v32, %v4095_v31  ;;  %v5325_v38 = vld [vmem:[#allocation8 + $0x6c] sm:$0xf0]  ;;  %v4512_v14 = vor.u32 %v5433_v11, %v4511_v10  ;;  %v4495_v32 = vld [vmem:[#allocation8 + $0x3a0] sm:$0xf] }
  0x93   :  { %v5501_v13 = vld [vmem:[#allocation8 + $0x5ec] sm:$0xf0] }
  0x94   :  { %1101 = vmatpush.bf16.msrb.mxu1 %v3896_v37  ;;  %1129 = vmatpush.bf16.msrb.mxu3 %v3900_v42  ;;  %v4079_v37 = vld [vmem:[#allocation8 + $0x60] sm:$0xf]  ;;  %v5405_v42 = vld [vmem:[#allocation8 + $0x2ec] sm:$0xf0] }
  0x95   :  { %v4400_v43 = vor.u32 %v5405_v42, %v4399_v41  ;;  %v5465_v19 = vld [vmem:[#allocation8 + $0x4cc] sm:$0xf0] }
  0x96   :  { %1088 = vmatpush.bf16.msrb.mxu0 %v3608_v48  ;;  %1116 = vmatpush.bf16.msrb.mxu2 %v3612_v50  ;;  %v5353_v48 = vld [vmem:[#allocation8 + $0x14c] sm:$0xf0]  ;;  %v4383_v50 = vld [vmem:[#allocation8 + $0x2c0] sm:$0xf] }
  0x97   :  { %v4192_v55 = vor.u32 %v5353_v48, %v4191_v47  ;;  %v4384_v57 = vor.u32 %v5401_v51, %v4383_v50  ;;  %v5393_v22 = vld [vmem:[#allocation8 + $0x28c] sm:$0xf0]  ;;  %v4591_v47 = vld [vmem:[#allocation8 + $0x460] sm:$0xf] }
  0x98   :  { %1102 = vmatpush.bf16.msrb.mxu1 %v3864_v49  ;;  %1130 = vmatpush.bf16.msrb.mxu3 %v3868_v54  ;;  %v4064_v49 = vor.u32 %v5321_v45, %v4063_v44  ;;  %v5317_v54 = vld [vmem:[#allocation8 + $0x2c] sm:$0xf0]  ;;  %v4479_v45 = vld [vmem:[#allocation8 + $0x380] sm:$0xf] }
  0x99   :  { %v5497_v25 = vld [vmem:[#allocation8 + $0x5cc] sm:$0xf0] }
  0x9a   :  { %1089 = vmatpush.bf16.msrb.mxu0 %v3576_v61  ;;  %1117 = vmatpush.bf16.msrb.mxu2 %v3580_v1  ;;  %v4528_v61 = vor.u32 %v5437_v58, %v4527_v52  ;;  %v5313_v1 = vld [vmem:[#allocation8 + $0xc] sm:$0xf0]  ;;  %v4319_v52 = vld [vmem:[#allocation8 + $0x240] sm:$0xf] }
  0x9b   :  { %v5461_v28 = vld [vmem:[#allocation8 + $0x4ac] sm:$0xf0] }
  0x9c   :  { %1103 = vmatpush.bf16.msrb.mxu1 %v3832_v0  ;;  %1131 = vmatpush.bf16.msrb.mxu3 %v3836_v5  ;;  %v4048_v0 = vor.u32 %v5317_v54, %v4047_v53  ;;  %v4159_v5 = vld [vmem:[#allocation8 + $0x100] sm:$0xf]  ;;  %v5453_v50 = vld [vmem:[#allocation8 + $0x46c] sm:$0xf0] }
  0x9d   :  { %v4592_v51 = vor.u32 %v5453_v50, %v4591_v47  ;;  %v5385_v53 = vld [vmem:[#allocation8 + $0x24c] sm:$0xf0]  ;;  %v4735_v54 = vld [vmem:[#allocation8 + $0x580] sm:$0xf] }
  0x9e   :  { %1090 = vmatpush.bf16.msrb.mxu0 %v3544_v12  ;;  %1118 = vmatpush.bf16.msrb.mxu2 %v3548_v16  ;;  %v4783_v12 = vld [vmem:[#allocation8 + $0x5e0] sm:$0xf]  ;;  %v4656_v16 = vor.u32 %v5469_v3, %v4655_v2  ;;  %v5489_v58 = vld [vmem:[#allocation8 + $0x58c] sm:$0xf0] }
  0x9f   :  { %v4784_v20 = vor.u32 %v5501_v13, %v4783_v12  ;;  %v4736_v60 = vor.u32 %v5489_v58, %v4735_v54  ;;  %v4575_v3 = vld [vmem:[#allocation8 + $0x440] sm:$0xf]  ;;  %v5381_v7 = vld [vmem:[#allocation8 + $0x22c] sm:$0xf0] }
  0xa0   :  { %1104 = vmatpush.bf16.msrb.mxu1 %v3800_v15  ;;  %1132 = vmatpush.bf16.msrb.mxu3 %v3804_v17  ;;  %v4032_v15 = vor.u32 %v5313_v1, %v4031_v62  ;;  %v4639_v17 = vld [vmem:[#allocation8 + $0x4c0] sm:$0xf]  ;;  %v5421_v62 = vld [vmem:[#allocation8 + $0x36c] sm:$0xf0]  ;;  %v4304_v11 = vor.u32 %v5381_v7, %v4303_v6  ;;  %v5371_v7 = vld [vmem:[#allocation8 + $0x1e4] sm:$0xf] }
  0xa1   :  { %1091 = vmatmul.bf16.vlgmr.msrb.gmra.mxu0 %v5869_v56  ;;  %1119 = vmatmul.bf16.vlgmr.msrb.gmra.mxu2 %v5869_v56  ;;  %v5357_v56 = vld [vmem:[#allocation8 + $0x16c] sm:$0xf0]  ;;  %v4640_v26 = vor.u32 %v5465_v19, %v4639_v17  ;;  %v4559_v17 = vld [vmem:[#allocation8 + $0x420] sm:$0xf] }
  0xa2   :  { %2709 = vmatpush.bf16.msra.mxu0 %v4144_v18  ;;  %v4208_v46 = vor.u32 %v5357_v56, %v4207_v40  ;;  %2737 = vmatpush.bf16.msra.mxu2 %v4400_v43  ;;  %v4160_v18 = vor.u32 %v5345_v8, %v4159_v5  ;;  %v5389_v40 = vld [vmem:[#allocation8 + $0x26c] sm:$0xf0]  ;;  %v4751_v56 = vld [vmem:[#allocation8 + $0x5a0] sm:$0xf] }
  0xa3   :  { %1105 = vmatmul.bf16.vlgmr.msrb.gmra.mxu1 %v5871_v63  ;;  %1133 = vmatmul.bf16.vlgmr.msrb.gmra.mxu3 %v5871_v63  ;;  %v4080_v63 = vor.u32 %v5325_v38, %v4079_v37  ;;  %v5457_v37 = vld [vmem:[#allocation8 + $0x48c] sm:$0xf0]  ;;  %v4719_v8 = vld [vmem:[#allocation8 + $0x560] sm:$0xf] }
  0xa4   :  { %2723 = vmatpush.bf16.msra.mxu1 %v4272_v21  ;;  %2751 = vmatpush.bf16.msra.mxu3 %v4528_v61  ;;  %v4351_v21 = vld [vmem:[#allocation8 + $0x280] sm:$0xf]  ;;  %v4608_v38 = vor.u32 %v5457_v37, %v4607_v34  ;;  %v5485_v12 = vld [vmem:[#allocation8 + $0x56c] sm:$0xf0] }
  0xa5   :  { %v4352_v23 = vor.u32 %v5393_v22, %v4351_v21  ;;  %v4463_v61 = vld [vmem:[#allocation8 + $0x360] sm:$0xf]  ;;  %v5445_v21 = vld [vmem:[#allocation8 + $0x42c] sm:$0xf0] }
  0xa6   :  { %2710 = vmatpush.bf16.msra.mxu0 %v4128_v24  ;;  %2738 = vmatpush.bf16.msra.mxu2 %v4384_v57  ;;  %v4767_v24 = vld [vmem:[#allocation8 + $0x5c0] sm:$0xf]  ;;  %v4320_v57 = vor.u32 %v5385_v53, %v4319_v52  ;;  %v4464_v2 = vor.u32 %v5421_v62, %v4463_v61  ;;  %v5477_v50 = vld [vmem:[#allocation8 + $0x52c] sm:$0xf0]  ;;  %v4129_v61 = vld [vmem:[#allocation8 + $0xd0] sm:$0xf0] }
  0xa7   :  { %v4768_v29 = vor.u32 %v5497_v25, %v4767_v24  ;;  %v4287_v24 = vld [vmem:[#allocation8 + $0x200] sm:$0xf]  ;;  %v5377_v25 = vld [vmem:[#allocation8 + $0x20c] sm:$0xf0] }
  0xa8   :  { %2724 = vmatpush.bf16.msra.mxu1 %v4256_v27  ;;  %2752 = vmatpush.bf16.msra.mxu3 %v4512_v14  ;;  %v4623_v27 = vld [vmem:[#allocation8 + $0x4a0] sm:$0xf]  ;;  %v4720_v14 = vor.u32 %v5485_v12, %v4719_v8  ;;  %v5409_v53 = vld [vmem:[#allocation8 + $0x30c] sm:$0xf0]  ;;  %v4273_v8 = vld [vmem:[#allocation8 + $0x1f0] sm:$0xf0] }
  0xa9   :  { %v4624_v31 = vor.u32 %v5461_v28, %v4623_v27  ;;  %v4288_v28 = vor.u32 %v5377_v25, %v4287_v24  ;;  %v4431_v34 = vld [vmem:[#allocation8 + $0x320] sm:$0xf]  ;;  %v5529_v58 = vld [vmem:[#allocation8 + $0x6cc] sm:$0xf0]  ;;  %v5331_v12 = vld [vmem:[#allocation8 + $0xa4] sm:$0xf] }
  0xaa   :  { %2711 = vmatpush.bf16.msra.mxu0 %v4112_v30  ;;  %2739 = vmatpush.bf16.msra.mxu2 %v4368_v9  ;;  %v5889_v30 = vld [vmem:[#allocation7] sm:$0xff]  ;;  %v4415_v52 = vld [vmem:[#allocation8 + $0x300] sm:$0xf]  ;;  %v5327_v24 = vld [vmem:[#allocation8 + $0x84] sm:$0xf] }
  0xab   :  { %v249_v35 = vperm.slane %v5889_v30, 0  ;;  %v4671_v62 = vld [vmem:[#allocation8 + $0x500] sm:$0xf]  ;;  %v251_v25 = vperm.slane %v5889_v30, 2 }
  0xac   :  { %2725 = vmatpush.bf16.msra.mxu1 %v4240_v33  ;;  %v5429_v33 = vld [vmem:[#allocation8 + $0x3ac] sm:$0xf0] }
  0xae   :  { %2712 = vmatpush.bf16.msra.mxu0 %v4096_v36  ;;  %2740 = vmatpush.bf16.msra.mxu2 %v4352_v23  ;;  %v4496_v36 = vor.u32 %v5429_v33, %v4495_v32  ;;  %v4560_v23 = vor.u32 %v5445_v21, %v4559_v17  ;;  %v5367_v17 = vld [vmem:[#allocation8 + $0x1c4] sm:$0xf] }
  0xb0   :  { %2726 = vmatpush.bf16.msra.mxu1 %v4224_v39  ;;  %v4335_v39 = vld [vmem:[#allocation8 + $0x260] sm:$0xf]  ;;  %2753 = vmatpush.bf16.msra.mxu3 %v4496_v36 }
  0xb1   :  { %v4336_v42 = vor.u32 %v5389_v40, %v4335_v39  ;;  %v4543_v39 = vld [vmem:[#allocation8 + $0x400] sm:$0xf]  ;;  %v5441_v40 = vld [vmem:[#allocation8 + $0x40c] sm:$0xf0] }
  0xb2   :  { %2713 = vmatpush.bf16.msra.mxu0 %v4080_v63  ;;  %v5493_v63 = vld [vmem:[#allocation8 + $0x5ac] sm:$0xf0] }
  0xb3   :  { %v4752_v44 = vor.u32 %v5493_v63, %v4751_v56  ;;  %2741 = vmatpush.bf16.msra.mxu2 %v4336_v42  ;;  %v4911_v56 = vld [vmem:[#allocation8 + $0x6e0] sm:$0xf]  ;;  %v4544_v42 = vor.u32 %v5441_v40, %v4543_v39  ;;  %v5533_v63 = vld [vmem:[#allocation8 + $0x6ec] sm:$0xf0]  ;;  %v5323_v40 = vld [vmem:[#allocation8 + $0x64] sm:$0xf] }
  0xb4   :  { %2727 = vmatpush.bf16.msra.mxu1 %v4208_v46  ;;  %v5425_v46 = vld [vmem:[#allocation8 + $0x38c] sm:$0xf0]  ;;  %v4912_v47 = vor.u32 %v5533_v63, %v4911_v56  ;;  %v4081_v63 = vld [vmem:[#allocation8 + $0x70] sm:$0xf0] }
  0xb5   :  { %v5517_v39 = vld [vmem:[#allocation8 + $0x66c] sm:$0xf0] }
  0xb6   :  { %2714 = vmatpush.bf16.msra.mxu0 %v4064_v49  ;;  %v4480_v49 = vor.u32 %v5425_v46, %v4479_v45 }
  0xb7   :  { %2742 = vmatpush.bf16.msra.mxu2 %v4320_v57  ;;  %v4895_v57 = vld [vmem:[#allocation8 + $0x6c0] sm:$0xf] }
  0xb8   :  { %2728 = vmatpush.bf16.msra.mxu1 %v4192_v55  ;;  %v250_v55 = vperm.slane %v5889_v30, 1  ;;  %2754 = vmatpush.bf16.msra.mxu3 %v4480_v49  ;;  %v4687_v49 = vld [vmem:[#allocation8 + $0x520] sm:$0xf] }
  0xba   :  { %2715 = vmatpush.bf16.msra.mxu0 %v4048_v0 }
  0xbb   :  { %2743 = vmatpush.bf16.msra.mxu2 %v4304_v11  ;;  %v5525_v11 = vld [vmem:[#allocation8 + $0x6ac] sm:$0xf0] }
  0xbc   :  { %2729 = vmatpush.bf16.msra.mxu1 %v4176_v4  ;;  %v5449_v4 = vld [vmem:[#allocation8 + $0x44c] sm:$0xf0]  ;;  %2755 = vmatpush.bf16.msra.mxu3 %v4464_v2 }
  0xbd   :  { %v4576_v5 = vor.u32 %v5449_v4, %v4575_v3  ;;  %v5473_v2 = vld [vmem:[#allocation8 + $0x50c] sm:$0xf0]  ;;  %v5039_v3 = vld [vmem:[#allocation8 + $0x7e0] sm:$0xf] }
  0xbe   :  { %2716 = vmatpush.bf16.msra.mxu0 %v4032_v15  ;;  %v924_v41 = vpop.f32.mrf.mxu0  ;;  %v4447_v15 = vld [vmem:[#allocation8 + $0x340] sm:$0xf]  ;;  %v5565_v4 = vld [vmem:[#allocation8 + $0x7ec] sm:$0xf0] }
  0xbf   :  { %v925_v48 = vadd.f32 %v924_v41, %v249_v35  ;;  %2744 = vmatpush.bf16.msra.mxu2 %v4288_v28  ;;  %v5040_v6 = vor.u32 %v5565_v4, %v5039_v3  ;;  %v4209_v4 = vld [vmem:[#allocation8 + $0x170] sm:$0xf0] }
  0xc0   :  { %2730 = vmatpush.bf16.msra.mxu1 %v4160_v18  ;;  %v938_v43 = vpop.f32.mrf.mxu1 }
  0xc1   :  { %v939_v0 = vadd.f32 %v938_v43, %v925_v48  ;;  %v5339_v43 = vld [vmem:[#allocation8 + $0xe4] sm:$0xf] }
  0xc2   :  { %2765 = vmatpush.bf16.msrb.mxu0 %v4656_v16  ;;  %v5417_v16 = vld [vmem:[#allocation8 + $0x34c] sm:$0xf0] }
  0xc3   :  { %v1139_v18 = vmax.f32 %v939_v0, 0.0  ;;  %2793 = vmatpush.bf16.msrb.mxu2 %v4912_v47  ;;  %v5359_v47 = vld [vmem:[#allocation8 + $0x184] sm:$0xf] }
  0xc4   :  { %2779 = vmatpush.bf16.msrb.mxu1 %v4784_v20  ;;  %v952_v59 = vpop.f32.mrf.mxu2  ;;  %v4448_v20 = vor.u32 %v5417_v16, %v4447_v15  ;;  %v5023_v15 = vld [vmem:[#allocation8 + $0x7c0] sm:$0xf]  ;;  %v5561_v16 = vld [vmem:[#allocation8 + $0x7cc] sm:$0xf0] }
  0xc5   :  { %v953_v9 = vadd.f32 %v952_v59, %v250_v55  ;;  %v4896_v59 = vor.u32 %v5529_v58, %v4895_v57  ;;  %v4065_v57 = vld [vmem:[#allocation8 + $0x50] sm:$0xf0] }
  0xc6   :  { %2766 = vmatpush.bf16.msrb.mxu0 %v4640_v26  ;;  %v966_v1 = vpop.f32.mrf.mxu3  ;;  %v926_v10 = vpop.f32.mrf.mxu0  ;;  %v4703_v26 = vld [vmem:[#allocation8 + $0x540] sm:$0xf]  ;;  %2756 = vmatpush.bf16.msra.mxu3 %v4448_v20  ;;  %v4257_v20 = vld [vmem:[#allocation8 + $0x1d0] sm:$0xf0] }
  0xc7   :  { %v927_v13 = vadd.f32 %v926_v10, %v249_v35  ;;  %v967_v27 = vadd.f32 %v966_v1, %v953_v9  ;;  %v5413_v35 = vld [vmem:[#allocation8 + $0x32c] sm:$0xf0]  ;;  %v4879_v9 = vld [vmem:[#allocation8 + $0x6a0] sm:$0xf]  ;;  %2794 = vmatpush.bf16.msrb.mxu2 %v4896_v59  ;;  %v4276_v10 = vor.u32 %v5371_v7, %v4273_v8  ;;  %v4260_v21 = vor.u32 %v5367_v17, %v4257_v20 }
  0xc8   :  { %2780 = vmatpush.bf16.msrb.mxu1 %v4768_v29  ;;  %v940_v19 = vpop.f32.mrf.mxu1  ;;  %v5481_v29 = vld [vmem:[#allocation8 + $0x54c] sm:$0xf0]  ;;  %v4815_v8 = vld [vmem:[#allocation8 + $0x620] sm:$0xf] }
  0xc9   :  { %v941_v22 = vadd.f32 %v940_v19, %v927_v13  ;;  %v4704_v33 = vor.u32 %v5481_v29, %v4703_v26  ;;  %v1140_v45 = vmax.f32 %v967_v27, 0.0  ;;  %v4113_v13 = vld [vmem:[#allocation8 + $0xb0] sm:$0xf0]  ;;  %v5024_v19 = vor.u32 %v5561_v16, %v5023_v15  ;;  %v5007_v29 = vld [vmem:[#allocation8 + $0x7a0] sm:$0xf] }
  0xca   :  { %2767 = vmatpush.bf16.msrb.mxu0 %v4624_v31  ;;  %v4097_v27 = vld [vmem:[#allocation8 + $0x90] sm:$0xf0]  ;;  %v4959_v17 = vld [vmem:[#allocation8 + $0x740] sm:$0xf] }
  0xcb   :  { %v1147_v31 = vmax.f32 %v941_v22, 0.0  ;;  %v4863_v22 = vld [vmem:[#allocation8 + $0x680] sm:$0xf]  ;;  %v4100_v28 = vor.u32 %v5327_v24, %v4097_v27 }
  0xcc   :  { %2781 = vmatpush.bf16.msrb.mxu1 %v4752_v44  ;;  %v954_v32 = vpop.f32.mrf.mxu2  ;;  %v4145_v44 = vld [vmem:[#allocation8 + $0xf0] sm:$0xf0]  ;;  %v4799_v24 = vld [vmem:[#allocation8 + $0x600] sm:$0xf] }
  0xcd   :  { %v955_v36 = vadd.f32 %v954_v32, %v250_v55  ;;  %v5893_v41 = vpack.c.bf16 %v1147_v31, %v1139_v18  ;;  %v4148_v48 = vor.u32 %v5339_v43, %v4145_v44  ;;  %v4416_v55 = vor.u32 %v5409_v53, %v4415_v52  ;;  %v5557_v31 = vld [vmem:[#allocation8 + $0x7ac] sm:$0xf0]  ;;  %v5363_v32 = vld [vmem:[#allocation8 + $0x1a4] sm:$0xf]  ;;  %v4991_v44 = vld [vmem:[#allocation8 + $0x780] sm:$0xf] }
  0xce   :  { %2768 = vmatpush.bf16.msrb.mxu0 %v4608_v38  ;;  %v968_v37 = vpop.f32.mrf.mxu3  ;;  %v4432_v38 = vor.u32 %v5413_v35, %v4431_v34  ;;  %v4116_v18 = vor.u32 %v5331_v12, %v4113_v13  ;;  %v5008_v34 = vor.u32 %v5557_v31, %v5007_v29  ;;  %v4241_v35 = vld [vmem:[#allocation8 + $0x1b0] sm:$0xf0]  ;;  %v4084_v43 = vor.u32 %v5323_v40, %v4081_v63  ;;  %v5403_v31 = vld [vmem:[#allocation8 + $0x2e4] sm:$0xf]  ;;  %v5541_v40 = vld [vmem:[#allocation8 + $0x72c] sm:$0xf0] }
  0xcf   :  { %v969_v46 = vadd.f32 %v968_v37, %v955_v36  ;;  %2717 = vmatmul.bf16.vlgmr.msra.gmra.mxu0 %v5893_v41  ;;  %v4244_v37 = vor.u32 %v5363_v32, %v4241_v35  ;;  %v252_v53 = vperm.slane %v5889_v30, 3  ;;  %v4033_v29 = vld [vmem:[#allocation8 + $0x10] sm:$0xf0] }
  0xd0   :  { %2782 = vmatpush.bf16.msrb.mxu1 %v4736_v60  ;;  %2757 = vmatpush.bf16.msra.mxu3 %v4432_v38  ;;  %v5335_v60 = vld [vmem:[#allocation8 + $0xc4] sm:$0xf]  ;;  %v4847_v38 = vld [vmem:[#allocation8 + $0x660] sm:$0xf]  ;;  %v4401_v35 = vld [vmem:[#allocation8 + $0x2f0] sm:$0xf0] }
  0xd1   :  { %v1148_v54 = vmax.f32 %v969_v46, 0.0  ;;  %v4132_v1 = vor.u32 %v5335_v60, %v4129_v61  ;;  %v4975_v60 = vld [vmem:[#allocation8 + $0x760] sm:$0xf]  ;;  %v5549_v61 = vld [vmem:[#allocation8 + $0x76c] sm:$0xf0] }
  0xd2   :  { %2769 = vmatpush.bf16.msrb.mxu0 %v4592_v51  ;;  %v4688_v51 = vor.u32 %v5477_v50, %v4687_v49  ;;  %v4831_v50 = vld [vmem:[#allocation8 + $0x640] sm:$0xf]  ;;  %v4976_v3 = vor.u32 %v5549_v61, %v4975_v60  ;;  %v4177_v63 = vld [vmem:[#allocation8 + $0x130] sm:$0xf0]  ;;  %v5395_v61 = vld [vmem:[#allocation8 + $0x2a4] sm:$0xf] }
  0xd3   :  { %v5896_v0 = vpack.c.bf16 %v1148_v54, %v1140_v45  ;;  %v5553_v45 = vld [vmem:[#allocation8 + $0x78c] sm:$0xf0] }
  0xd4   :  { %2783 = vmatpush.bf16.msrb.mxu1 %v4720_v14  ;;  %2758 = vmatpush.bf16.msra.mxu3 %v4416_v55  ;;  %v4880_v14 = vor.u32 %v5525_v11, %v4879_v9  ;;  %v4992_v46 = vor.u32 %v5553_v45, %v4991_v44  ;;  %v5319_v55 = vld [vmem:[#allocation8 + $0x44] sm:$0xf]  ;;  %v5509_v9 = vld [vmem:[#allocation8 + $0x62c] sm:$0xf0] }
  0xd5   :  { %2731 = vmatmul.bf16.vlgmr.msra.gmra.mxu1 %v5896_v0  ;;  %v4068_v59 = vor.u32 %v5319_v55, %v4065_v57  ;;  %v4816_v13 = vor.u32 %v5509_v9, %v4815_v8  ;;  %v5435_v57 = vld [vmem:[#allocation8 + $0x3e4] sm:$0xf]  ;;  %v4497_v9 = vld [vmem:[#allocation8 + $0x3b0] sm:$0xf0] }
  0xd6   :  { %2770 = vmatpush.bf16.msrb.mxu0 %v4576_v5  ;;  %v4672_v5 = vor.u32 %v5473_v2, %v4671_v62  ;;  %2795 = vmatpush.bf16.msrb.mxu2 %v4880_v14  ;;  %v5355_v62 = vld [vmem:[#allocation8 + $0x164] sm:$0xf]  ;;  %v4049_v14 = vld [vmem:[#allocation8 + $0x30] sm:$0xf0] }
  0xd7   :  { %v4212_v7 = vor.u32 %v5355_v62, %v4209_v4  ;;  %v4369_v62 = vld [vmem:[#allocation8 + $0x2b0] sm:$0xf0]  ;;  %v5427_v8 = vld [vmem:[#allocation8 + $0x3a4] sm:$0xf] }
  0xd8   :  { %2784 = vmatpush.bf16.msrb.mxu1 %v4704_v33  ;;  %2807 = vmatpush.bf16.msrb.mxu3 %v5040_v6 }
  0xda   :  { %2771 = vmatpush.bf16.msrb.mxu0 %v4560_v23  ;;  %v5521_v23 = vld [vmem:[#allocation8 + $0x68c] sm:$0xf0] }
  0xdb   :  { %v4864_v26 = vor.u32 %v5521_v23, %v4863_v22 }
  0xdc   :  { %2785 = vmatpush.bf16.msrb.mxu1 %v4688_v51  ;;  %2808 = vmatpush.bf16.msrb.mxu3 %v5024_v19  ;;  %v5513_v51 = vld [vmem:[#allocation8 + $0x64c] sm:$0xf0]  ;;  %v5351_v19 = vld [vmem:[#allocation8 + $0x144] sm:$0xf] }
  0xdd   :  { %2796 = vmatpush.bf16.msrb.mxu2 %v4864_v26  ;;  %v4832_v54 = vor.u32 %v5513_v51, %v4831_v50  ;;  %v5537_v50 = vld [vmem:[#allocation8 + $0x70c] sm:$0xf0] }
  0xde   :  { %2772 = vmatpush.bf16.msrb.mxu0 %v4544_v42  ;;  %v980_v33 = vpop.f32.mrf.mxu0  ;;  %v4848_v42 = vor.u32 %v5517_v39, %v4847_v38  ;;  %v4404_v38 = vor.u32 %v5403_v31, %v4401_v35  ;;  %v4943_v39 = vld [vmem:[#allocation8 + $0x720] sm:$0xf]  ;;  %v4305_v35 = vld [vmem:[#allocation8 + $0x230] sm:$0xf0] }
  0xdf   :  { %v981_v56 = vadd.f32 %v980_v33, %v251_v25 }
  0xe0   :  { %2786 = vmatpush.bf16.msrb.mxu1 %v4672_v5  ;;  %v994_v36 = vpop.f32.mrf.mxu1  ;;  %2809 = vmatpush.bf16.msrb.mxu3 %v5008_v34 }
  0xe1   :  { %2797 = vmatpush.bf16.msrb.mxu2 %v4848_v42  ;;  %v995_v52 = vadd.f32 %v994_v36, %v981_v56  ;;  %v5347_v56 = vld [vmem:[#allocation8 + $0x124] sm:$0xf]  ;;  %v4944_v42 = vor.u32 %v5541_v40, %v4943_v39 }
  0xe2   :  { %2821 = vmatpush.bf16.msra.mxu0 %v4148_v48  ;;  %v4225_v48 = vld [vmem:[#allocation8 + $0x190] sm:$0xf0]  ;;  %v4180_v45 = vor.u32 %v5347_v56, %v4177_v63  ;;  %v5415_v40 = vld [vmem:[#allocation8 + $0x344] sm:$0xf] }
  0xe3   :  { %v4228_v49 = vor.u32 %v5359_v47, %v4225_v48  ;;  %v1141_v11 = vmax.f32 %v995_v52, 0.0  ;;  %v4385_v47 = vld [vmem:[#allocation8 + $0x2d0] sm:$0xf0]  ;;  %v5343_v52 = vld [vmem:[#allocation8 + $0x104] sm:$0xf] }
  0xe4   :  { %2835 = vmatpush.bf16.msra.mxu1 %v4276_v10  ;;  %2810 = vmatpush.bf16.msrb.mxu3 %v4992_v46  ;;  %v1008_v58 = vpop.f32.mrf.mxu2  ;;  %v5315_v10 = vld [vmem:[#allocation8 + $0x24] sm:$0xf]  ;;  %v4449_v56 = vld [vmem:[#allocation8 + $0x350] sm:$0xf0] }
  0xe5   :  { %2798 = vmatpush.bf16.msrb.mxu2 %v4832_v54  ;;  %v1009_v12 = vadd.f32 %v1008_v58, %v252_v53  ;;  %v4052_v16 = vor.u32 %v5315_v10, %v4049_v14  ;;  %v5399_v46 = vld [vmem:[#allocation8 + $0x2c4] sm:$0xf]  ;;  %v4529_v58 = vld [vmem:[#allocation8 + $0x3f0] sm:$0xf0]  ;;  %v253_v10 = vperm.slane %v5889_v30, 4 }
  0xe6   :  { %2822 = vmatpush.bf16.msra.mxu0 %v4132_v1  ;;  %v982_v1 = vpop.f32.mrf.mxu0  ;;  %v1022_v2 = vpop.f32.mrf.mxu3  ;;  %v4388_v48 = vor.u32 %v5399_v46, %v4385_v47  ;;  %v4532_v60 = vor.u32 %v5435_v57, %v4529_v58  ;;  %v4337_v14 = vld [vmem:[#allocation8 + $0x270] sm:$0xf0]  ;;  %v5375_v46 = vld [vmem:[#allocation8 + $0x204] sm:$0xf] }
  0xe7   :  { %v983_v5 = vadd.f32 %v982_v1, %v251_v25  ;;  %v5505_v25 = vld [vmem:[#allocation8 + $0x60c] sm:$0xf0]  ;;  %v1023_v26 = vadd.f32 %v1022_v2, %v1009_v12  ;;  %v4372_v1 = vor.u32 %v5395_v61, %v4369_v62  ;;  %v5431_v2 = vld [vmem:[#allocation8 + $0x3c4] sm:$0xf]  ;;  %v4500_v12 = vor.u32 %v5427_v8, %v4497_v9  ;;  %v4289_v47 = vld [vmem:[#allocation8 + $0x210] sm:$0xf0] }
  0xe8   :  { %2836 = vmatpush.bf16.msra.mxu1 %v4260_v21  ;;  %v996_v6 = vpop.f32.mrf.mxu1  ;;  %2811 = vmatpush.bf16.msrb.mxu3 %v4976_v3  ;;  %v4193_v21 = vld [vmem:[#allocation8 + $0x150] sm:$0xf0]  ;;  %v4800_v27 = vor.u32 %v5505_v25, %v4799_v24  ;;  %v254_v24 = vperm.slane %v5889_v30, 5  ;;  %v5419_v25 = vld [vmem:[#allocation8 + $0x364] sm:$0xf] }
  0xe9   :  { %v997_v15 = vadd.f32 %v996_v6, %v983_v5  ;;  %2799 = vmatpush.bf16.msrb.mxu2 %v4816_v13  ;;  %v4196_v23 = vor.u32 %v5351_v19, %v4193_v21  ;;  %v4513_v3 = vld [vmem:[#allocation8 + $0x3d0] sm:$0xf0]  ;;  %v5391_v5 = vld [vmem:[#allocation8 + $0x284] sm:$0xf] }
  0xea   :  { %2823 = vmatpush.bf16.msra.mxu0 %v4116_v18  ;;  %v5545_v18 = vld [vmem:[#allocation8 + $0x74c] sm:$0xf0]  ;;  %v4516_v4 = vor.u32 %v5431_v2, %v4513_v3  ;;  %v4353_v6 = vld [vmem:[#allocation8 + $0x290] sm:$0xf0]  ;;  %v5387_v13 = vld [vmem:[#allocation8 + $0x264] sm:$0xf] }
  0xeb   :  { %v4960_v20 = vor.u32 %v5545_v18, %v4959_v17  ;;  %v1149_v22 = vmax.f32 %v997_v15, 0.0  ;;  %v5423_v17 = vld [vmem:[#allocation8 + $0x384] sm:$0xf]  ;;  %v4481_v18 = vld [vmem:[#allocation8 + $0x390] sm:$0xf0] }
  0xec   :  { %2837 = vmatpush.bf16.msra.mxu1 %v4244_v37  ;;  %v1010_v33 = vpop.f32.mrf.mxu2  ;;  %v5383_v21 = vld [vmem:[#allocation8 + $0x244] sm:$0xf]  ;;  %v4433_v58 = vld [vmem:[#allocation8 + $0x330] sm:$0xf0] }
  0xed   :  { %2812 = vmatpush.bf16.msrb.mxu3 %v4960_v20  ;;  %v5901_v32 = vpack.c.bf16 %v1149_v22, %v1141_v11  ;;  %v1011_v36 = vadd.f32 %v1010_v33, %v252_v53  ;;  %2800 = vmatpush.bf16.msrb.mxu2 %v4800_v27  ;;  %v4161_v53 = vld [vmem:[#allocation8 + $0x110] sm:$0xf0]  ;;  %v4484_v20 = vor.u32 %v5423_v17, %v4481_v18  ;;  %v5411_v57 = vld [vmem:[#allocation8 + $0x324] sm:$0xf] }
  0xee   :  { %2824 = vmatpush.bf16.msra.mxu0 %v4100_v28  ;;  %v5311_v28 = vld [vmem:[#allocation8 + $0x4] sm:$0xf]  ;;  %v1024_v37 = vpop.f32.mrf.mxu3  ;;  %v4164_v55 = vor.u32 %v5343_v52, %v4161_v53  ;;  %v4321_v22 = vld [vmem:[#allocation8 + $0x250] sm:$0xf0]  ;;  %v4436_v62 = vor.u32 %v5411_v57, %v4433_v58 }
  0xef   :  { %v4036_v34 = vor.u32 %v5311_v28, %v4033_v29  ;;  %2745 = vmatmul.bf16.vlgmr.msra.gmra.mxu2 %v5901_v32  ;;  %v1025_v44 = vadd.f32 %v1024_v37, %v1011_v36  ;;  %v5463_v52 = vld [vmem:[#allocation8 + $0x4c4] sm:$0xf]  ;;  %v4785_v2 = vld [vmem:[#allocation8 + $0x5f0] sm:$0xf0] }
  0xf0   :  { %2838 = vmatpush.bf16.msra.mxu1 %v4228_v49  ;;  %v4927_v49 = vld [vmem:[#allocation8 + $0x700] sm:$0xf]  ;;  %v5459_v8 = vld [vmem:[#allocation8 + $0x4a4] sm:$0xf]  ;;  %v4625_v9 = vld [vmem:[#allocation8 + $0x4b0] sm:$0xf0] }
  0xf1   :  { %2849 = vmatpush.bf16.msra.mxu2 %v4404_v38  ;;  %v1150_v51 = vmax.f32 %v1025_v44, 0.0  ;;  %2813 = vmatpush.bf16.msrb.mxu3 %v4944_v42  ;;  %v4928_v54 = vor.u32 %v5537_v50, %v4927_v49  ;;  %v4657_v44 = vld [vmem:[#allocation8 + $0x4f0] sm:$0xf0]  ;;  %v4292_v49 = vor.u32 %v5375_v46, %v4289_v47  ;;  %v5455_v17 = vld [vmem:[#allocation8 + $0x484] sm:$0xf] }
  0xf2   :  { %2825 = vmatpush.bf16.msra.mxu0 %v4084_v43  ;;  %v1142_v43 = vmax.f32 %v1023_v26, 0.0  ;;  %v4465_v26 = vld [vmem:[#allocation8 + $0x370] sm:$0xf0]  ;;  %v5531_v57 = vld [vmem:[#allocation8 + $0x6e4] sm:$0xf] }
  0xf3   :  { %v4468_v33 = vor.u32 %v5419_v25, %v4465_v26  ;;  %v4609_v18 = vld [vmem:[#allocation8 + $0x490] sm:$0xf0] }
  0xf4   :  { %2839 = vmatpush.bf16.msra.mxu1 %v4212_v7  ;;  %v4356_v7 = vor.u32 %v5391_v5, %v4353_v6  ;;  %v5407_v6 = vld [vmem:[#allocation8 + $0x304] sm:$0xf] }
  0xf5   :  { %2850 = vmatpush.bf16.msra.mxu2 %v4388_v48  ;;  %2814 = vmatpush.bf16.msrb.mxu3 %v4928_v54 }
  0xf6   :  { %2826 = vmatpush.bf16.msra.mxu0 %v4068_v59  ;;  %v5904_v59 = vpack.c.bf16 %v1150_v51, %v1142_v43  ;;  %v5467_v43 = vld [vmem:[#allocation8 + $0x4e4] sm:$0xf] }
  0xf7   :  { %v4660_v51 = vor.u32 %v5467_v43, %v4657_v44  ;;  %v256_v43 = vperm.slane %v5889_v30, 7 }
  0xf8   :  { %2840 = vmatpush.bf16.msra.mxu1 %v4196_v23  ;;  %2759 = vmatmul.bf16.vlgmr.msra.gmra.mxu3 %v5904_v59  ;;  %v4324_v23 = vor.u32 %v5383_v21, %v4321_v22  ;;  %v5491_v21 = vld [vmem:[#allocation8 + $0x5a4] sm:$0xf]  ;;  %v4753_v22 = vld [vmem:[#allocation8 + $0x5b0] sm:$0xf0] }
  0xf9   :  { %2863 = vmatpush.bf16.msra.mxu3 %v4532_v60  ;;  %2851 = vmatpush.bf16.msra.mxu2 %v4372_v1  ;;  %v5499_v1 = vld [vmem:[#allocation8 + $0x5e4] sm:$0xf]  ;;  %v4756_v26 = vor.u32 %v5491_v21, %v4753_v22  ;;  %v4673_v21 = vld [vmem:[#allocation8 + $0x510] sm:$0xf0] }
  0xfa   :  { %2827 = vmatpush.bf16.msra.mxu0 %v4052_v16  ;;  %v4340_v16 = vor.u32 %v5387_v13, %v4337_v14  ;;  %v4628_v14 = vor.u32 %v5459_v8, %v4625_v9  ;;  %v5527_v9 = vld [vmem:[#allocation8 + $0x6c4] sm:$0xf] }
  0xfb   :  { %v5563_v22 = vld [vmem:[#allocation8 + $0x7e4] sm:$0xf] }
  0xfc   :  { %2841 = vmatpush.bf16.msra.mxu1 %v4180_v45  ;;  %v4452_v45 = vor.u32 %v5415_v40, %v4449_v56  ;;  %v4721_v40 = vld [vmem:[#allocation8 + $0x570] sm:$0xf0]  ;;  %v5443_v56 = vld [vmem:[#allocation8 + $0x424] sm:$0xf] }
  0xfd   :  { %2864 = vmatpush.bf16.msra.mxu3 %v4516_v4  ;;  %2852 = vmatpush.bf16.msra.mxu2 %v4356_v7  ;;  %v4417_v7 = vld [vmem:[#allocation8 + $0x310] sm:$0xf0] }
  0xfe   :  { %2828 = vmatpush.bf16.msra.mxu0 %v4036_v34  ;;  %v1036_v11 = vpop.f32.mrf.mxu0  ;;  %v5379_v34 = vld [vmem:[#allocation8 + $0x224] sm:$0xf] }
  0xff   :  { %v1037_v19 = vadd.f32 %v1036_v11, %v253_v10  ;;  %v4308_v38 = vor.u32 %v5379_v34, %v4305_v35  ;;  %v4420_v11 = vor.u32 %v5407_v6, %v4417_v7  ;;  %v5447_v34 = vld [vmem:[#allocation8 + $0x444] sm:$0xf]  ;;  %v4577_v35 = vld [vmem:[#allocation8 + $0x450] sm:$0xf0] }
 0x100   :  { %2842 = vmatpush.bf16.msra.mxu1 %v4164_v55  ;;  %v1050_v15 = vpop.f32.mrf.mxu1  ;;  %v4641_v55 = vld [vmem:[#allocation8 + $0x4d0] sm:$0xf0] }
 0x101   :  { %2865 = vmatpush.bf16.msra.mxu3 %v4500_v12  ;;  %2853 = vmatpush.bf16.msra.mxu2 %v4340_v16  ;;  %v1051_v27 = vadd.f32 %v1050_v15, %v1037_v19  ;;  %v4644_v5 = vor.u32 %v5463_v52, %v4641_v55  ;;  %v4788_v12 = vor.u32 %v5499_v1, %v4785_v2  ;;  %v5495_v15 = vld [vmem:[#allocation8 + $0x5c4] sm:$0xf]  ;;  %v4769_v16 = vld [vmem:[#allocation8 + $0x5d0] sm:$0xf0] }
 0x102   :  { %v4772_v19 = vor.u32 %v5495_v15, %v4769_v16  ;;  %v4545_v55 = vld [vmem:[#allocation8 + $0x410] sm:$0xf0]  ;;  %v5338_v15 = vld [vmem:[#allocation8 + $0xd4] sm:$0xf0] }
 0x103   :  { %v1143_v42 = vmax.f32 %v1051_v27, 0.0  ;;  %v255_v27 = vperm.slane %v5889_v30, 6  ;;  %v5342_v30 = vld [vmem:[#allocation8 + $0xf4] sm:$0xf0]  ;;  %v4689_v6 = vld [vmem:[#allocation8 + $0x530] sm:$0xf0] }
 0x104   :  { %v1064_v28 = vpop.f32.mrf.mxu2 }
 0x105   :  { %2866 = vmatpush.bf16.msra.mxu3 %v4484_v20  ;;  %2854 = vmatpush.bf16.msra.mxu2 %v4324_v23  ;;  %v1065_v39 = vadd.f32 %v1064_v28, %v254_v24  ;;  %v4612_v20 = vor.u32 %v5455_v17, %v4609_v18  ;;  %v5451_v23 = vld [vmem:[#allocation8 + $0x464] sm:$0xf] }
 0x106   :  { %v1038_v29 = vpop.f32.mrf.mxu0  ;;  %v1078_v31 = vpop.f32.mrf.mxu3 }
 0x107   :  { %v1039_v36 = vadd.f32 %v1038_v29, %v253_v10  ;;  %v1079_v50 = vadd.f32 %v1078_v31, %v1065_v39  ;;  %v5487_v31 = vld [vmem:[#allocation8 + $0x584] sm:$0xf] }
 0x108   :  { %v1052_v37 = vpop.f32.mrf.mxu1  ;;  %v5483_v39 = vld [vmem:[#allocation8 + $0x564] sm:$0xf] }
 0x109   :  { %v1053_v63 = vadd.f32 %v1052_v37, %v1039_v36  ;;  %2867 = vmatpush.bf16.msra.mxu3 %v4468_v33  ;;  %2855 = vmatpush.bf16.msra.mxu2 %v4308_v38  ;;  %v1144_v3 = vmax.f32 %v1079_v50, 0.0  ;;  %v4737_v33 = vld [vmem:[#allocation8 + $0x590] sm:$0xf0]  ;;  %v4580_v38 = vor.u32 %v5447_v34, %v4577_v35  ;;  %v4724_v46 = vor.u32 %v5483_v39, %v4721_v40  ;;  %v5479_v50 = vld [vmem:[#allocation8 + $0x544] sm:$0xf] }
 0x10a   :  { %v4740_v36 = vor.u32 %v5487_v31, %v4737_v33  ;;  %v4881_v31 = vld [vmem:[#allocation8 + $0x6b0] sm:$0xf0]  ;;  %v4119_v33 = vld [vmem:[#allocation8 + $0xa8] sm:$0xf]  ;;  %v5334_v34 = vld [vmem:[#allocation8 + $0xb4] sm:$0xf0] }
 0x10b   :  { %v1151_v48 = vmax.f32 %v1053_v63, 0.0  ;;  %v5559_v40 = vld [vmem:[#allocation8 + $0x7c4] sm:$0xf] }
 0x10c   :  { %v1066_v54 = vpop.f32.mrf.mxu2 }
 0x10d   :  { %v5909_v53 = vpack.c.bf16 %v1151_v48, %v1143_v42  ;;  %v1067_v60 = vadd.f32 %v1066_v54, %v254_v24  ;;  %2868 = vmatpush.bf16.msra.mxu3 %v4452_v45  ;;  %2856 = vmatpush.bf16.msra.mxu2 %v4292_v49  ;;  %v4593_v24 = vld [vmem:[#allocation8 + $0x470] sm:$0xf0]  ;;  %v5439_v54 = vld [vmem:[#allocation8 + $0x404] sm:$0xf] }
 0x10e   :  { %v1080_v61 = vpop.f32.mrf.mxu3  ;;  %v4596_v29 = vor.u32 %v5451_v23, %v4593_v24  ;;  %v4561_v42 = vld [vmem:[#allocation8 + $0x430] sm:$0xf0] }
 0x10f   :  { %2773 = vmatmul.bf16.vlgmr.msrb.gmra.mxu0 %v5909_v53  ;;  %v1081_v4 = vadd.f32 %v1080_v61, %v1067_v60  ;;  %v4564_v49 = vor.u32 %v5443_v56, %v4561_v42  ;;  %v4913_v60 = vld [vmem:[#allocation8 + $0x6f0] sm:$0xf0]  ;;  %v4151_v61 = vld [vmem:[#allocation8 + $0xe8] sm:$0xf] }
 0x110   :  { %2877 = vmatpush.bf16.msrb.mxu0 %v4660_v51  ;;  %v4705_v51 = vld [vmem:[#allocation8 + $0x550] sm:$0xf0]  ;;  %v4916_v7 = vor.u32 %v5531_v57, %v4913_v60  ;;  %v4152_v8 = vor.u32 %v5342_v30, %v4151_v61  ;;  %v5366_v60 = vld [vmem:[#allocation8 + $0x1b4] sm:$0xf0]  ;;  %v4087_v61 = vld [vmem:[#allocation8 + $0x68] sm:$0xf] }
 0x111   :  { %v1152_v10 = vmax.f32 %v1081_v4, 0.0  ;;  %2869 = vmatpush.bf16.msra.mxu3 %v4436_v62  ;;  %v4708_v1 = vor.u32 %v5479_v50, %v4705_v51  ;;  %v4548_v4 = vor.u32 %v5439_v54, %v4545_v55  ;;  %v5041_v23 = vld [vmem:[#allocation8 + $0x7f0] sm:$0xf0]  ;;  %v5326_v30 = vld [vmem:[#allocation8 + $0x74] sm:$0xf0] }
 0x112   :  { %v5025_v56 = vld [vmem:[#allocation8 + $0x7d0] sm:$0xf0] }
 0x113   :  { %v5912_v13 = vpack.c.bf16 %v1152_v10, %v1144_v3  ;;  %v5028_v50 = vor.u32 %v5559_v40, %v5025_v56  ;;  %v5009_v57 = vld [vmem:[#allocation8 + $0x7b0] sm:$0xf0]  ;;  %v5314_v40 = vld [vmem:[#allocation8 + $0x14] sm:$0xf0] }
 0x114   :  { %2878 = vmatpush.bf16.msrb.mxu0 %v4644_v5  ;;  %v5475_v5 = vld [vmem:[#allocation8 + $0x524] sm:$0xf]  ;;  %v4801_v56 = vld [vmem:[#allocation8 + $0x610] sm:$0xf0] }
 0x115   :  { %2787 = vmatmul.bf16.vlgmr.msrb.gmra.mxu1 %v5912_v13  ;;  %2870 = vmatpush.bf16.msra.mxu3 %v4420_v11  ;;  %v4692_v18 = vor.u32 %v5475_v5, %v4689_v6  ;;  %v4088_v5 = vor.u32 %v5326_v30, %v4087_v61  ;;  %v4993_v6 = vld [vmem:[#allocation8 + $0x790] sm:$0xf0]  ;;  %v5466_v61 = vld [vmem:[#allocation8 + $0x4d4] sm:$0xf0] }
 0x116   :  { %2891 = vmatpush.bf16.msrb.mxu1 %v4788_v12  ;;  %v4897_v12 = vld [vmem:[#allocation8 + $0x6d0] sm:$0xf0] }
 0x118   :  { %2879 = vmatpush.bf16.msrb.mxu0 %v4628_v14  ;;  %v4135_v14 = vld [vmem:[#allocation8 + $0xc8] sm:$0xf] }
 0x11a   :  { %2892 = vmatpush.bf16.msrb.mxu1 %v4772_v19  ;;  %v5471_v19 = vld [vmem:[#allocation8 + $0x504] sm:$0xf] }
 0x11c   :  { %2880 = vmatpush.bf16.msrb.mxu0 %v4612_v20 }
 0x11e   :  { %v1092_v25 = vpop.f32.mrf.mxu0  ;;  %2893 = vmatpush.bf16.msrb.mxu1 %v4756_v26  ;;  %v4136_v26 = vor.u32 %v5338_v15, %v4135_v14  ;;  %v5511_v14 = vld [vmem:[#allocation8 + $0x644] sm:$0xf]  ;;  %v4833_v15 = vld [vmem:[#allocation8 + $0x650] sm:$0xf0] }
 0x11f   :  { %2829 = vmatmul.bf16.vlgmr.msra.gmra.mxu0 %v5893_v41  ;;  %v1093_v37 = vadd.f32 %v1092_v25, %v255_v27  ;;  %v4900_v25 = vor.u32 %v5527_v9, %v4897_v12  ;;  %v5322_v12 = vld [vmem:[#allocation8 + $0x54] sm:$0xf0] }
 0x120   :  { %v1106_v28 = vpop.f32.mrf.mxu1  ;;  %2881 = vmatpush.bf16.msrb.mxu0 %v4596_v29  ;;  %v5523_v29 = vld [vmem:[#allocation8 + $0x6a4] sm:$0xf] }
 0x121   :  { %v1107_v47 = vadd.f32 %v1106_v28, %v1093_v37  ;;  %v5374_v28 = vld [vmem:[#allocation8 + $0x1f4] sm:$0xf0]  ;;  %v4676_v37 = vor.u32 %v5471_v19, %v4673_v21  ;;  %v4215_v21 = vld [vmem:[#allocation8 + $0x168] sm:$0xf] }
 0x122   :  { %2894 = vmatpush.bf16.msrb.mxu1 %v4740_v36 }
 0x123   :  { %v1145_v2 = vmax.f32 %v1107_v47, 0.0  ;;  %v4865_v47 = vld [vmem:[#allocation8 + $0x690] sm:$0xf0] }
 0x124   :  { %v1120_v63 = vpop.f32.mrf.mxu2  ;;  %2882 = vmatpush.bf16.msrb.mxu0 %v4580_v38  ;;  %v5044_v38 = vor.u32 %v5563_v22, %v5041_v23  ;;  %v5358_v22 = vld [vmem:[#allocation8 + $0x174] sm:$0xf0]  ;;  %v4836_v23 = vor.u32 %v5511_v14, %v4833_v15  ;;  %v4631_v14 = vld [vmem:[#allocation8 + $0x4a8] sm:$0xf] }
 0x125   :  { %2843 = vmatmul.bf16.vlgmr.msra.gmra.mxu1 %v5896_v0  ;;  %v1121_v62 = vadd.f32 %v1120_v63, %v256_v43  ;;  %v4884_v63 = vor.u32 %v5523_v29, %v4881_v31  ;;  %v4216_v29 = vor.u32 %v5358_v22, %v4215_v21  ;;  %v5543_v31 = vld [vmem:[#allocation8 + $0x744] sm:$0xf]  ;;  %v5462_v15 = vld [vmem:[#allocation8 + $0x4b4] sm:$0xf0]  ;;  %v4519_v22 = vld [vmem:[#allocation8 + $0x3c8] sm:$0xf] }
 0x126   :  { %v1134_v44 = vpop.f32.mrf.mxu3  ;;  %v1094_v45 = vpop.f32.mrf.mxu0  ;;  %2895 = vmatpush.bf16.msrb.mxu1 %v4724_v46  ;;  %v5519_v46 = vld [vmem:[#allocation8 + $0x684] sm:$0xf] }
 0x127   :  { %v1095_v48 = vadd.f32 %v1094_v45, %v255_v27  ;;  %v1135_v16 = vadd.f32 %v1134_v44, %v1121_v62  ;;  %v4279_v27 = vld [vmem:[#allocation8 + $0x1e8] sm:$0xf]  ;;  %v5370_v45 = vld [vmem:[#allocation8 + $0x1d4] sm:$0xf0]  ;;  %v4868_v54 = vor.u32 %v5519_v46, %v4865_v47  ;;  %v5515_v62 = vld [vmem:[#allocation8 + $0x664] sm:$0xf] }
 0x128   :  { %v1108_v52 = vpop.f32.mrf.mxu1  ;;  %2883 = vmatpush.bf16.msrb.mxu0 %v4564_v49  ;;  %v4280_v39 = vor.u32 %v5374_v28, %v4279_v27  ;;  %v4263_v44 = vld [vmem:[#allocation8 + $0x1c8] sm:$0xf]  ;;  %v5330_v49 = vld [vmem:[#allocation8 + $0x94] sm:$0xf0]  ;;  %v4817_v27 = vld [vmem:[#allocation8 + $0x630] sm:$0xf0] }
 0x129   :  { %v1109_v58 = vadd.f32 %v1108_v52, %v1095_v48  ;;  %v1146_v35 = vmax.f32 %v1135_v16, 0.0  ;;  %v4103_v48 = vld [vmem:[#allocation8 + $0x88] sm:$0xf]  ;;  %v4264_v51 = vor.u32 %v5370_v45, %v4263_v44  ;;  %v5555_v52 = vld [vmem:[#allocation8 + $0x7a4] sm:$0xf] }
 0x12a   :  { %2896 = vmatpush.bf16.msrb.mxu1 %v4708_v1  ;;  %v4104_v55 = vor.u32 %v5330_v49, %v4103_v48  ;;  %v4849_v1 = vld [vmem:[#allocation8 + $0x670] sm:$0xf0]  ;;  %v4407_v46 = vld [vmem:[#allocation8 + $0x2e8] sm:$0xf]  ;;  %v5406_v47 = vld [vmem:[#allocation8 + $0x2f4] sm:$0xf0] }
 0x12b   :  { %v1153_v3 = vmax.f32 %v1109_v58, 0.0  ;;  %v4247_v58 = vld [vmem:[#allocation8 + $0x1a8] sm:$0xf]  ;;  %v4852_v9 = vor.u32 %v5515_v62, %v4849_v1  ;;  %v5539_v48 = vld [vmem:[#allocation8 + $0x724] sm:$0xf] }
 0x12c   :  { %v1122_v11 = vpop.f32.mrf.mxu2  ;;  %2884 = vmatpush.bf16.msrb.mxu0 %v4548_v4  ;;  %v5551_v4 = vld [vmem:[#allocation8 + $0x784] sm:$0xf]  ;;  %v5402_v1 = vld [vmem:[#allocation8 + $0x2d4] sm:$0xf0] }
 0x12d   :  { %v5919_v10 = vpack.c.bf16 %v1153_v3, %v1145_v2  ;;  %v1123_v17 = vadd.f32 %v1122_v11, %v256_v43  ;;  %v4120_v43 = vor.u32 %v5334_v34, %v4119_v33  ;;  %v5012_v2 = vor.u32 %v5555_v52, %v5009_v57  ;;  %v4071_v11 = vld [vmem:[#allocation8 + $0x48] sm:$0xf]  ;;  %v4961_v34 = vld [vmem:[#allocation8 + $0x750] sm:$0xf0]  ;;  %v5350_v52 = vld [vmem:[#allocation8 + $0x134] sm:$0xf0] }
 0x12e   :  { %v1136_v20 = vpop.f32.mrf.mxu3  ;;  %2897 = vmatpush.bf16.msrb.mxu1 %v4692_v18  ;;  %v4248_v3 = vor.u32 %v5366_v60, %v4247_v58  ;;  %v4996_v16 = vor.u32 %v5551_v4, %v4993_v6  ;;  %v5547_v18 = vld [vmem:[#allocation8 + $0x764] sm:$0xf]  ;;  %v4072_v19 = vor.u32 %v5322_v12, %v4071_v11  ;;  %v4964_v44 = vor.u32 %v5543_v31, %v4961_v34  ;;  %v4391_v58 = vld [vmem:[#allocation8 + $0x2c8] sm:$0xf]  ;;  %v5502_v11 = vld [vmem:[#allocation8 + $0x5f4] sm:$0xf0] }
 0x12f   :  { %2801 = vmatmul.bf16.vlgmr.msrb.gmra.mxu2 %v5919_v10  ;;  %v1137_v24 = vadd.f32 %v1136_v20, %v1123_v17  ;;  %2885 = vmatmul.bf16.vlgmr.msrb.gmra.mxu0 %v5909_v53  ;;  %v4977_v20 = vld [vmem:[#allocation8 + $0x770] sm:$0xf0]  ;;  %v4408_v57 = vor.u32 %v5406_v47, %v4407_v46  ;;  %v4647_v60 = vld [vmem:[#allocation8 + $0x4c8] sm:$0xf]  ;;  %v4392_v12 = vor.u32 %v5402_v1, %v4391_v58 }
 0x130   :  { %2905 = vmatpush.bf16.msrb.mxu2 %v4916_v7  ;;  %2933 = vmatpush.bf16.msra.mxu0 %v4152_v8  ;;  %v4231_v7 = vld [vmem:[#allocation8 + $0x188] sm:$0xf]  ;;  %v5362_v8 = vld [vmem:[#allocation8 + $0x194] sm:$0xf0]  ;;  %v4980_v28 = vor.u32 %v5547_v18, %v4977_v20 }
 0x131   :  { %v1154_v36 = vmax.f32 %v1137_v24, 0.0  ;;  %v4232_v17 = vor.u32 %v5362_v8, %v4231_v7  ;;  %v4055_v24 = vld [vmem:[#allocation8 + $0x28] sm:$0xf]  ;;  %v4648_v7 = vor.u32 %v5466_v61, %v4647_v60  ;;  %v5438_v8 = vld [vmem:[#allocation8 + $0x3f4] sm:$0xf0] }
 0x132   :  { %2898 = vmatpush.bf16.msrb.mxu1 %v4676_v37  ;;  %v4167_v4 = vld [vmem:[#allocation8 + $0x108] sm:$0xf]  ;;  %v5386_v60 = vld [vmem:[#allocation8 + $0x254] sm:$0xf0] }
 0x133   :  { %v5923_v42 = vpack.c.bf16 %v1154_v36, %v1146_v35  ;;  %v4199_v35 = vld [vmem:[#allocation8 + $0x148] sm:$0xf]  ;;  %v5354_v36 = vld [vmem:[#allocation8 + $0x154] sm:$0xf0] }
 0x134   :  { %2906 = vmatpush.bf16.msrb.mxu2 %v4900_v25  ;;  %2934 = vmatpush.bf16.msra.mxu0 %v4136_v26  ;;  %v5318_v25 = vld [vmem:[#allocation8 + $0x34] sm:$0xf0]  ;;  %v5507_v26 = vld [vmem:[#allocation8 + $0x624] sm:$0xf]  ;;  %v4200_v45 = vor.u32 %v5354_v36, %v4199_v35  ;;  %v4535_v6 = vld [vmem:[#allocation8 + $0x3e8] sm:$0xf] }
 0x135   :  { %2815 = vmatmul.bf16.vlgmr.msrb.gmra.mxu3 %v5923_v42  ;;  %2899 = vmatmul.bf16.vlgmr.msrb.gmra.mxu1 %v5912_v13  ;;  %v4056_v33 = vor.u32 %v5318_v25, %v4055_v24  ;;  %v4820_v37 = vor.u32 %v5507_v26, %v4817_v27  ;;  %v4375_v18 = vld [vmem:[#allocation8 + $0x2a8] sm:$0xf]  ;;  %v4536_v20 = vor.u32 %v5438_v8, %v4535_v6  ;;  %v5434_v24 = vld [vmem:[#allocation8 + $0x3d4] sm:$0xf0] }
 0x136   :  { %2919 = vmatpush.bf16.msrb.mxu3 %v5044_v38  ;;  %2947 = vmatpush.bf16.msra.mxu1 %v4280_v39  ;;  %v5503_v38 = vld [vmem:[#allocation8 + $0x604] sm:$0xf]  ;;  %v4039_v39 = vld [vmem:[#allocation8 + $0x8] sm:$0xf]  ;;  %v5498_v26 = vld [vmem:[#allocation8 + $0x5d4] sm:$0xf0]  ;;  %v4520_v34 = vor.u32 %v5434_v24, %v4519_v22 }
 0x137   :  { %v4040_v49 = vor.u32 %v5314_v40, %v4039_v39  ;;  %v4775_v25 = vld [vmem:[#allocation8 + $0x5c8] sm:$0xf]  ;;  %v5494_v40 = vld [vmem:[#allocation8 + $0x5b4] sm:$0xf0]  ;;  %v5340_v24 = vld [vmem:[#allocation8 + $0xec] sm:$0xf] }
 0x138   :  { %2907 = vmatpush.bf16.msrb.mxu2 %v4884_v63  ;;  %2935 = vmatpush.bf16.msra.mxu0 %v4120_v43  ;;  %v4663_v63 = vld [vmem:[#allocation8 + $0x4e8] sm:$0xf]  ;;  %v5470_v43 = vld [vmem:[#allocation8 + $0x4f4] sm:$0xf0]  ;;  %v4776_v35 = vor.u32 %v5498_v26, %v4775_v25  ;;  %v4153_v25 = vld [vmem:[#allocation8 + $0xf8] sm:$0xf0] }
 0x139   :  { %v4359_v31 = vld [vmem:[#allocation8 + $0x288] sm:$0xf]  ;;  %v5442_v22 = vld [vmem:[#allocation8 + $0x414] sm:$0xf0] }
 0x13a   :  { %2920 = vmatpush.bf16.msrb.mxu3 %v5028_v50  ;;  %2948 = vmatpush.bf16.msra.mxu1 %v4264_v51  ;;  %v4945_v50 = vld [vmem:[#allocation8 + $0x730] sm:$0xf0]  ;;  %v4183_v51 = vld [vmem:[#allocation8 + $0x128] sm:$0xf] }
 0x13b   :  { %v4948_v30 = vor.u32 %v5539_v48, %v4945_v50  ;;  %v4184_v62 = vor.u32 %v5350_v52, %v4183_v51  ;;  %v4503_v36 = vld [vmem:[#allocation8 + $0x3a8] sm:$0xf]  ;;  %v5426_v50 = vld [vmem:[#allocation8 + $0x394] sm:$0xf0] }
 0x13c   :  { %2908 = vmatpush.bf16.msrb.mxu2 %v4868_v54  ;;  %2936 = vmatpush.bf16.msra.mxu0 %v4104_v55  ;;  %v4804_v54 = vor.u32 %v5503_v38, %v4801_v56  ;;  %v4664_v55 = vor.u32 %v5470_v43, %v4663_v63  ;;  %v5430_v38 = vld [vmem:[#allocation8 + $0x3b4] sm:$0xf0]  ;;  %v4759_v39 = vld [vmem:[#allocation8 + $0x5a8] sm:$0xf] }
 0x13d   :  { %v4599_v63 = vld [vmem:[#allocation8 + $0x468] sm:$0xf]  ;;  %v5454_v43 = vld [vmem:[#allocation8 + $0x474] sm:$0xf0]  ;;  %v4504_v46 = vor.u32 %v5430_v38, %v4503_v36  ;;  %v4760_v47 = vor.u32 %v5494_v40, %v4759_v39  ;;  %v4156_v38 = vor.u32 %v5340_v24, %v4153_v25  ;;  %v4089_v24 = vld [vmem:[#allocation8 + $0x78] sm:$0xf0] }
 0x13e   :  { %2921 = vmatpush.bf16.msrb.mxu3 %v5012_v2  ;;  %2949 = vmatpush.bf16.msra.mxu1 %v4248_v3  ;;  %v5535_v2 = vld [vmem:[#allocation8 + $0x704] sm:$0xf]  ;;  %v4929_v3 = vld [vmem:[#allocation8 + $0x710] sm:$0xf0]  ;;  %v4487_v48 = vld [vmem:[#allocation8 + $0x388] sm:$0xf] }
 0x13f   :  { %2857 = vmatmul.bf16.vlgmr.msra.gmra.mxu2 %v5901_v32  ;;  %v4743_v51 = vld [vmem:[#allocation8 + $0x588] sm:$0xf]  ;;  %v5490_v52 = vld [vmem:[#allocation8 + $0x594] sm:$0xf0]  ;;  %v4488_v61 = vor.u32 %v5426_v50, %v4487_v48 }
 0x140   :  { %2937 = vmatpush.bf16.msra.mxu0 %v4088_v5  ;;  %2909 = vmatpush.bf16.msrb.mxu2 %v4852_v9  ;;  %v5346_v5 = vld [vmem:[#allocation8 + $0x114] sm:$0xf0]  ;;  %v4791_v9 = vld [vmem:[#allocation8 + $0x5e8] sm:$0xf] }
 0x141   :  { %v4792_v21 = vor.u32 %v5502_v11, %v4791_v9  ;;  %v4327_v58 = vld [vmem:[#allocation8 + $0x248] sm:$0xf]  ;;  %v5382_v9 = vld [vmem:[#allocation8 + $0x234] sm:$0xf0] }
 0x142   :  { %2922 = vmatpush.bf16.msrb.mxu3 %v4996_v16  ;;  %2950 = vmatpush.bf16.msra.mxu1 %v4232_v17  ;;  %v4932_v16 = vor.u32 %v5535_v2, %v4929_v3  ;;  %v4168_v17 = vor.u32 %v5346_v5, %v4167_v4  ;;  %v5422_v2 = vld [vmem:[#allocation8 + $0x374] sm:$0xf0]  ;;  %v4727_v3 = vld [vmem:[#allocation8 + $0x568] sm:$0xf]  ;;  %v4328_v5 = vor.u32 %v5386_v60, %v4327_v58  ;;  %v5332_v58 = vld [vmem:[#allocation8 + $0xac] sm:$0xf] }
 0x143   :  { %v5486_v4 = vld [vmem:[#allocation8 + $0x574] sm:$0xf0]  ;;  %v4567_v6 = vld [vmem:[#allocation8 + $0x428] sm:$0xf]  ;;  %v4121_v60 = vld [vmem:[#allocation8 + $0xb8] sm:$0xf0] }
 0x144   :  { %2938 = vmatpush.bf16.msra.mxu0 %v4072_v19  ;;  %2910 = vmatpush.bf16.msrb.mxu2 %v4836_v23  ;;  %v5398_v19 = vld [vmem:[#allocation8 + $0x2b4] sm:$0xf0]  ;;  %v4632_v23 = vor.u32 %v5462_v15, %v4631_v14  ;;  %v4311_v8 = vld [vmem:[#allocation8 + $0x228] sm:$0xf] }
 0x145   :  { %2871 = vmatmul.bf16.vlgmr.msra.gmra.mxu3 %v5904_v59  ;;  %v4376_v27 = vor.u32 %v5398_v19, %v4375_v18  ;;  %v4455_v14 = vld [vmem:[#allocation8 + $0x348] sm:$0xf]  ;;  %v5482_v18 = vld [vmem:[#allocation8 + $0x554] sm:$0xf0]  ;;  %v4312_v19 = vor.u32 %v5382_v9, %v4311_v8  ;;  %v4265_v8 = vld [vmem:[#allocation8 + $0x1d8] sm:$0xf0] }
 0x146   :  { %2923 = vmatpush.bf16.msrb.mxu3 %v4980_v28  ;;  %2951 = vmatpush.bf16.msra.mxu1 %v4216_v29  ;;  %v4615_v28 = vld [vmem:[#allocation8 + $0x488] sm:$0xf]  ;;  %v5458_v29 = vld [vmem:[#allocation8 + $0x494] sm:$0xf0]  ;;  %v5328_v9 = vld [vmem:[#allocation8 + $0x8c] sm:$0xf] }
 0x147   :  { %v5478_v36 = vld [vmem:[#allocation8 + $0x534] sm:$0xf0]  ;;  %v4903_v40 = vld [vmem:[#allocation8 + $0x6c8] sm:$0xf] }
 0x148   :  { %2939 = vmatpush.bf16.msra.mxu0 %v4056_v33  ;;  %2911 = vmatpush.bf16.msrb.mxu2 %v4820_v37  ;;  %v5394_v33 = vld [vmem:[#allocation8 + $0x294] sm:$0xf0]  ;;  %v4616_v37 = vor.u32 %v5458_v29, %v4615_v28  ;;  %v4919_v28 = vld [vmem:[#allocation8 + $0x6e8] sm:$0xf] }
 0x149   :  { %v4360_v56 = vor.u32 %v5394_v33, %v4359_v31  ;;  %v5534_v29 = vld [vmem:[#allocation8 + $0x6f4] sm:$0xf0]  ;;  %v4439_v31 = vld [vmem:[#allocation8 + $0x328] sm:$0xf] }
 0x14a   :  { %2924 = vmatpush.bf16.msrb.mxu3 %v4964_v44  ;;  %2952 = vmatpush.bf16.msra.mxu1 %v4200_v45  ;;  %v4343_v44 = vld [vmem:[#allocation8 + $0x268] sm:$0xf]  ;;  %v5390_v45 = vld [vmem:[#allocation8 + $0x274] sm:$0xf0]  ;;  %v4920_v39 = vor.u32 %v5534_v29, %v4919_v28 }
 0x14b   :  { %v4679_v48 = vld [vmem:[#allocation8 + $0x508] sm:$0xf]  ;;  %v5518_v29 = vld [vmem:[#allocation8 + $0x674] sm:$0xf0] }
 0x14c   :  { %2940 = vmatpush.bf16.msra.mxu0 %v4040_v49  ;;  %2912 = vmatpush.bf16.msrb.mxu2 %v4804_v54  ;;  %v4600_v49 = vor.u32 %v5454_v43, %v4599_v63  ;;  %v4344_v54 = vor.u32 %v5390_v45, %v4343_v44  ;;  %v4137_v63 = vld [vmem:[#allocation8 + $0xd8] sm:$0xf0]  ;;  %v5530_v45 = vld [vmem:[#allocation8 + $0x6d4] sm:$0xf0]  ;;  %v5047_v50 = vld [vmem:[#allocation8 + $0x7e8] sm:$0xf] }
 0x14d   :  { %v4855_v28 = vld [vmem:[#allocation8 + $0x668] sm:$0xf] }
 0x14e   :  { %2925 = vmatpush.bf16.msrb.mxu3 %v4948_v30  ;;  %2953 = vmatpush.bf16.msra.mxu1 %v4184_v62  ;;  %v4744_v30 = vor.u32 %v5490_v52, %v4743_v51  ;;  %v4471_v62 = vld [vmem:[#allocation8 + $0x368] sm:$0xf]  ;;  %v5566_v52 = vld [vmem:[#allocation8 + $0x7f4] sm:$0xf0] }
 0x14f   :  { %2941 = vmatmul.bf16.vlgmr.msra.gmra.mxu0 %v5893_v41  ;;  %2913 = vmatmul.bf16.vlgmr.msrb.gmra.mxu2 %v5919_v10  ;;  %v4472_v11 = vor.u32 %v5422_v2, %v4471_v62  ;;  %v5048_v62 = vor.u32 %v5566_v52, %v5047_v50  ;;  %v4887_v2 = vld [vmem:[#allocation8 + $0x6a8] sm:$0xf]  ;;  %v4057_v50 = vld [vmem:[#allocation8 + $0x38] sm:$0xf0] }
 0x150   :  { %2989 = vmatpush.bf16.msrb.mxu0 %v4664_v55  ;;  %2961 = vmatpush.bf16.msra.mxu2 %v4408_v57  ;;  %v4583_v55 = vld [vmem:[#allocation8 + $0x448] sm:$0xf]  ;;  %v5450_v57 = vld [vmem:[#allocation8 + $0x454] sm:$0xf0] }
 0x151   :  { %v4584_v1 = vor.u32 %v5450_v57, %v4583_v55  ;;  %v4281_v55 = vld [vmem:[#allocation8 + $0x1f8] sm:$0xf0]  ;;  %v4904_v57 = vor.u32 %v5530_v45, %v4903_v40 }
 0x152   :  { %2926 = vmatpush.bf16.msrb.mxu3 %v4932_v16  ;;  %2954 = vmatpush.bf16.msra.mxu1 %v4168_v17  ;;  %v5418_v16 = vld [vmem:[#allocation8 + $0x354] sm:$0xf0]  ;;  %v4711_v17 = vld [vmem:[#allocation8 + $0x548] sm:$0xf] }
 0x153   :  { %v4456_v26 = vor.u32 %v5418_v16, %v4455_v14  ;;  %v4871_v16 = vld [vmem:[#allocation8 + $0x688] sm:$0xf] }
 0x154   :  { %2990 = vmatpush.bf16.msrb.mxu0 %v4648_v7  ;;  %2962 = vmatpush.bf16.msra.mxu2 %v4392_v12  ;;  %v5446_v7 = vld [vmem:[#allocation8 + $0x434] sm:$0xf0]  ;;  %v4728_v12 = vor.u32 %v5486_v4, %v4727_v3  ;;  %v5031_v4 = vld [vmem:[#allocation8 + $0x7c8] sm:$0xf] }
 0x155   :  { %2955 = vmatmul.bf16.vlgmr.msra.gmra.mxu1 %v5896_v0  ;;  %2927 = vmatmul.bf16.vlgmr.msrb.gmra.mxu3 %v5923_v42  ;;  %v4568_v15 = vor.u32 %v5446_v7, %v4567_v6  ;;  %v5526_v3 = vld [vmem:[#allocation8 + $0x6b4] sm:$0xf0]  ;;  %v5368_v7 = vld [vmem:[#allocation8 + $0x1cc] sm:$0xf] }
 0x156   :  { %2975 = vmatpush.bf16.msra.mxu3 %v4536_v20  ;;  %3003 = vmatpush.bf16.msrb.mxu1 %v4792_v21  ;;  %v4295_v20 = vld [vmem:[#allocation8 + $0x208] sm:$0xf]  ;;  %v5562_v6 = vld [vmem:[#allocation8 + $0x7d4] sm:$0xf0] }
 0x157   :  { %v4551_v21 = vld [vmem:[#allocation8 + $0x408] sm:$0xf]  ;;  %v5032_v14 = vor.u32 %v5562_v6, %v5031_v4  ;;  %v5468_v4 = vld [vmem:[#allocation8 + $0x4ec] sm:$0xf] }
 0x158   :  { %2991 = vmatpush.bf16.msrb.mxu0 %v4632_v23  ;;  %2963 = vmatpush.bf16.msra.mxu2 %v4376_v27  ;;  %v5378_v23 = vld [vmem:[#allocation8 + $0x214] sm:$0xf0]  ;;  %v4712_v27 = vor.u32 %v5482_v18, %v4711_v17  ;;  %v4552_v33 = vor.u32 %v5442_v22, %v4551_v21  ;;  %v5015_v18 = vld [vmem:[#allocation8 + $0x7a8] sm:$0xf]  ;;  %v5364_v21 = vld [vmem:[#allocation8 + $0x1ac] sm:$0xf] }
 0x159   :  { %v5522_v17 = vld [vmem:[#allocation8 + $0x694] sm:$0xf0]  ;;  %v4249_v22 = vld [vmem:[#allocation8 + $0x1b8] sm:$0xf0] }
 0x15a   :  { %2976 = vmatpush.bf16.msra.mxu3 %v4520_v34  ;;  %3004 = vmatpush.bf16.msrb.mxu1 %v4776_v35  ;;  %v5414_v34 = vld [vmem:[#allocation8 + $0x334] sm:$0xf0]  ;;  %v4695_v35 = vld [vmem:[#allocation8 + $0x528] sm:$0xf]  ;;  %v4872_v25 = vor.u32 %v5522_v17, %v4871_v16 }
 0x15b   :  { %v4440_v43 = vor.u32 %v5414_v34, %v4439_v31  ;;  %v4696_v44 = vor.u32 %v5478_v36, %v4695_v35  ;;  %v4999_v31 = vld [vmem:[#allocation8 + $0x788] sm:$0xf]  ;;  %v5554_v34 = vld [vmem:[#allocation8 + $0x794] sm:$0xf0]  ;;  %v5360_v35 = vld [vmem:[#allocation8 + $0x18c] sm:$0xf] }
 0x15c   :  { %2992 = vmatpush.bf16.msrb.mxu0 %v4616_v37  ;;  %2964 = vmatpush.bf16.msra.mxu2 %v4360_v56  ;;  %v4296_v37 = vor.u32 %v5378_v23, %v4295_v20  ;;  %v5336_v56 = vld [vmem:[#allocation8 + $0xcc] sm:$0xf]  ;;  %v5558_v20 = vld [vmem:[#allocation8 + $0x7b4] sm:$0xf0]  ;;  %v4233_v36 = vld [vmem:[#allocation8 + $0x198] sm:$0xf0]  ;;  %v5000_v40 = vor.u32 %v5554_v34, %v4999_v31 }
 0x15d   :  { %v4140_v51 = vor.u32 %v5336_v56, %v4137_v63  ;;  %v5324_v23 = vld [vmem:[#allocation8 + $0x6c] sm:$0xf]  ;;  %v4236_v56 = vor.u32 %v5360_v35, %v4233_v36  ;;  %v4839_v63 = vld [vmem:[#allocation8 + $0x648] sm:$0xf]  ;;  %v5542_v16 = vld [vmem:[#allocation8 + $0x734] sm:$0xf0] }
 0x15e   :  { %2977 = vmatpush.bf16.msra.mxu3 %v4504_v46  ;;  %3005 = vmatpush.bf16.msrb.mxu1 %v4760_v47  ;;  %v4423_v46 = vld [vmem:[#allocation8 + $0x308] sm:$0xf]  ;;  %v5410_v47 = vld [vmem:[#allocation8 + $0x314] sm:$0xf0]  ;;  %v5344_v31 = vld [vmem:[#allocation8 + $0x10c] sm:$0xf] }
 0x15f   :  { %v5436_v35 = vld [vmem:[#allocation8 + $0x3ec] sm:$0xf]  ;;  %v4537_v36 = vld [vmem:[#allocation8 + $0x3f8] sm:$0xf0] }
 0x160   :  { %2993 = vmatpush.bf16.msrb.mxu0 %v4600_v49  ;;  %2965 = vmatpush.bf16.msra.mxu2 %v4344_v54  ;;  %v5474_v49 = vld [vmem:[#allocation8 + $0x514] sm:$0xf0]  ;;  %v5372_v54 = vld [vmem:[#allocation8 + $0x1ec] sm:$0xf] }
 0x162   :  { %2978 = vmatpush.bf16.msra.mxu3 %v4488_v61  ;;  %3006 = vmatpush.bf16.msrb.mxu1 %v4744_v30  ;;  %v4424_v61 = vor.u32 %v5410_v47, %v4423_v46  ;;  %v4680_v30 = vor.u32 %v5474_v49, %v4679_v48  ;;  %v5550_v46 = vld [vmem:[#allocation8 + $0x774] sm:$0xf0]  ;;  %v5356_v47 = vld [vmem:[#allocation8 + $0x16c] sm:$0xf]  ;;  %v4217_v48 = vld [vmem:[#allocation8 + $0x178] sm:$0xf0] }
 0x163   :  { %v5316_v49 = vld [vmem:[#allocation8 + $0x2c] sm:$0xf] }
 0x164   :  { %2994 = vmatpush.bf16.msrb.mxu0 %v4584_v1  ;;  %2966 = vmatpush.bf16.msra.mxu2 %v4328_v5  ;;  %v4284_v1 = vor.u32 %v5372_v54, %v4281_v55  ;;  %v4124_v5 = vor.u32 %v5332_v58, %v4121_v60  ;;  %v4220_v54 = vor.u32 %v5356_v47, %v4217_v48  ;;  %v4823_v55 = vld [vmem:[#allocation8 + $0x628] sm:$0xf] }
 0x165   :  { %v4967_v58 = vld [vmem:[#allocation8 + $0x748] sm:$0xf]  ;;  %v4060_v60 = vor.u32 %v5316_v49, %v4057_v50  ;;  %v5432_v49 = vld [vmem:[#allocation8 + $0x3cc] sm:$0xf]  ;;  %v4521_v50 = vld [vmem:[#allocation8 + $0x3d8] sm:$0xf0] }
 0x166   :  { %2979 = vmatpush.bf16.msra.mxu3 %v4472_v11  ;;  %3007 = vmatpush.bf16.msrb.mxu1 %v4728_v12  ;;  %v4105_v11 = vld [vmem:[#allocation8 + $0x98] sm:$0xf0]  ;;  %v4888_v12 = vor.u32 %v5526_v3, %v4887_v2 }
 0x167   :  { %v4041_v2 = vld [vmem:[#allocation8 + $0x18] sm:$0xf0] }
 0x168   :  { %2995 = vmatpush.bf16.msrb.mxu0 %v4568_v15  ;;  %2967 = vmatpush.bf16.msra.mxu2 %v4312_v19  ;;  %v4268_v15 = vor.u32 %v5368_v7, %v4265_v8  ;;  %v4108_v19 = vor.u32 %v5328_v9, %v4105_v11  ;;  %v4807_v8 = vld [vmem:[#allocation8 + $0x608] sm:$0xf]  ;;  %v5506_v9 = vld [vmem:[#allocation8 + $0x614] sm:$0xf0]  ;;  %v5404_v11 = vld [vmem:[#allocation8 + $0x2ec] sm:$0xf] }
 0x16a   :  { %2980 = vmatpush.bf16.msra.mxu3 %v4456_v26  ;;  %3008 = vmatpush.bf16.msrb.mxu1 %v4712_v27  ;;  %v5016_v26 = vor.u32 %v5558_v20, %v5015_v18  ;;  %v4252_v27 = vor.u32 %v5364_v21, %v4249_v22  ;;  %v5348_v18 = vld [vmem:[#allocation8 + $0x12c] sm:$0xf]  ;;  %v4808_v20 = vor.u32 %v5506_v9, %v4807_v8  ;;  %v4649_v22 = vld [vmem:[#allocation8 + $0x4d8] sm:$0xf0] }
 0x16b   :  { %v5464_v21 = vld [vmem:[#allocation8 + $0x4cc] sm:$0xf]  ;;  %v4345_v9 = vld [vmem:[#allocation8 + $0x278] sm:$0xf0] }
 0x16c   :  { %2996 = vmatpush.bf16.msrb.mxu0 %v4552_v33  ;;  %2968 = vmatpush.bf16.msra.mxu2 %v4296_v37  ;;  %v4092_v33 = vor.u32 %v5324_v23, %v4089_v24  ;;  %v5320_v37 = vld [vmem:[#allocation8 + $0x4c] sm:$0xf]  ;;  %v4652_v34 = vor.u32 %v5464_v21, %v4649_v22  ;;  %v5941_v21 = vpop.f32.mrf.mxu0 }
 0x16d   :  { %v5388_v8 = vld [vmem:[#allocation8 + $0x26c] sm:$0xf] }
 0x16e   :  { %2981 = vmatpush.bf16.msra.mxu3 %v4440_v43  ;;  %3009 = vmatpush.bf16.msrb.mxu1 %v4696_v44  ;;  %v5514_v43 = vld [vmem:[#allocation8 + $0x654] sm:$0xf0]  ;;  %v4983_v44 = vld [vmem:[#allocation8 + $0x768] sm:$0xf]  ;;  %v5384_v22 = vld [vmem:[#allocation8 + $0x24c] sm:$0xf] }
 0x16f   :  { %2969 = vmatmul.bf16.vlgmr.msra.gmra.mxu2 %v5901_v32  ;;  %2997 = vmatmul.bf16.vlgmr.msrb.gmra.mxu0 %v5909_v53  ;;  %v4984_v52 = vor.u32 %v5550_v46, %v4983_v44  ;;  %v4540_v44 = vor.u32 %v5436_v35, %v4537_v36  ;;  %v4377_v46 = vld [vmem:[#allocation8 + $0x2b8] sm:$0xf0]  ;;  %v5943_v35 = vpop.f32.mrf.mxu1 }
 0x170   :  { %3045 = vmatpush.bf16.msra.mxu0 %v4156_v38  ;;  %3017 = vmatpush.bf16.msrb.mxu2 %v4920_v39  ;;  %v4073_v38 = vld [vmem:[#allocation8 + $0x58] sm:$0xf0]  ;;  %v4856_v39 = vor.u32 %v5518_v29, %v4855_v28  ;;  %v5538_v29 = vld [vmem:[#allocation8 + $0x714] sm:$0xf0] }
 0x171   :  { %v4076_v45 = vor.u32 %v5320_v37, %v4073_v38  ;;  %v5500_v37 = vld [vmem:[#allocation8 + $0x5ec] sm:$0xf]  ;;  %v4793_v38 = vld [vmem:[#allocation8 + $0x5f8] sm:$0xf0] }
 0x172   :  { %2982 = vmatpush.bf16.msra.mxu3 %v4424_v61  ;;  %3010 = vmatpush.bf16.msrb.mxu1 %v4680_v30  ;;  %v5546_v61 = vld [vmem:[#allocation8 + $0x754] sm:$0xf0]  ;;  %v5352_v30 = vld [vmem:[#allocation8 + $0x14c] sm:$0xf]  ;;  %v4796_v47 = vor.u32 %v5500_v37, %v4793_v38  ;;  %v4313_v38 = vld [vmem:[#allocation8 + $0x238] sm:$0xf0] }
 0x173   :  { %v4968_v6 = vor.u32 %v5546_v61, %v4967_v58  ;;  %v5392_v58 = vld [vmem:[#allocation8 + $0x28c] sm:$0xf] }
 0x174   :  { %3046 = vmatpush.bf16.msra.mxu0 %v4140_v51  ;;  %3018 = vmatpush.bf16.msrb.mxu2 %v4904_v57  ;;  %v4840_v51 = vor.u32 %v5514_v43, %v4839_v63  ;;  %v5510_v57 = vld [vmem:[#allocation8 + $0x634] sm:$0xf0]  ;;  %v5380_v37 = vld [vmem:[#allocation8 + $0x22c] sm:$0xf] }
 0x175   :  { %2983 = vmatmul.bf16.vlgmr.msra.gmra.mxu3 %v5904_v59  ;;  %3011 = vmatmul.bf16.vlgmr.msrb.gmra.mxu1 %v5912_v13  ;;  %v4824_v3 = vor.u32 %v5510_v57, %v4823_v55  ;;  %v4617_v55 = vld [vmem:[#allocation8 + $0x498] sm:$0xf0] }
 0x176   :  { %3031 = vmatpush.bf16.msrb.mxu3 %v5048_v62  ;;  %3059 = vmatpush.bf16.msra.mxu1 %v4284_v1  ;;  %v4201_v62 = vld [vmem:[#allocation8 + $0x158] sm:$0xf0]  ;;  %v5312_v1 = vld [vmem:[#allocation8 + $0xc] sm:$0xf] }
 0x177   :  { %v4204_v7 = vor.u32 %v5352_v30, %v4201_v62  ;;  %v5428_v62 = vld [vmem:[#allocation8 + $0x3ac] sm:$0xf] }
 0x178   :  { %3047 = vmatpush.bf16.msra.mxu0 %v4124_v5  ;;  %3019 = vmatpush.bf16.msrb.mxu2 %v4888_v12  ;;  %v4665_v5 = vld [vmem:[#allocation8 + $0x4f8] sm:$0xf0]  ;;  %v4044_v12 = vor.u32 %v5312_v1, %v4041_v2  ;;  %v5492_v2 = vld [vmem:[#allocation8 + $0x5ac] sm:$0xf] }
 0x179   :  { %v4668_v17 = vor.u32 %v5468_v4, %v4665_v5  ;;  %v4505_v1 = vld [vmem:[#allocation8 + $0x3b8] sm:$0xf0]  ;;  %v5452_v4 = vld [vmem:[#allocation8 + $0x46c] sm:$0xf] }
 0x17a   :  { %3032 = vmatpush.bf16.msrb.mxu3 %v5032_v14  ;;  %3060 = vmatpush.bf16.msra.mxu1 %v4268_v15  ;;  %v4409_v14 = vld [vmem:[#allocation8 + $0x2f8] sm:$0xf0]  ;;  %v4951_v15 = vld [vmem:[#allocation8 + $0x728] sm:$0xf] }
 0x17b   :  { %v4412_v23 = vor.u32 %v5404_v11, %v4409_v14  ;;  %v4952_v24 = vor.u32 %v5542_v16, %v4951_v15  ;;  %v4601_v5 = vld [vmem:[#allocation8 + $0x478] sm:$0xf0]  ;;  %v5424_v14 = vld [vmem:[#allocation8 + $0x38c] sm:$0xf] }
 0x17c   :  { %3048 = vmatpush.bf16.msra.mxu0 %v4108_v19  ;;  %3020 = vmatpush.bf16.msrb.mxu2 %v4872_v25  ;;  %v4185_v19 = vld [vmem:[#allocation8 + $0x138] sm:$0xf0]  ;;  %v5400_v25 = vld [vmem:[#allocation8 + $0x2cc] sm:$0xf] }
 0x17d   :  { %v4188_v28 = vor.u32 %v5348_v18, %v4185_v19  ;;  %v4489_v15 = vld [vmem:[#allocation8 + $0x398] sm:$0xf0]  ;;  %v5488_v16 = vld [vmem:[#allocation8 + $0x58c] sm:$0xf] }
 0x17e   :  { %3033 = vmatpush.bf16.msrb.mxu3 %v5016_v26  ;;  %3061 = vmatpush.bf16.msra.mxu1 %v4252_v27  ;;  %v4393_v26 = vld [vmem:[#allocation8 + $0x2d8] sm:$0xf0]  ;;  %v4935_v27 = vld [vmem:[#allocation8 + $0x708] sm:$0xf]  ;;  %v5448_v18 = vld [vmem:[#allocation8 + $0x44c] sm:$0xf] }
 0x17f   :  { %v4936_v63 = vor.u32 %v5538_v29, %v4935_v27  ;;  %v4585_v19 = vld [vmem:[#allocation8 + $0x458] sm:$0xf0] }
 0x180   :  { %3049 = vmatpush.bf16.msra.mxu0 %v4092_v33  ;;  %3021 = vmatpush.bf16.msrb.mxu2 %v4856_v39  ;;  %v4169_v33 = vld [vmem:[#allocation8 + $0x118] sm:$0xf0]  ;;  %v5460_v39 = vld [vmem:[#allocation8 + $0x4ac] sm:$0xf] }
 0x181   :  { %v4172_v43 = vor.u32 %v5344_v31, %v4169_v33  ;;  %v4473_v27 = vld [vmem:[#allocation8 + $0x378] sm:$0xf0]  ;;  %v5444_v31 = vld [vmem:[#allocation8 + $0x42c] sm:$0xf] }
 0x182   :  { %3034 = vmatpush.bf16.msrb.mxu3 %v5000_v40  ;;  %3062 = vmatpush.bf16.msra.mxu1 %v4236_v56  ;;  %v4633_v40 = vld [vmem:[#allocation8 + $0x4b8] sm:$0xf0]  ;;  %v4396_v56 = vor.u32 %v5400_v25, %v4393_v26  ;;  %v4588_v25 = vor.u32 %v5448_v18, %v4585_v19  ;;  %v5420_v26 = vld [vmem:[#allocation8 + $0x36c] sm:$0xf]  ;;  %v5951_v19 = vpop.f32.mrf.mxu3 }
 0x183   :  { %v4636_v48 = vor.u32 %v5460_v39, %v4633_v40  ;;  %v4729_v29 = vld [vmem:[#allocation8 + $0x578] sm:$0xf0]  ;;  %v4476_v36 = vor.u32 %v5420_v26, %v4473_v27  ;;  %v5572_v27 = vld [vmem:[#allocation11 + $0x28] sm:$0xff] }
 0x184   :  { %3050 = vmatpush.bf16.msra.mxu0 %v4076_v45  ;;  %3022 = vmatpush.bf16.msrb.mxu2 %v4840_v51  ;;  %v5396_v45 = vld [vmem:[#allocation8 + $0x2ac] sm:$0xf]  ;;  %v4569_v33 = vld [vmem:[#allocation8 + $0x438] sm:$0xf0] }
 0x185   :  { %v5496_v51 = vld [vmem:[#allocation8 + $0x5cc] sm:$0xf]  ;;  %v4380_v57 = vor.u32 %v5396_v45, %v4377_v46  ;;  %v4572_v40 = vor.u32 %v5444_v31, %v4569_v33  ;;  %v4553_v46 = vld [vmem:[#allocation8 + $0x418] sm:$0xf0] }
 0x186   :  { %3035 = vmatpush.bf16.msrb.mxu3 %v4984_v52  ;;  %3063 = vmatpush.bf16.msra.mxu1 %v4220_v54  ;;  %v4777_v52 = vld [vmem:[#allocation8 + $0x5d8] sm:$0xf0]  ;;  %v5456_v54 = vld [vmem:[#allocation8 + $0x48c] sm:$0xf] }
 0x187   :  { %v4780_v61 = vor.u32 %v5496_v51, %v4777_v52  ;;  %v4620_v30 = vor.u32 %v5456_v54, %v4617_v55  ;;  %v5440_v45 = vld [vmem:[#allocation8 + $0x40c] sm:$0xf]  ;;  %v4921_v55 = vld [vmem:[#allocation8 + $0x6f8] sm:$0xf0] }
 0x188   :  { %3051 = vmatpush.bf16.msra.mxu0 %v4060_v60  ;;  %3023 = vmatpush.bf16.msrb.mxu2 %v4824_v3  ;;  %v4361_v60 = vld [vmem:[#allocation8 + $0x298] sm:$0xf0]  ;;  %v5532_v51 = vld [vmem:[#allocation8 + $0x6ec] sm:$0xf]  ;;  %v4556_v54 = vor.u32 %v5440_v45, %v4553_v46 }
 0x189   :  { %v4761_v3 = vld [vmem:[#allocation8 + $0x5b8] sm:$0xf0] }
 0x18a   :  { %3036 = vmatpush.bf16.msrb.mxu3 %v4968_v6  ;;  %3064 = vmatpush.bf16.msra.mxu1 %v4204_v7  ;;  %v4364_v6 = vor.u32 %v5392_v58, %v4361_v60  ;;  %v4508_v7 = vor.u32 %v5428_v62, %v4505_v1  ;;  %v4764_v11 = vor.u32 %v5492_v2, %v4761_v3  ;;  %v5945_v58 = vpop.f32.mrf.mxu0  ;;  %v5947_v60 = vpop.f32.mrf.mxu2  ;;  %v5574_v62 = vld [vmem:[#allocation11 + $0x38] sm:$0xff] }
 0x18b   :  { %v4924_v2 = vor.u32 %v5532_v51, %v4921_v55  ;;  %v5033_v26 = vld [vmem:[#allocation8 + $0x7d8] sm:$0xf0]  ;;  %v5580_v51 = vld [vmem:[#allocation11 + $0x68] sm:$0xff] }
 0x18c   :  { %3052 = vmatpush.bf16.msra.mxu0 %v4044_v12  ;;  %3024 = vmatpush.bf16.msrb.mxu2 %v4808_v20  ;;  %v4604_v12 = vor.u32 %v5452_v4, %v4601_v5  ;;  %v4348_v20 = vor.u32 %v5388_v8, %v4345_v9  ;;  %v5528_v4 = vld [vmem:[#allocation8 + $0x6cc] sm:$0xf]  ;;  %v4905_v5 = vld [vmem:[#allocation8 + $0x6d8] sm:$0xf0] }
 0x18d   :  { %v4425_v8 = vld [vmem:[#allocation8 + $0x318] sm:$0xf0]  ;;  %v5472_v9 = vld [vmem:[#allocation8 + $0x50c] sm:$0xf] }
 0x18e   :  { %3037 = vmatpush.bf16.msrb.mxu3 %v4952_v24  ;;  %3065 = vmatpush.bf16.msra.mxu1 %v4188_v28  ;;  %v5484_v28 = vld [vmem:[#allocation8 + $0x56c] sm:$0xf]  ;;  %v4857_v45 = vld [vmem:[#allocation8 + $0x678] sm:$0xf0] }
 0x18f   :  { %3053 = vmatmul.bf16.vlgmr.msra.gmra.mxu0 %v5893_v41  ;;  %3025 = vmatmul.bf16.vlgmr.msrb.gmra.mxu2 %v5919_v10  ;;  %v4524_v41 = vor.u32 %v5432_v49, %v4521_v50  ;;  %v4732_v39 = vor.u32 %v5484_v28, %v4729_v29  ;;  %v5376_v49 = vld [vmem:[#allocation8 + $0x20c] sm:$0xf]  ;;  %v4297_v50 = vld [vmem:[#allocation8 + $0x218] sm:$0xf0]  ;;  %v5957_v28 = vld [vmem:[#allocation10] sm:$0xf] }
 0x190   :  { %3101 = vmatpush.bf16.msrb.mxu0 %v4668_v17  ;;  %3073 = vmatpush.bf16.msra.mxu2 %v4412_v23  ;;  %v4745_v17 = vld [vmem:[#allocation8 + $0x598] sm:$0xf0]  ;;  %v4300_v1 = vor.u32 %v5376_v49, %v4297_v50  ;;  %v2762_v50 = vpop.f32.mrf.mxu3 }
 0x191   :  { %v4329_v23 = vld [vmem:[#allocation8 + $0x258] sm:$0xf0]  ;;  %v4748_v24 = vor.u32 %v5488_v16, %v4745_v17  ;;  %v5573_v16 = vld [vmem:[#allocation11 + $0x30] sm:$0xff]  ;;  %v4908_v17 = vor.u32 %v5528_v4, %v4905_v5 }
 0x192   :  { %3038 = vmatpush.bf16.msrb.mxu3 %v4936_v63  ;;  %3066 = vmatpush.bf16.msra.mxu1 %v4172_v43  ;;  %v4457_v63 = vld [vmem:[#allocation8 + $0x358] sm:$0xf0]  ;;  %v5480_v43 = vld [vmem:[#allocation8 + $0x54c] sm:$0xf]  ;;  %v2748_v31 = vpop.f32.mrf.mxu2 }
 0x193   :  { %v5582_v29 = vld [vmem:[#allocation11 + $0x78] sm:$0xff] }
 0x194   :  { %3102 = vmatpush.bf16.msrb.mxu0 %v4652_v34  ;;  %3074 = vmatpush.bf16.msra.mxu2 %v4396_v56  ;;  %v4332_v34 = vor.u32 %v5384_v22, %v4329_v23  ;;  %v5416_v56 = vld [vmem:[#allocation8 + $0x34c] sm:$0xf]  ;;  %v4889_v23 = vld [vmem:[#allocation8 + $0x6b8] sm:$0xf0] }
 0x195   :  { %3039 = vmatmul.bf16.vlgmr.msrb.gmra.mxu3 %v5923_v42  ;;  %3067 = vmatmul.bf16.vlgmr.msra.gmra.mxu1 %v5896_v0  ;;  %v4492_v0 = vor.u32 %v5424_v14, %v4489_v15  ;;  %v5564_v14 = vld [vmem:[#allocation8 + $0x7ec] sm:$0xf]  ;;  %v5049_v15 = vld [vmem:[#allocation8 + $0x7f8] sm:$0xf0] }
 0x196   :  { %3087 = vmatpush.bf16.msra.mxu3 %v4540_v44  ;;  %3115 = vmatpush.bf16.msrb.mxu1 %v4796_v47  ;;  %v4713_v44 = vld [vmem:[#allocation8 + $0x558] sm:$0xf0]  ;;  %v4316_v47 = vor.u32 %v5380_v37, %v4313_v38  ;;  %v5524_v22 = vld [vmem:[#allocation8 + $0x6ac] sm:$0xf]  ;;  %v1421_v37 = vperm.slane %v5957_v28, 0 }
 0x197   :  { %v4716_v52 = vor.u32 %v5480_v43, %v4713_v44  ;;  %v4892_v33 = vor.u32 %v5524_v22, %v4889_v23  ;;  %v5516_v44 = vld [vmem:[#allocation8 + $0x66c] sm:$0xf]  ;;  %v5570_v49 = vld [vmem:[#allocation11 + $0x18] sm:$0xff] }
 0x198   :  { %3103 = vmatpush.bf16.msrb.mxu0 %v4636_v48  ;;  %3075 = vmatpush.bf16.msra.mxu2 %v4380_v57  ;;  %v4460_v48 = vor.u32 %v5416_v56, %v4457_v63  ;;  %v5412_v57 = vld [vmem:[#allocation8 + $0x32c] sm:$0xf]  ;;  %v5581_v56 = vld [vmem:[#allocation11 + $0x70] sm:$0xff]  ;;  %v2719_v46 = vadd.f32 %v5941_v21, %v1421_v37  ;;  %v4809_v22 = vld [vmem:[#allocation8 + $0x618] sm:$0xf0] }
 0x199   :  { %v5548_v21 = vld [vmem:[#allocation8 + $0x76c] sm:$0xf] }
 0x19a   :  { %3088 = vmatpush.bf16.msra.mxu3 %v4524_v41  ;;  %3116 = vmatpush.bf16.msrb.mxu1 %v4780_v61  ;;  %v4441_v41 = vld [vmem:[#allocation8 + $0x338] sm:$0xf0]  ;;  %v5476_v61 = vld [vmem:[#allocation8 + $0x52c] sm:$0xf] }
 0x19b   :  { %v4444_v3 = vor.u32 %v5412_v57, %v4441_v41  ;;  %v5512_v57 = vld [vmem:[#allocation8 + $0x64c] sm:$0xf]  ;;  %v4841_v41 = vld [vmem:[#allocation8 + $0x658] sm:$0xf0] }
 0x19c   :  { %3104 = vmatpush.bf16.msrb.mxu0 %v4620_v30  ;;  %3076 = vmatpush.bf16.msra.mxu2 %v4364_v6  ;;  %v4697_v30 = vld [vmem:[#allocation8 + $0x538] sm:$0xf0]  ;;  %v5408_v6 = vld [vmem:[#allocation8 + $0x30c] sm:$0xf]  ;;  %v4844_v4 = vor.u32 %v5512_v57, %v4841_v41 }
 0x19d   :  { %v4428_v18 = vor.u32 %v5408_v6, %v4425_v8  ;;  %v5508_v6 = vld [vmem:[#allocation8 + $0x62c] sm:$0xf] }
 0x19e   :  { %3089 = vmatpush.bf16.msra.mxu3 %v4508_v7  ;;  %3117 = vmatpush.bf16.msrb.mxu1 %v4764_v11  ;;  %v4700_v7 = vor.u32 %v5476_v61, %v4697_v30  ;;  %v4681_v11 = vld [vmem:[#allocation8 + $0x518] sm:$0xf0]  ;;  %v2733_v61 = vadd.f32 %v5943_v35, %v2719_v46 }
 0x19f   :  { %v4985_v30 = vld [vmem:[#allocation8 + $0x778] sm:$0xf0] }
 0x1a0   :  { %3105 = vmatpush.bf16.msrb.mxu0 %v4604_v12  ;;  %3077 = vmatpush.bf16.msra.mxu2 %v4348_v20  ;;  %v5949_v12 = vpop.f32.mrf.mxu1  ;;  %v4684_v20 = vor.u32 %v5472_v9, %v4681_v11  ;;  %v4988_v5 = vor.u32 %v5548_v21, %v4985_v30  ;;  %v5544_v9 = vld [vmem:[#allocation8 + $0x74c] sm:$0xf]  ;;  %v4969_v11 = vld [vmem:[#allocation8 + $0x758] sm:$0xf0] }
 0x1a2   :  { %3090 = vmatpush.bf16.msra.mxu3 %v4492_v0  ;;  %3118 = vmatpush.bf16.msrb.mxu1 %v4748_v24  ;;  %v5052_v0 = vor.u32 %v5564_v14, %v5049_v15  ;;  %v5954_v24 = vpop.f32.mrf.mxu0  ;;  %v5568_v14 = vld [vmem:[#allocation11 + $0x8] sm:$0xff] }
 0x1a4   :  { %3106 = vmatpush.bf16.msrb.mxu0 %v4588_v25  ;;  %3078 = vmatpush.bf16.msra.mxu2 %v4332_v34  ;;  %v5560_v25 = vld [vmem:[#allocation8 + $0x7cc] sm:$0xf] }
 0x1a5   :  { %v5520_v34 = vld [vmem:[#allocation8 + $0x68c] sm:$0xf] }
 0x1a6   :  { %3091 = vmatpush.bf16.msra.mxu3 %v4476_v36  ;;  %3119 = vmatpush.bf16.msrb.mxu1 %v4732_v39  ;;  %v4873_v36 = vld [vmem:[#allocation8 + $0x698] sm:$0xf0] }
 0x1a7   :  { %v5017_v39 = vld [vmem:[#allocation8 + $0x7b8] sm:$0xf0]  ;;  %v4876_v63 = vor.u32 %v5520_v34, %v4873_v36 }
 0x1a8   :  { %3107 = vmatpush.bf16.msrb.mxu0 %v4572_v40  ;;  %3079 = vmatpush.bf16.msra.mxu2 %v4316_v47  ;;  %v5960_v38 = vpop.f32.mrf.mxu1  ;;  %v5571_v40 = vld [vmem:[#allocation11 + $0x20] sm:$0xff]  ;;  %v5552_v47 = vld [vmem:[#allocation8 + $0x78c] sm:$0xf] }
 0x1aa   :  { %3092 = vmatpush.bf16.msra.mxu3 %v4460_v48  ;;  %3120 = vmatpush.bf16.msrb.mxu1 %v4716_v52  ;;  %v5001_v48 = vld [vmem:[#allocation8 + $0x798] sm:$0xf0]  ;;  %v2776_v52 = vpop.f32.mrf.mxu0 }
 0x1ab   :  { %v5004_v55 = vor.u32 %v5552_v47, %v5001_v48  ;;  %v5575_v47 = vld [vmem:[#allocation11 + $0x40] sm:$0xff] }
 0x1ac   :  { %3108 = vmatpush.bf16.msrb.mxu0 %v4556_v54  ;;  %3080 = vmatpush.bf16.msra.mxu2 %v4300_v1  ;;  %v4860_v54 = vor.u32 %v5516_v44, %v4857_v45  ;;  %v5579_v1 = vld [vmem:[#allocation11 + $0x60] sm:$0xff] }
 0x1ae   :  { %3093 = vmatpush.bf16.msra.mxu3 %v4444_v3  ;;  %3121 = vmatpush.bf16.msrb.mxu1 %v4700_v7  ;;  %v4825_v7 = vld [vmem:[#allocation8 + $0x638] sm:$0xf0] }
 0x1af   :  { %3109 = vmatmul.bf16.vlgmr.msrb.gmra.mxu0 %v5909_v53  ;;  %3081 = vmatmul.bf16.vlgmr.msra.gmra.mxu2 %v5901_v32  ;;  %v5036_v53 = vor.u32 %v5560_v25, %v5033_v26  ;;  %v5556_v32 = vld [vmem:[#allocation8 + $0x7ac] sm:$0xf] }
 0x1b0   :  { %3429 = vmatpush.bf16.msra.mxu0 %v5574_v62  ;;  %3129 = vmatpush.bf16.msrb.mxu2 %v4924_v2  ;;  %v5020_v43 = vor.u32 %v5556_v32, %v5017_v39  ;;  %v5569_v62 = vld [vmem:[#allocation11 + $0x10] sm:$0xff]  ;;  %v2790_v3 = vpop.f32.mrf.mxu1  ;;  %v5540_v26 = vld [vmem:[#allocation8 + $0x72c] sm:$0xf] }
 0x1b1   :  { %v5536_v39 = vld [vmem:[#allocation8 + $0x70c] sm:$0xf] }
 0x1b2   :  { %3094 = vmatpush.bf16.msra.mxu3 %v4428_v18  ;;  %3122 = vmatpush.bf16.msrb.mxu1 %v4684_v20  ;;  %v4828_v18 = vor.u32 %v5508_v6, %v4825_v7  ;;  %v4972_v20 = vor.u32 %v5544_v9, %v4969_v11  ;;  %v2830_v25 = vpop.f32.mrf.mxu0 }
 0x1b4   :  { %3430 = vmatpush.bf16.msra.mxu0 %v5573_v16  ;;  %3130 = vmatpush.bf16.msrb.mxu2 %v4908_v17  ;;  %v5578_v16 = vld [vmem:[#allocation11 + $0x58] sm:$0xff] }
 0x1b5   :  { %3095 = vmatmul.bf16.vlgmr.msra.gmra.mxu3 %v5904_v59  ;;  %3123 = vmatmul.bf16.vlgmr.msrb.gmra.mxu1 %v5912_v13  ;;  %v2721_v59 = vadd.f32 %v5945_v58, %v1421_v37  ;;  %v2802_v13 = vpop.f32.mrf.mxu2  ;;  %v2747_v58 = vadd.f32 %v5947_v60, %v2733_v61 }
 0x1b6   :  { %3143 = vmatpush.bf16.msrb.mxu3 %v5052_v0  ;;  %3443 = vmatpush.bf16.msra.mxu1 %v5582_v29  ;;  %v5504_v0 = vld [vmem:[#allocation8 + $0x60c] sm:$0xf]  ;;  %v5567_v29 = vld [vmem:[#allocation11] sm:$0xff] }
 0x1b7   :  { %v2735_v2 = vadd.f32 %v5949_v12, %v2721_v59  ;;  %v2761_v8 = vadd.f32 %v5951_v19, %v2747_v58  ;;  %v1422_v59 = vperm.slane %v5957_v28, 1 }
 0x1b8   :  { %3431 = vmatpush.bf16.msra.mxu0 %v5572_v27  ;;  %3131 = vmatpush.bf16.msrb.mxu2 %v4892_v33  ;;  %v2816_v15 = vpop.f32.mrf.mxu3  ;;  %v4953_v27 = vld [vmem:[#allocation8 + $0x738] sm:$0xf0]  ;;  %v2844_v36 = vpop.f32.mrf.mxu1 }
 0x1b9   :  { %v2749_v35 = vadd.f32 %v2748_v31, %v2735_v2  ;;  %v2775_v60 = vadd.f32 %v5954_v24, %v2761_v8  ;;  %v5577_v31 = vld [vmem:[#allocation11 + $0x50] sm:$0xff]  ;;  %v4812_v24 = vor.u32 %v5504_v0, %v4809_v22  ;;  %v4956_v34 = vor.u32 %v5540_v26, %v4953_v27  ;;  %v5587_v0 = vld [vmem:[#allocation11 + $0xa0] sm:$0xff]  ;;  %v5586_v22 = vld [vmem:[#allocation11 + $0x98] sm:$0xff] }
 0x1ba   :  { %3144 = vmatpush.bf16.msrb.mxu3 %v5036_v53  ;;  %3444 = vmatpush.bf16.msra.mxu1 %v5581_v56  ;;  %v5576_v56 = vld [vmem:[#allocation11 + $0x48] sm:$0xff]  ;;  %v2832_v48 = vpop.f32.mrf.mxu0 }
 0x1bb   :  { %v2763_v12 = vadd.f32 %v2762_v50, %v2749_v35  ;;  %v2789_v19 = vadd.f32 %v5960_v38, %v2775_v60  ;;  %v4937_v38 = vld [vmem:[#allocation8 + $0x718] sm:$0xf0]  ;;  %v2833_v57 = vadd.f32 %v2832_v48, %v1422_v59 }
 0x1bc   :  { %3432 = vmatpush.bf16.msra.mxu0 %v5571_v40  ;;  %3132 = vmatpush.bf16.msrb.mxu2 %v4876_v63  ;;  %v4940_v44 = vor.u32 %v5536_v39, %v4937_v38 }
 0x1bd   :  { %v2804_v17 = vpop.f32.mrf.mxu2  ;;  %v2777_v23 = vadd.f32 %v2776_v52, %v2763_v12  ;;  %v2803_v53 = vadd.f32 %v2802_v13, %v2789_v19  ;;  %v2831_v13 = vadd.f32 %v2830_v25, %v1422_v59  ;;  %v5585_v19 = vld [vmem:[#allocation11 + $0x90] sm:$0xff]  ;;  %v5584_v25 = vld [vmem:[#allocation11 + $0x88] sm:$0xff] }
 0x1be   :  { %3145 = vmatpush.bf16.msrb.mxu3 %v5020_v43  ;;  %3445 = vmatpush.bf16.msra.mxu1 %v5580_v51 }
 0x1bf   :  { %v2791_v33 = vadd.f32 %v2790_v3, %v2777_v23  ;;  %v2817_v37 = vadd.f32 %v2816_v15, %v2803_v53  ;;  %v1423_v53 = vperm.slane %v5957_v28, 2 }
 0x1c0   :  { %3433 = vmatpush.bf16.msra.mxu0 %v5570_v49  ;;  %3133 = vmatpush.bf16.msrb.mxu2 %v4860_v54  ;;  %v2818_v40 = vpop.f32.mrf.mxu3  ;;  %v2846_v51 = vpop.f32.mrf.mxu1 }
 0x1c1   :  { %v2805_v32 = vadd.f32 %v2804_v17, %v2791_v33  ;;  %v3157_v45 = vmax.f32 %v2817_v37, 0.0  ;;  %v2847_v61 = vadd.f32 %v2846_v51, %v2833_v57  ;;  %v5589_v17 = vld [vmem:[#allocation11 + $0xb0] sm:$0xff] }
 0x1c2   :  { %3146 = vmatpush.bf16.msrb.mxu3 %v5004_v55  ;;  %3446 = vmatpush.bf16.msra.mxu1 %v5579_v1  ;;  %v2886_v54 = vpop.f32.mrf.mxu0  ;;  %v2845_v55 = vadd.f32 %v2844_v36, %v2831_v13 }
 0x1c3   :  { %v2819_v63 = vadd.f32 %v2818_v40, %v2805_v32 }
 0x1c4   :  { %3434 = vmatpush.bf16.msra.mxu0 %v5569_v62  ;;  %3134 = vmatpush.bf16.msrb.mxu2 %v4844_v4 }
 0x1c5   :  { %v2858_v43 = vpop.f32.mrf.mxu2  ;;  %v3161_v46 = vmax.f32 %v2819_v63, 0.0 }
 0x1c6   :  { %3147 = vmatpush.bf16.msrb.mxu3 %v4988_v5  ;;  %3447 = vmatpush.bf16.msra.mxu1 %v5578_v16 }
 0x1c7   :  { %v3165_v49 = vpack.c.bf16 %v3161_v46, %v3157_v45 }
 0x1c8   :  { %3435 = vmatpush.bf16.msra.mxu0 %v5568_v14  ;;  %3135 = vmatpush.bf16.msrb.mxu2 %v4828_v18  ;;  %v2872_v50 = vpop.f32.mrf.mxu3  ;;  %v2900_v21 = vpop.f32.mrf.mxu1  ;;  %v5590_v14 = vld [vmem:[#allocation11 + $0xb8] sm:$0xff] }
 0x1ca   :  { %3148 = vmatpush.bf16.msrb.mxu3 %v4972_v20  ;;  %3448 = vmatpush.bf16.msra.mxu1 %v5577_v31  ;;  %v2888_v3 = vpop.f32.mrf.mxu0  ;;  %v5588_v20 = vld [vmem:[#allocation11 + $0xa8] sm:$0xff] }
 0x1cc   :  { %3436 = vmatpush.bf16.msra.mxu0 %v5567_v29  ;;  %3136 = vmatpush.bf16.msrb.mxu2 %v4812_v24  ;;  %v5583_v29 = vld [vmem:[#allocation11 + $0x80] sm:$0xff] }
 0x1cd   :  { %v2860_v52 = vpop.f32.mrf.mxu2 }
 0x1ce   :  { %3149 = vmatpush.bf16.msrb.mxu3 %v4956_v34  ;;  %3449 = vmatpush.bf16.msra.mxu1 %v5576_v56  ;;  %v2861_v1 = vadd.f32 %v2860_v52, %v2847_v61  ;;  %v5598_v61 = vld [vmem:[#allocation11 + $0xf8] sm:$0xff] }
 0x1cf   :  { %3137 = vmatmul.bf16.vlgmr.msrb.gmra.mxu2 %v5919_v10  ;;  %3437 = vmatmul.bf16.vlgmr.msra.gmra.mxu0 %v3165_v49  ;;  %v2859_v10 = vadd.f32 %v2858_v43, %v2845_v55 }
 0x1d0   :  { %v2874_v41 = vpop.f32.mrf.mxu3  ;;  %v2902_v6 = vpop.f32.mrf.mxu1  ;;  %3457 = vmatpush.bf16.msra.mxu2 %v5590_v14 }
 0x1d1   :  { %v2873_v62 = vadd.f32 %v2872_v50, %v2859_v10  ;;  %v2875_v2 = vadd.f32 %v2874_v41, %v2861_v1 }
 0x1d2   :  { %3150 = vmatpush.bf16.msrb.mxu3 %v4940_v44  ;;  %3450 = vmatpush.bf16.msra.mxu1 %v5575_v47  ;;  %v2942_v23 = vpop.f32.mrf.mxu0 }
 0x1d3   :  { %v2887_v58 = vadd.f32 %v2886_v54, %v2873_v62  ;;  %v2889_v5 = vadd.f32 %v2888_v3, %v2875_v2  ;;  %v2943_v36 = vadd.f32 %v2942_v23, %v1423_v53  ;;  %v5596_v2 = vld [vmem:[#allocation11 + $0xe8] sm:$0xff]  ;;  %v5594_v3 = vld [vmem:[#allocation11 + $0xd8] sm:$0xff] }
 0x1d4   :  { %3458 = vmatpush.bf16.msra.mxu2 %v5589_v17 }
 0x1d5   :  { %3151 = vmatmul.bf16.vlgmr.msrb.gmra.mxu3 %v5923_v42  ;;  %v2914_v30 = vpop.f32.mrf.mxu2  ;;  %v2901_v42 = vadd.f32 %v2900_v21, %v2887_v58  ;;  %v2903_v35 = vadd.f32 %v2902_v6, %v2889_v5  ;;  %v5597_v21 = vld [vmem:[#allocation11 + $0xf0] sm:$0xff]  ;;  %v5595_v58 = vld [vmem:[#allocation11 + $0xe0] sm:$0xff] }
 0x1d6   :  { %3471 = vmatpush.bf16.msra.mxu3 %v5598_v61 }
 0x1d7   :  { %v2915_v8 = vadd.f32 %v2914_v30, %v2901_v42  ;;  %v5592_v42 = vld [vmem:[#allocation11 + $0xc8] sm:$0xff] }
 0x1d8   :  { %v2928_v4 = vpop.f32.mrf.mxu3  ;;  %3459 = vmatpush.bf16.msra.mxu2 %v5588_v20  ;;  %v2956_v26 = vpop.f32.mrf.mxu1 }
 0x1d9   :  { %v2929_v9 = vadd.f32 %v2928_v4, %v2915_v8  ;;  %v2957_v32 = vadd.f32 %v2956_v26, %v2943_v36  ;;  %v5593_v4 = vld [vmem:[#allocation11 + $0xd0] sm:$0xff]  ;;  %v5591_v8 = vld [vmem:[#allocation11 + $0xc0] sm:$0xff] }
 0x1da   :  { %v2944_v31 = vpop.f32.mrf.mxu0  ;;  %3472 = vmatpush.bf16.msra.mxu3 %v5597_v21 }
 0x1db   :  { %v3158_v12 = vmax.f32 %v2929_v9, 0.0  ;;  %v2945_v39 = vadd.f32 %v2944_v31, %v1423_v53 }
 0x1dc   :  { %3460 = vmatpush.bf16.msra.mxu2 %v5587_v0 }
 0x1dd   :  { %v2916_v7 = vpop.f32.mrf.mxu2 }
 0x1de   :  { %v2917_v11 = vadd.f32 %v2916_v7, %v2903_v35  ;;  %3473 = vmatpush.bf16.msra.mxu3 %v5596_v2 }
 0x1e0   :  { %v2930_v15 = vpop.f32.mrf.mxu3  ;;  %3461 = vmatpush.bf16.msra.mxu2 %v5586_v22  ;;  %v2958_v24 = vpop.f32.mrf.mxu1 }
 0x1e1   :  { %v2931_v16 = vadd.f32 %v2930_v15, %v2917_v11  ;;  %v2959_v40 = vadd.f32 %v2958_v24, %v2945_v39  ;;  %v1424_v11 = vperm.slane %v5957_v28, 3 }
 0x1e2   :  { %3474 = vmatpush.bf16.msra.mxu3 %v5595_v58 }
 0x1e3   :  { %v3162_v60 = vmax.f32 %v2931_v16, 0.0 }
 0x1e4   :  { %3462 = vmatpush.bf16.msra.mxu2 %v5585_v19 }
 0x1e5   :  { %v3166_v18 = vpack.c.bf16 %v3162_v60, %v3158_v12 }
 0x1e6   :  { %3475 = vmatpush.bf16.msra.mxu3 %v5594_v3 }
 0x1e7   :  { %3451 = vmatmul.bf16.vlgmr.msra.gmra.mxu1 %v3166_v18 }
 0x1e8   :  { %3463 = vmatpush.bf16.msra.mxu2 %v5584_v25 }
 0x1ea   :  { %3476 = vmatpush.bf16.msra.mxu3 %v5593_v4 }
 0x1ec   :  { %3464 = vmatpush.bf16.msra.mxu2 %v5583_v29  ;;  %v2998_v37 = vpop.f32.mrf.mxu0 }
 0x1ee   :  { %3477 = vmatpush.bf16.msra.mxu3 %v5592_v42 }
 0x1f2   :  { %v2970_v27 = vpop.f32.mrf.mxu2  ;;  %v3012_v63 = vpop.f32.mrf.mxu1  ;;  %3478 = vmatpush.bf16.msra.mxu3 %v5591_v8 }
 0x1f3   :  { %v2971_v56 = vadd.f32 %v2970_v27, %v2957_v32 }
 0x1f4   :  { %v3000_v48 = vpop.f32.mrf.mxu0 }
 0x1f8   :  { %v2984_v33 = vpop.f32.mrf.mxu3 }
 0x1f9   :  { %v2985_v43 = vadd.f32 %v2984_v33, %v2971_v56 }
 0x1fa   :  { %v2972_v34 = vpop.f32.mrf.mxu2  ;;  %v3014_v59 = vpop.f32.mrf.mxu1 }
 0x1fb   :  { %v2973_v44 = vadd.f32 %v2972_v34, %v2959_v40  ;;  %v2999_v47 = vadd.f32 %v2998_v37, %v2985_v43 }
 0x1fd   :  { %v3013_v51 = vadd.f32 %v3012_v63, %v2999_v47 }
 0x200   :  { %v2986_v38 = vpop.f32.mrf.mxu3 }
 0x201   :  { %v2987_v46 = vadd.f32 %v2986_v38, %v2973_v44  ;;  %v5614_v44 = vld [vmem:[%s5992_s6] ss:$0 sm:$0xff] }
 0x203   :  { %v3001_v50 = vadd.f32 %v3000_v48, %v2987_v46 }
 0x205   :  { %v3015_v54 = vadd.f32 %v3014_v59, %v3001_v50 }
 0x20c   :  { %v3054_v5 = vpop.f32.mrf.mxu0 }
 0x20d   :  { %v3055_v16 = vadd.f32 %v3054_v5, %v1424_v11 }
 0x212   :  { %v3026_v45 = vpop.f32.mrf.mxu2  ;;  %v3068_v6 = vpop.f32.mrf.mxu1 }
 0x213   :  { %v3027_v13 = vadd.f32 %v3026_v45, %v3013_v51  ;;  %v3069_v60 = vadd.f32 %v3068_v6, %v3055_v16 }
 0x214   :  { %v3056_v35 = vpop.f32.mrf.mxu0 }
 0x215   :  { %v3057_v17 = vadd.f32 %v3056_v35, %v1424_v11 }
 0x218   :  { %v3040_v49 = vpop.f32.mrf.mxu3 }
 0x219   :  { %v3041_v55 = vadd.f32 %v3040_v49, %v3027_v13 }
 0x21a   :  { %v3028_v52 = vpop.f32.mrf.mxu2  ;;  %v3070_v14 = vpop.f32.mrf.mxu1 }
 0x21b   :  { %v3029_v57 = vadd.f32 %v3028_v52, %v3015_v54  ;;  %v3159_v30 = vmax.f32 %v3041_v55, 0.0  ;;  %v3071_v20 = vadd.f32 %v3070_v14, %v3057_v17 }
 0x220   :  { %v3042_v41 = vpop.f32.mrf.mxu3 }
 0x221   :  { %v3043_v10 = vadd.f32 %v3042_v41, %v3029_v57 }
 0x223   :  { %v3163_v62 = vmax.f32 %v3043_v10, 0.0 }
 0x225   :  { %v3167_v1 = vpack.c.bf16 %v3163_v62, %v3159_v30 }
 0x227   :  { %3465 = vmatmul.bf16.vlgmr.msra.gmra.mxu2 %v3167_v1 }
 0x22c   :  { %v3110_v12 = vpop.f32.mrf.mxu0 }
 0x232   :  { %v3082_v7 = vpop.f32.mrf.mxu2  ;;  %v3124_v22 = vpop.f32.mrf.mxu1 }
 0x233   :  { %v3083_v0 = vadd.f32 %v3082_v7, %v3069_v60 }
 0x234   :  { %v3112_v29 = vpop.f32.mrf.mxu0 }
 0x238   :  { %v3096_v9 = vpop.f32.mrf.mxu3 }
 0x239   :  { %v3097_v19 = vadd.f32 %v3096_v9, %v3083_v0 }
 0x23a   :  { %v3084_v15 = vpop.f32.mrf.mxu2  ;;  %v3126_v28 = vpop.f32.mrf.mxu1 }
 0x23b   :  { %v3085_v23 = vadd.f32 %v3084_v15, %v3071_v20  ;;  %v3111_v27 = vadd.f32 %v3110_v12, %v3097_v19 }
 0x23d   :  { %v3125_v53 = vadd.f32 %v3124_v22, %v3111_v27 }
 0x240   :  { %v3098_v18 = vpop.f32.mrf.mxu3 }
 0x241   :  { %v3099_v26 = vadd.f32 %v3098_v18, %v3085_v23 }
 0x243   :  { %v3113_v33 = vadd.f32 %v3112_v29, %v3099_v26 }
 0x245   :  { %v3127_v36 = vadd.f32 %v3126_v28, %v3113_v33 }
 0x24c   :  { %v3438_v43 = vpop.f32.mrf.mxu0 }
 0x24d   :  { %v3439_v47 = vadd.f32 %v5614_v44, %v3438_v43 }
 0x252   :  { %v3138_v25 = vpop.f32.mrf.mxu2 }
 0x253   :  { %v3139_v34 = vadd.f32 %v3138_v25, %v3125_v53 }
 0x254   :  { %v3440_v50 = vpop.f32.mrf.mxu0 }
 0x255   :  { %v3441_v13 = vadd.f32 %v5614_v44, %v3440_v50 }
 0x258   :  { %v3152_v31 = vpop.f32.mrf.mxu3 }
 0x259   :  { %v3153_v37 = vadd.f32 %v3152_v31, %v3139_v34 }
 0x25a   :  { %v3140_v24 = vpop.f32.mrf.mxu2 }
 0x25b   :  { %v3141_v32 = vadd.f32 %v3140_v24, %v3127_v36  ;;  %v3160_v40 = vmax.f32 %v3153_v37, 0.0 }
 0x260   :  { %v3154_v39 = vpop.f32.mrf.mxu3 }
 0x261   :  { %v3155_v38 = vadd.f32 %v3154_v39, %v3141_v32 }
 0x263   :  { %v3164_v56 = vmax.f32 %v3155_v38, 0.0 }
 0x264   :  { %v3452_v45 = vpop.f32.mrf.mxu1 }
 0x265   :  { %v3168_v63 = vpack.c.bf16 %v3164_v56, %v3160_v40  ;;  %v3453_v48 = vadd.f32 %v3452_v45, %v3439_v47 }
 0x267   :  { %3479 = vmatmul.bf16.vlgmr.msra.gmra.mxu3 %v3168_v63 }
 0x26c   :  { %v3454_v52 = vpop.f32.mrf.mxu1 }
 0x26d   :  { %v3455_v55 = vadd.f32 %v3454_v52, %v3441_v13 }
 0x2aa   :  { %v3466_v46 = vpop.f32.mrf.mxu2 }
 0x2ab   :  { %v3467_v49 = vadd.f32 %v3466_v46, %v3453_v48 }
 0x2b2   :  { %v3468_v54 = vpop.f32.mrf.mxu2 }
 0x2b3   :  { %v3469_v57 = vadd.f32 %v3468_v54, %v3455_v55 }
 0x2ea   :  { %v3480_v51 = vpop.f32.mrf.mxu3 }
 0x2eb   :  { %v3481_v59 = vadd.f32 %v3480_v51, %v3467_v49 }
 0x2ed   :  { %3485 = vst [vmem:[#allocation13] sm:$0xff] %v3481_v59 }
 0x2f2   :  { %v3482_v41 = vpop.f32.mrf.mxu3 }
 0x2f3   :  { %v3483_v61 = vadd.f32 %v3482_v41, %v3469_v57 }
 0x2f5   :  { %3486 = vst [vmem:[#allocation13 + $0x8] sm:$0xf] %v3483_v61 }
 0x2f6   :  { %3499 = dma.vmem_to_hbm [thread:$0]  %s3492_s13, 256, %s3494_s15, [#allocation4], %s5800_s21, %s5800_s21, %s5801_s22  }
 0x2f7   :  { %5791 = dma.done.wait [#allocation4], 256  }
 0x2f8   :  { %5792 = vsyncadd [#allocation4], 4294967040 }
 0x2f9   :  { %3504 = vsyncpa [#allocation3], 1 }
 0x2fa   :  { %3505 = vsyncpa [#allocation6], 1 }
 0x2fb   :  { %3506 = vsyncpa [#allocation9], 1 }
 0x2fc   :  { %3507 = vsyncpa [#allocation12], 1 }
 0x2fd   :  { %3508 = vsyncpa [#allocation4], 1 }

</bundles_post_ra>
